<compile_context>
chip_gen: v5e
topology: v5e:2x2
jax: 0.10.0
libtpu: 0.0.40
codegen_flags: <defaults>
</compile_context>

<pallas_src>
import jax
import jax.numpy as jnp
from jax import lax
from jax.experimental import pallas as pl
from jax.experimental.pallas import tpu as pltpu

EPS = 1e-5  # BatchNorm1d default eps


def _round_up(x, m):
    return (x + m - 1) // m * m


# ---------------------------------------------------------------------------
# Kernel 1: one fused, tiled SAGE layer
#   acc  += adj_tile(bf16) @ x_tile(bf16)                 (reduction over k)
#   h     = (acc * 1/deg) @ Wl + x_self @ Wr              (finalize)
#   out   = relu(h * bn_scale + bn_shift)
# ---------------------------------------------------------------------------
def sage_layer_kernel(inv_deg_ref, adj_ref, x_nb_ref, x_self_ref,
                      wl_ref, wr_ref, scale_ref, shift_ref,
                      out_ref, acc_ref):
    k = pl.program_id(1)

    @pl.when(k == 0)
    def _():
        acc_ref[...] = jnp.zeros_like(acc_ref)

    x_nb = x_nb_ref[...].astype(jnp.bfloat16)            # [tk, Fin]
    acc_ref[...] += jnp.dot(adj_ref[...], x_nb,          # [tm, Fin] f32 acc
                            preferred_element_type=jnp.float32)

    @pl.when(k == pl.num_programs(1) - 1)
    def _():
        agg = (acc_ref[...] * inv_deg_ref[...]).astype(jnp.bfloat16)   # mean agg
        x_self = x_self_ref[...].astype(jnp.bfloat16)
        h = jnp.dot(agg, wl_ref[...], preferred_element_type=jnp.float32)
        h = h + jnp.dot(x_self, wr_ref[...], preferred_element_type=jnp.float32)
        y = h * scale_ref[...] + shift_ref[...]          # folded BN (+ lin_l bias)
        out_ref[...] = jnp.maximum(y, 0.0)


def sage_layer(adj_bf16, inv_deg, x, wl_t, wr_t, scale, shift, *, tm=256, tk=256):
    n, fin = x.shape
    hid = wl_t.shape[1]
    tm = min(tm, n)
    tk = min(tk, n)
    assert n % tm == 0 and n % tk == 0, "N must be divisible by the tile sizes"
    grid = (n // tm, n // tk)        # (row tiles [parallel], neighbor tiles [reduction])
    return pl.pallas_call(
        sage_layer_kernel,
        out_shape=jax.ShapeDtypeStruct((n, hid), jnp.float32),
        grid_spec=pltpu.PrefetchScalarGridSpec(
            num_scalar_prefetch=0,
            grid=grid,
            in_specs=[
                pl.BlockSpec((tm, 1),    lambda i, k: (i, 0)),   # 1/deg (precomputed)
                pl.BlockSpec((tm, tk),   lambda i, k: (i, k)),   # adj tile (bf16)
                pl.BlockSpec((tk, fin),  lambda i, k: (k, 0)),   # x neighbor rows
                pl.BlockSpec((tm, fin),  lambda i, k: (i, 0)),   # x self rows
                pl.BlockSpec((fin, hid), lambda i, k: (0, 0)),   # Wl^T (bf16)
                pl.BlockSpec((fin, hid), lambda i, k: (0, 0)),   # Wr^T (bf16)
                pl.BlockSpec((1, hid),   lambda i, k: (0, 0)),   # folded BN scale
                pl.BlockSpec((1, hid),   lambda i, k: (0, 0)),   # folded BN shift
            ],
            out_specs=pl.BlockSpec((tm, hid), lambda i, k: (i, 0)),
            scratch_shapes=[pltpu.VMEM((tm, fin), jnp.float32)],
        ),
        compiler_params=pltpu.CompilerParams(
            dimension_semantics=("parallel", "arbitrary"),
            # Tile budget sized for v7x (64 MiB physical VMEM); comfortably
            # within the default on v5e/v6e as well.
            vmem_limit_bytes=32 * 1024 * 1024,
        ),
    )(inv_deg, adj_bf16, x, x, wl_t, wr_t, scale, shift)


# ---------------------------------------------------------------------------
# Kernel 2: fused tail
#   cf    = cid^T @ x_sel / cid.sum(0)[:, None]
#   x1    = onehot(argmax(cid, 1)) @ cf                  (== cf[argmax], via MXU)
#   top   = x_sel @ Wa + x1 @ Wb + b                     (== fc1(cat(x_sel, x1)))
#   bot   = x1 @ Wa + x_sel @ Wb + b                     (== fc1(cat(x1, x_sel)))
#   The [2M, 2H] concat is never materialized; output is lane-dense (O padded).
# ---------------------------------------------------------------------------
def tail_kernel(cid_t_ref, sel_ref, xsel_ref, wa_ref, wb_ref, b_ref, out_ref):
    m = xsel_ref.shape[0]
    cid_t = cid_t_ref[...]                                        # [C, M]
    xsel = xsel_ref[...]                                          # [M, H]
    num = jnp.dot(cid_t, xsel, preferred_element_type=jnp.float32)  # [C, H]
    # No clamp: exact torch semantics (an empty cluster yields inf/NaN cluster
    # features, same as the reference module).  Driver keeps clusters non-empty.
    denom = jnp.sum(cid_t, axis=1, keepdims=True)                 # [C, 1]
    cf = num / denom
    x1 = jnp.dot(sel_ref[...], cf, preferred_element_type=jnp.float32)  # [M, H]
    wa = wa_ref[...]
    wb = wb_ref[...]
    bias = b_ref[...]
    out_ref[:m, :] = (jnp.dot(xsel, wa, preferred_element_type=jnp.float32)
                      + jnp.dot(x1, wb, preferred_element_type=jnp.float32) + bias)
    out_ref[m:, :] = (jnp.dot(x1, wa, preferred_element_type=jnp.float32)
                      + jnp.dot(xsel, wb, preferred_element_type=jnp.float32) + bias)


def cluster_tail(cid_t, sel, x_sel, wa, wb, b_pad):
    # TODO(synk): for very large M this tail should get its own M-tiled grid;
    # at the small M typical for the cluster head a single VMEM-resident call
    # (one launch instead of four) is the latency win.
    m, _ = x_sel.shape
    o_pad = wa.shape[1]
    return pl.pallas_call(
        tail_kernel,
        out_shape=jax.ShapeDtypeStruct((2 * m, o_pad), jnp.float32),
        in_specs=[pl.BlockSpec(memory_space=pltpu.MemorySpace.VMEM)
                  for _ in range(6)],
        out_specs=pl.BlockSpec(memory_space=pltpu.MemorySpace.VMEM),
    )(cid_t, sel, x_sel, wa, wb, b_pad)


# ---------------------------------------------------------------------------
# Parameter init (deterministic, mirroring the module's __init__ shapes)
# ---------------------------------------------------------------------------
def init_params(key, in_channels, hidden, out_channels, num_layers):
    params = {"convs": [], "bns": []}
    dims = [in_channels] + [hidden] * num_layers
    for l in range(num_layers):
        key, k1, k2, k3 = jax.random.split(key, 4)
        fan_in = dims[l]
        bound = 1.0 / jnp.sqrt(jnp.float32(fan_in))
        wl = jax.random.uniform(k1, (hidden, fan_in), jnp.float32, -bound, bound)
        bl = jax.random.uniform(k2, (hidden,), jnp.float32, -bound, bound)
        wr = jax.random.uniform(k3, (hidden, fan_in), jnp.float32, -bound, bound)
        params["convs"].append((wl, bl, wr))
        # BatchNorm1d default init: gamma=1, beta=0, running_mean=0, running_var=1
        params["bns"].append((jnp.ones(hidden, jnp.float32),
                              jnp.zeros(hidden, jnp.float32),
                              jnp.zeros(hidden, jnp.float32),
                              jnp.ones(hidden, jnp.float32)))
    key, k1, k2 = jax.random.split(key, 3)
    fan_in = 2 * hidden
    out_dim = out_channels * out_channels
    bound = 1.0 / jnp.sqrt(jnp.float32(fan_in))
    w = jax.random.uniform(k1, (out_dim, fan_in), jnp.float32, -bound, bound)
    b = jax.random.uniform(k2, (out_dim,), jnp.float32, -bound, bound)
    params["fc1"] = (w, b)
    return params


# ---------------------------------------------------------------------------
# Full forward (is_val=False path, eval mode)
# ---------------------------------------------------------------------------
def sage_forward(params, x, adj, cluster_id, cluster_index):
    # Hoisted once, reused by every layer: degree normalization + bf16 adjacency.
    deg = jnp.sum(adj, axis=1, keepdims=True)
    inv_deg = 1.0 / jnp.maximum(deg, 1.0)          # isolated node -> mean agg = 0
    adj_bf16 = adj.astype(jnp.bfloat16)            # 0/1 entries are exact in bf16

    # TODO(synk): fusing both layers into one kernel (activations resident in
    # VMEM between layers) would save one [N,H] HBM round trip.
    for (wl, bl, wr), (gamma, beta, rm, rv) in zip(params["convs"], params["bns"]):
        scale = gamma * lax.rsqrt(rv + EPS)                   # folded BN scale
        shift = (bl - rm) * scale + beta                      # folded BN shift (+lin_l bias)
        x = sage_layer(adj_bf16, inv_deg, x,
                       wl.T.astype(jnp.bfloat16), wr.T.astype(jnp.bfloat16),
                       scale[None, :], shift[None, :])
        # F.dropout(training=False) -> identity

    # TODO(synk): x[cluster_index] gather + argmax one-hot kept as XLA glue;
    # a scalar-prefetch pl.Element row-gather would fuse them into the tail.
    x_sel = jnp.take(x, cluster_index, axis=0)                 # [M, H]
    assign = jnp.argmax(cluster_id, axis=1)                    # [M]
    sel = jax.nn.one_hot(assign, cluster_id.shape[1], dtype=jnp.float32)  # [M, C]

    w, b = params["fc1"]
    hid = x.shape[1]
    o = w.shape[0]
    o_pad = max(_round_up(o, 128), 128)                        # lane-dense fc1 output
    wa = jnp.zeros((hid, o_pad), jnp.float32).at[:, :o].set(w[:, :hid].T)
    wb = jnp.zeros((hid, o_pad), jnp.float32).at[:, :o].set(w[:, hid:].T)
    b_pad = jnp.zeros((1, o_pad), jnp.float32).at[0, :o].set(b)

    out_pad = cluster_tail(cluster_id.T, sel, x_sel, wa, wb, b_pad)   # [2M, o_pad]
    return out_pad[:, :o]


if __name__ == "__main__":
    key = jax.random.PRNGKey(0)

    N = 512           # number of graph nodes
    IN_CH = 128       # input feature dim (lane-dense)
    HIDDEN = 128      # hidden_channels (lane-dense)
    OUT_CH = 4        # out_channels  -> fc1 output dim = 16
    NUM_LAYERS = 2
    M = 256           # number of clustered nodes (len(cluster_index))
    C = 8             # number of clusters

    key, kx, ka, kp = jax.random.split(key, 4)
    x = jax.random.normal(kx, (N, IN_CH), jnp.float32)
    adj = (jax.random.uniform(ka, (N, N)) > 0.9).astype(jnp.float32)
    adj = adj.at[jnp.arange(N), jnp.arange(N)].set(1.0)   # self loops -> deg >= 1

    cluster_index = jnp.arange(M, dtype=jnp.int32)        # first M nodes
    assign = jnp.arange(M, dtype=jnp.int32) % C           # each cluster non-empty
    cluster_id = jax.nn.one_hot(assign, C, dtype=jnp.float32)   # [M, C]

    params = init_params(kp, IN_CH, HIDDEN, OUT_CH, NUM_LAYERS)

    fwd = jax.jit(sage_forward)
    out = fwd(params, x, adj, cluster_id, cluster_index)
    out = jax.block_until_ready(out)
    assert out.shape == (2 * M, OUT_CH * OUT_CH)
    assert bool(jnp.all(jnp.isfinite(out)))
    print("KERNEL_OK")
</pallas_src>

<mosaic_0001>
module attributes {stable_mosaic.version = 11 : i64} {
  func.func @tail_kernel(%arg0: memref<8x256xf32, #tpu.memory_space<vmem>>, %arg1: memref<256x8xf32, #tpu.memory_space<vmem>>, %arg2: memref<256x128xf32, #tpu.memory_space<vmem>>, %arg3: memref<128x128xf32, #tpu.memory_space<vmem>>, %arg4: memref<128x128xf32, #tpu.memory_space<vmem>>, %arg5: memref<1x128xf32, #tpu.memory_space<vmem>>, %arg6: memref<512x128xf32, #tpu.memory_space<vmem>>) attributes {dimension_semantics = [], scalar_prefetch = 0 : i64, scratch_operands = 0 : i64, tpu.core_type = #tpu.core_type<tc>} {
    %c0 = arith.constant 0 : index
    %c0_0 = arith.constant 0 : index
    %0 = vector.load %arg0[%c0, %c0_0] : memref<8x256xf32, #tpu.memory_space<vmem>>, vector<8x256xf32>
    %c0_1 = arith.constant 0 : index
    %c0_2 = arith.constant 0 : index
    %1 = vector.load %arg2[%c0_1, %c0_2] : memref<256x128xf32, #tpu.memory_space<vmem>>, vector<256x128xf32>
    %cst = arith.constant dense<0.000000e+00> : vector<8x128xf32>
    %2 = tpu.matmul %0, %1, %cst {dimension_numbers = #tpu.dot_dimension_numbers<[1], [0], [0], [1], [0, 0, 1, 1], [], []>} : vector<8x256xf32>, vector<256x128xf32>, vector<8x128xf32> -> vector<8x128xf32>
    %cst_3 = arith.constant dense<0.000000e+00> : vector<8xf32>
    %3 = vector.multi_reduction <add>, %0, %cst_3 [1] : vector<8x256xf32> to vector<8xf32>
    %4 = vector.shape_cast %3 : vector<8xf32> to vector<8x1xf32>
    %5 = vector.broadcast %4 : vector<8x1xf32> to vector<8x128xf32>
    %6 = arith.divf %2, %5 : vector<8x128xf32>
    %c0_4 = arith.constant 0 : index
    %c0_5 = arith.constant 0 : index
    %7 = vector.load %arg1[%c0_4, %c0_5] : memref<256x8xf32, #tpu.memory_space<vmem>>, vector<256x8xf32>
    %cst_6 = arith.constant dense<0.000000e+00> : vector<256x128xf32>
    %8 = tpu.matmul %7, %6, %cst_6 {dimension_numbers = #tpu.dot_dimension_numbers<[1], [0], [0], [1], [0, 0, 1, 1], [], []>} : vector<256x8xf32>, vector<8x128xf32>, vector<256x128xf32> -> vector<256x128xf32>
    %c0_7 = arith.constant 0 : index
    %c0_8 = arith.constant 0 : index
    %9 = vector.load %arg3[%c0_7, %c0_8] : memref<128x128xf32, #tpu.memory_space<vmem>>, vector<128x128xf32>
    %c0_9 = arith.constant 0 : index
    %c0_10 = arith.constant 0 : index
    %10 = vector.load %arg4[%c0_9, %c0_10] : memref<128x128xf32, #tpu.memory_space<vmem>>, vector<128x128xf32>
    %c0_11 = arith.constant 0 : index
    %c0_12 = arith.constant 0 : index
    %11 = vector.load %arg5[%c0_11, %c0_12] : memref<1x128xf32, #tpu.memory_space<vmem>>, vector<1x128xf32>
    %cst_13 = arith.constant dense<0.000000e+00> : vector<256x128xf32>
    %12 = tpu.matmul %1, %9, %cst_13 {dimension_numbers = #tpu.dot_dimension_numbers<[1], [0], [0], [1], [0, 0, 1, 1], [], []>} : vector<256x128xf32>, vector<128x128xf32>, vector<256x128xf32> -> vector<256x128xf32>
    %cst_14 = arith.constant dense<0.000000e+00> : vector<256x128xf32>
    %13 = tpu.matmul %8, %10, %cst_14 {dimension_numbers = #tpu.dot_dimension_numbers<[1], [0], [0], [1], [0, 0, 1, 1], [], []>} : vector<256x128xf32>, vector<128x128xf32>, vector<256x128xf32> -> vector<256x128xf32>
    %14 = arith.addf %12, %13 : vector<256x128xf32>
    %15 = vector.broadcast %11 : vector<1x128xf32> to vector<256x128xf32>
    %16 = arith.addf %14, %15 : vector<256x128xf32>
    %c0_15 = arith.constant 0 : index
    %c0_16 = arith.constant 0 : index
    %17 = vector.load %arg6[%c0_15, %c0_16] : memref<512x128xf32, #tpu.memory_space<vmem>>, vector<256x128xf32>
    tpu.vector_store %arg6[%c0_15, %c0_16], %16 {strides = array<i32>} : memref<512x128xf32, #tpu.memory_space<vmem>>, vector<256x128xf32>,
    %cst_17 = arith.constant dense<0.000000e+00> : vector<256x128xf32>
    %18 = tpu.matmul %8, %9, %cst_17 {dimension_numbers = #tpu.dot_dimension_numbers<[1], [0], [0], [1], [0, 0, 1, 1], [], []>} : vector<256x128xf32>, vector<128x128xf32>, vector<256x128xf32> -> vector<256x128xf32>
    %cst_18 = arith.constant dense<0.000000e+00> : vector<256x128xf32>
    %19 = tpu.matmul %1, %10, %cst_18 {dimension_numbers = #tpu.dot_dimension_numbers<[1], [0], [0], [1], [0, 0, 1, 1], [], []>} : vector<256x128xf32>, vector<128x128xf32>, vector<256x128xf32> -> vector<256x128xf32>
    %20 = arith.addf %18, %19 : vector<256x128xf32>
    %21 = vector.broadcast %11 : vector<1x128xf32> to vector<256x128xf32>
    %22 = arith.addf %20, %21 : vector<256x128xf32>
    %c256 = arith.constant 256 : index
    %c0_19 = arith.constant 0 : index
    %23 = vector.load %arg6[%c256, %c0_19] : memref<512x128xf32, #tpu.memory_space<vmem>>, vector<256x128xf32>
    tpu.vector_store %arg6[%c256, %c0_19], %22 {strides = array<i32>} : memref<512x128xf32, #tpu.memory_space<vmem>>, vector<256x128xf32>,
    return
  }
}

module attributes {stable_mosaic.version = 11 : i64} {
  func.func @sage_layer_kernel(%arg0: i32, %arg1: i32, %arg2: memref<256x1xf32, #tpu.memory_space<vmem>>, %arg3: memref<256x256xbf16, #tpu.memory_space<vmem>>, %arg4: memref<256x128xf32, #tpu.memory_space<vmem>>, %arg5: memref<256x128xf32, #tpu.memory_space<vmem>>, %arg6: memref<128x128xbf16, #tpu.memory_space<vmem>>, %arg7: memref<128x128xbf16, #tpu.memory_space<vmem>>, %arg8: memref<1x128xf32, #tpu.memory_space<vmem>>, %arg9: memref<1x128xf32, #tpu.memory_space<vmem>>, %arg10: memref<256x128xf32, #tpu.memory_space<vmem>>, %arg11: memref<256x128xf32, #tpu.memory_space<vmem>>) attributes {dimension_semantics = [#tpu.dimension_semantics<parallel>, #tpu.dimension_semantics<arbitrary>], iteration_bounds = array<i64: 2, 2>, scalar_prefetch = 0 : i64, scratch_operands = 1 : i64, tpu.core_type = #tpu.core_type<tc>, window_params = [{transform_indices = @transform_0, window_bounds = array<i64: 256, 1>}, {transform_indices = @transform_1, window_bounds = array<i64: 256, 256>}, {transform_indices = @transform_2, window_bounds = array<i64: 256, 128>}, {transform_indices = @transform_3, window_bounds = array<i64: 256, 128>}, {pipeline_mode = #tpu.pipeline_mode<synchronous>, transform_indices = @transform_4, window_bounds = array<i64: 128, 128>}, {pipeline_mode = #tpu.pipeline_mode<synchronous>, transform_indices = @transform_5, window_bounds = array<i64: 128, 128>}, {pipeline_mode = #tpu.pipeline_mode<synchronous>, transform_indices = @transform_6, window_bounds = array<i64: 1, 128>}, {pipeline_mode = #tpu.pipeline_mode<synchronous>, transform_indices = @transform_7, window_bounds = array<i64: 1, 128>}, {transform_indices = @transform_8, window_bounds = array<i64: 256, 128>}]} {
    %c0_i32 = arith.constant 0 : i32
    %0 = arith.cmpi eq, %arg1, %c0_i32 : i32
    %1 = arith.extui %0 : i1 to i32
    %c0_i32_0 = arith.constant 0 : i32
    %2 = arith.cmpi ne, %1, %c0_i32_0 : i32
    scf.if %2 {
      %cst_9 = arith.constant 0.000000e+00 : f32
      %13 = vector.broadcast %cst_9 : f32 to vector<256x128xf32>
      %c0_10 = arith.constant 0 : index
      %c0_11 = arith.constant 0 : index
      %14 = vector.load %arg11[%c0_10, %c0_11] : memref<256x128xf32, #tpu.memory_space<vmem>>, vector<256x128xf32>
      tpu.vector_store %arg11[%c0_10, %c0_11], %13 {strides = array<i32>} : memref<256x128xf32, #tpu.memory_space<vmem>>, vector<256x128xf32>,
    } else {
    }
    %c0 = arith.constant 0 : index
    %c0_1 = arith.constant 0 : index
    %3 = vector.load %arg4[%c0, %c0_1] : memref<256x128xf32, #tpu.memory_space<vmem>>, vector<256x128xf32>
    %4 = arith.truncf %3 : vector<256x128xf32> to vector<256x128xbf16>
    %c0_2 = arith.constant 0 : index
    %c0_3 = arith.constant 0 : index
    %5 = vector.load %arg11[%c0_2, %c0_3] : memref<256x128xf32, #tpu.memory_space<vmem>>, vector<256x128xf32>
    %c0_4 = arith.constant 0 : index
    %c0_5 = arith.constant 0 : index
    %6 = vector.load %arg3[%c0_4, %c0_5] : memref<256x256xbf16, #tpu.memory_space<vmem>>, vector<256x256xbf16>
    %cst = arith.constant dense<0.000000e+00> : vector<256x128xf32>
    %7 = tpu.matmul %6, %4, %cst {dimension_numbers = #tpu.dot_dimension_numbers<[1], [0], [0], [1], [0, 0, 1, 1], [], []>} : vector<256x256xbf16>, vector<256x128xbf16>, vector<256x128xf32> -> vector<256x128xf32>
    %8 = arith.addf %5, %7 : vector<256x128xf32>
    %c0_6 = arith.constant 0 : index
    %c0_7 = arith.constant 0 : index
    %9 = vector.load %arg11[%c0_6, %c0_7] : memref<256x128xf32, #tpu.memory_space<vmem>>, vector<256x128xf32>
    tpu.vector_store %arg11[%c0_6, %c0_7], %8 {strides = array<i32>} : memref<256x128xf32, #tpu.memory_space<vmem>>, vector<256x128xf32>,
    %c1_i32 = arith.constant 1 : i32
    %10 = arith.cmpi eq, %arg1, %c1_i32 : i32
    %11 = arith.extui %10 : i1 to i32
    %c0_i32_8 = arith.constant 0 : i32
    %12 = arith.cmpi ne, %11, %c0_i32_8 : i32
    scf.if %12 {
      %c0_9 = arith.constant 0 : index
      %c0_10 = arith.constant 0 : index
      %13 = vector.load %arg11[%c0_9, %c0_10] : memref<256x128xf32, #tpu.memory_space<vmem>>, vector<256x128xf32>
      %c0_11 = arith.constant 0 : index
      %c0_12 = arith.constant 0 : index
      %14 = vector.load %arg2[%c0_11, %c0_12] : memref<256x1xf32, #tpu.memory_space<vmem>>, vector<256x1xf32>
      %15 = vector.broadcast %14 : vector<256x1xf32> to vector<256x128xf32>
      %16 = arith.mulf %13, %15 : vector<256x128xf32>
      %17 = arith.truncf %16 : vector<256x128xf32> to vector<256x128xbf16>
      %c0_13 = arith.constant 0 : index
      %c0_14 = arith.constant 0 : index
      %18 = vector.load %arg5[%c0_13, %c0_14] : memref<256x128xf32, #tpu.memory_space<vmem>>, vector<256x128xf32>
      %19 = arith.truncf %18 : vector<256x128xf32> to vector<256x128xbf16>
      %c0_15 = arith.constant 0 : index
      %c0_16 = arith.constant 0 : index
      %20 = vector.load %arg6[%c0_15, %c0_16] : memref<128x128xbf16, #tpu.memory_space<vmem>>, vector<128x128xbf16>
      %cst_17 = arith.constant dense<0.000000e+00> : vector<256x128xf32>
      %21 = tpu.matmul %17, %20, %cst_17 {dimension_numbers = #tpu.dot_dimension_numbers<[1], [0], [0], [1], [0, 0, 1, 1], [], []>} : vector<256x128xbf16>, vector<128x128xbf16>, vector<256x128xf32> -> vector<256x128xf32>
      %c0_18 = arith.constant 0 : index
      %c0_19 = arith.constant 0 : index
      %22 = vector.load %arg7[%c0_18, %c0_19] : memref<128x128xbf16, #tpu.memory_space<vmem>>, vector<128x128xbf16>
      %cst_20 = arith.constant dense<0.000000e+00> : vector<256x128xf32>
      %23 = tpu.matmul %19, %22, %cst_20 {dimension_numbers = #tpu.dot_dimension_numbers<[1], [0], [0], [1], [0, 0, 1, 1], [], []>} : vector<256x128xbf16>, vector<128x128xbf16>, vector<256x128xf32> -> vector<256x128xf32>
      %24 = arith.addf %21, %23 : vector<256x128xf32>
      %c0_21 = arith.constant 0 : index
      %c0_22 = arith.constant 0 : index
      %25 = vector.load %arg8[%c0_21, %c0_22] : memref<1x128xf32, #tpu.memory_space<vmem>>, vector<1x128xf32>
      %26 = vector.broadcast %25 : vector<1x128xf32> to vector<256x128xf32>
      %27 = arith.mulf %24, %26 : vector<256x128xf32>
      %c0_23 = arith.constant 0 : index
      %c0_24 = arith.constant 0 : index
      %28 = vector.load %arg9[%c0_23, %c0_24] : memref<1x128xf32, #tpu.memory_space<vmem>>, vector<1x128xf32>
      %29 = vector.broadcast %28 : vector<1x128xf32> to vector<256x128xf32>
      %30 = arith.addf %27, %29 : vector<256x128xf32>
      %cst_25 = arith.constant 0.000000e+00 : f32
      %31 = vector.broadcast %cst_25 : f32 to vector<256x128xf32>
      %32 = arith.maximumf %30, %31 : vector<256x128xf32>
      %c0_26 = arith.constant 0 : index
      %c0_27 = arith.constant 0 : index
      %33 = vector.load %arg10[%c0_26, %c0_27] : memref<256x128xf32, #tpu.memory_space<vmem>>, vector<256x128xf32>
      tpu.vector_store %arg10[%c0_26, %c0_27], %32 {strides = array<i32>} : memref<256x128xf32, #tpu.memory_space<vmem>>, vector<256x128xf32>,
    } else {
    }
    return
  }
  func.func @transform_0(%arg0: i32, %arg1: i32) -> (i32, i32) {
    %c0_i32 = arith.constant 0 : i32
    %c0_i32_0 = arith.constant 0 : i32
    return %arg0, %c0_i32 : i32, i32
  }
  func.func @transform_1(%arg0: i32, %arg1: i32) -> (i32, i32) {
    %c0_i32 = arith.constant 0 : i32
    return %arg0, %arg1 : i32, i32
  }
  func.func @transform_2(%arg0: i32, %arg1: i32) -> (i32, i32) {
    %c0_i32 = arith.constant 0 : i32
    %c0_i32_0 = arith.constant 0 : i32
    return %arg1, %c0_i32 : i32, i32
  }
  func.func @transform_3(%arg0: i32, %arg1: i32) -> (i32, i32) {
    %c0_i32 = arith.constant 0 : i32
    %c0_i32_0 = arith.constant 0 : i32
    return %arg0, %c0_i32 : i32, i32
  }
  func.func @transform_4(%arg0: i32, %arg1: i32) -> (i32, i32) {
    %c0_i32 = arith.constant 0 : i32
    %c0_i32_0 = arith.constant 0 : i32
    %c0_i32_1 = arith.constant 0 : i32
    return %c0_i32, %c0_i32_0 : i32, i32
  }
  func.func @transform_5(%arg0: i32, %arg1: i32) -> (i32, i32) {
    %c0_i32 = arith.constant 0 : i32
    %c0_i32_0 = arith.constant 0 : i32
    %c0_i32_1 = arith.constant 0 : i32
    return %c0_i32, %c0_i32_0 : i32, i32
  }
  func.func @transform_6(%arg0: i32, %arg1: i32) -> (i32, i32) {
    %c0_i32 = arith.constant 0 : i32
    %c0_i32_0 = arith.constant 0 : i32
    %c0_i32_1 = arith.constant 0 : i32
    return %c0_i32, %c0_i32_0 : i32, i32
  }
  func.func @transform_7(%arg0: i32, %arg1: i32) -> (i32, i32) {
    %c0_i32 = arith.constant 0 : i32
    %c0_i32_0 = arith.constant 0 : i32
    %c0_i32_1 = arith.constant 0 : i32
    return %c0_i32, %c0_i32_0 : i32, i32
  }
  func.func @transform_8(%arg0: i32, %arg1: i32) -> (i32, i32) {
    %c0_i32 = arith.constant 0 : i32
    %c0_i32_0 = arith.constant 0 : i32
    return %arg0, %c0_i32 : i32, i32
  }
}

</mosaic_0001>

<bundles_post_ra>
// kernel: sage_forward.5
= control target key start
LH: loop header
LB: loop body
LE: loop exit
PB: predicated region body
PF: predicated region fallthrough
CT: control target
= control target key end

     0   :  { %vm147_vm4 = vcmask 64512   ;;  %s2053_s2 = inlined_call_operand.vmem [shape: f32[256,128], index: 2, kind: input, shape index: {}]   ;;  %s2054_s0 = inlined_call_operand.vmem [shape: f32[8,256], index: 0, kind: input, shape index: {}]   ;;  %s2055_s1 = inlined_call_operand.vmem [shape: f32[256,8], index: 1, kind: input, shape index: {}]   ;;  %s2056_s3 = inlined_call_operand.vmem [shape: f32[128,128], index: 3, kind: input, shape index: {}]   ;;  %s2057_s4 = inlined_call_operand.vmem [shape: f32[128,128], index: 4, kind: input, shape index: {}]   ;;  %s2058_s5 = inlined_call_operand.vmem [shape: f32[1,128], index: 5, kind: input, shape index: {}]   ;;  %s2059_s6 = inlined_call_operand.vmem [shape: f32[512,128], index: 6, kind: output, shape index: {}]  }
   0x1   :  { %v1072_v0 = vld [vmem:[%s2053_s2 + $0x78] sm:$0xff]  ;;  %v1082_v2 = vld [vmem:[%s2053_s2 + $0x70] sm:$0xff]  ;;  %v1094_v4 = vld [vmem:[%s2053_s2 + $0x68] sm:$0xff] }
   0x2   :  { %v1077_v1 = vld [vmem:[%s2053_s2 + $0xf8] sm:$0xff]  ;;  %57 = vmatpush.msra.mxu0 %v1072_v0  ;;  %v1089_v3 = vld [vmem:[%s2053_s2 + $0xf0] sm:$0xff]  ;;  %v1099_v5 = vld [vmem:[%s2053_s2 + $0xe8] sm:$0xff] }
   0x3   :  { %77 = vmatpush.msra.mxu1 %v1077_v1  ;;  %v1106_v6 = vld [vmem:[%s2053_s2 + $0x60] sm:$0xff]  ;;  %v24_v9 = vld [vmem:[%s2054_s0 + $0x8] sm:$0xff]  ;;  %v1124_v10 = vld [vmem:[%s2053_s2 + $0x58] sm:$0xff] }
   0x4   :  { %58 = vmatpush.msra.mxu0 %v1082_v2  ;;  %v1111_v7 = vld [vmem:[%s2053_s2 + $0xe0] sm:$0xff]  ;;  %v1129_v11 = vld [vmem:[%s2053_s2 + $0xd8] sm:$0xff]  ;;  %v1136_v13 = vld [vmem:[%s2053_s2 + $0x50] sm:$0xff] }
   0x5   :  { %78 = vmatpush.msra.mxu1 %v1089_v3  ;;  %v23_v8 = vld [vmem:[%s2054_s0] sm:$0xff]  ;;  %v1141_v14 = vld [vmem:[%s2053_s2 + $0xd0] sm:$0xff]  ;;  %v1148_v15 = vld [vmem:[%s2053_s2 + $0x48] sm:$0xff] }
   0x6   :  { %59 = vmatpush.msra.mxu0 %v1094_v4  ;;  %v97_v12 = vadd.f32 %v24_v9, %v23_v8  ;;  %v1153_v16 = vld [vmem:[%s2053_s2 + $0xc8] sm:$0xff]  ;;  %v1160_v17 = vld [vmem:[%s2053_s2 + $0x40] sm:$0xff]  ;;  %v1172_v19 = vld [vmem:[%s2053_s2 + $0x38] sm:$0xff] }
   0x7   :  { %79 = vmatpush.msra.mxu1 %v1099_v5  ;;  %v1165_v18 = vld [vmem:[%s2053_s2 + $0xc0] sm:$0xff]  ;;  %v1177_v20 = vld [vmem:[%s2053_s2 + $0xb8] sm:$0xff]  ;;  %v1184_v21 = vld [vmem:[%s2053_s2 + $0x30] sm:$0xff] }
   0x8   :  { %60 = vmatpush.msra.mxu0 %v1106_v6  ;;  %98 = vadd.xlane.f32.xlu0 %v97_v12  ;;  %v1189_v22 = vld [vmem:[%s2053_s2 + $0xb0] sm:$0xff]  ;;  %v1196_v23 = vld [vmem:[%s2053_s2 + $0x28] sm:$0xff]  ;;  %v1208_v25 = vld [vmem:[%s2053_s2 + $0x20] sm:$0xff] }
   0x9   :  { %80 = vmatpush.msra.mxu1 %v1111_v7  ;;  %v1201_v24 = vld [vmem:[%s2053_s2 + $0xa8] sm:$0xff]  ;;  %v1213_v26 = vld [vmem:[%s2053_s2 + $0xa0] sm:$0xff]  ;;  %v1220_v27 = vld [vmem:[%s2053_s2 + $0x18] sm:$0xff] }
   0xa   :  { %61 = vmatpush.msra.mxu0 %v1124_v10  ;;  %v1225_v28 = vld [vmem:[%s2053_s2 + $0x98] sm:$0xff]  ;;  %v1232_v29 = vld [vmem:[%s2053_s2 + $0x10] sm:$0xff]  ;;  %v1244_v31 = vld [vmem:[%s2053_s2 + $0x8] sm:$0xff] }
   0xb   :  { %81 = vmatpush.msra.mxu1 %v1129_v11  ;;  %v1237_v30 = vld [vmem:[%s2053_s2 + $0x90] sm:$0xff]  ;;  %v1249_v32 = vld [vmem:[%s2053_s2 + $0x88] sm:$0xff]  ;;  %v1256_v33 = vld [vmem:[%s2053_s2] sm:$0xff] }
   0xc   :  { %62 = vmatpush.msra.mxu0 %v1136_v13  ;;  %v1261_v34 = vld [vmem:[%s2053_s2 + $0x80] sm:$0xff]  ;;  %v1276_v52 = vld [vmem:[%s2056_s3 + $0x78] sm:$0xff]  ;;  %v1285_v54 = vld [vmem:[%s2056_s3 + $0x70] sm:$0xff] }
   0xd   :  { %82 = vmatpush.msra.mxu1 %v1141_v14  ;;  %v115_v50 = vld [vmem:[%s2055_s1] sm:$0xff]  ;;  %v388_v55 = vld [vmem:[%s2057_s4 + $0x78] sm:$0xff]  ;;  %v1299_v57 = vld [vmem:[%s2056_s3 + $0x68] sm:$0xff] }
   0xe   :  { %63 = vmatpush.msra.mxu0 %v1148_v15  ;;  %v135_v51 = vld [vmem:[%s2055_s1 + $0xa0] sm:$0xff]  ;;  %v116_v59 = vld [vmem:[%s2055_s1 + $0x8] sm:$0xff]  ;;  %v1320_v61 = vld [vmem:[%s2056_s3 + $0x58] sm:$0xff] }
   0xf   :  { %83 = vmatpush.msra.mxu1 %v1153_v16  ;;  %v119_v53 = vld [vmem:[%s2055_s1 + $0x20] sm:$0xff]  ;;  %v136_v60 = vld [vmem:[%s2055_s1 + $0xa8] sm:$0xff]  ;;  %v1331_v63 = vld [vmem:[%s2056_s3 + $0x50] sm:$0xff] }
  0x10   :  { %64 = vmatpush.msra.mxu0 %v1160_v17  ;;  %v123_v56 = vld [vmem:[%s2055_s1 + $0x40] sm:$0xff]  ;;  %v120_v62 = vld [vmem:[%s2055_s1 + $0x28] sm:$0xff] }
  0x11   :  { %84 = vmatpush.msra.mxu1 %v1165_v18  ;;  %v1307_v58 = vld [vmem:[%s2056_s3 + $0x60] sm:$0xff]  ;;  %v1345_v12 = vld [vmem:[%s2056_s3 + $0x48] sm:$0xff] }
  0x12   :  { %65 = vmatpush.msra.mxu0 %v1172_v19 }
  0x13   :  { %85 = vmatpush.msra.mxu1 %v1177_v20 }
  0x14   :  { %66 = vmatpush.msra.mxu0 %v1184_v21 }
  0x15   :  { %86 = vmatpush.msra.mxu1 %v1189_v22 }
  0x16   :  { %67 = vmatpush.msra.mxu0 %v1196_v23 }
  0x17   :  { %87 = vmatpush.msra.mxu1 %v1201_v24 }
  0x18   :  { %68 = vmatpush.msra.mxu0 %v1208_v25 }
  0x19   :  { %88 = vmatpush.msra.mxu1 %v1213_v26 }
  0x1a   :  { %69 = vmatpush.msra.mxu0 %v1220_v27 }
  0x1b   :  { %89 = vmatpush.msra.mxu1 %v1225_v28 }
  0x1c   :  { %70 = vmatpush.msra.mxu0 %v1232_v29 }
  0x1d   :  { %90 = vmatpush.msra.mxu1 %v1237_v30 }
  0x1e   :  { %71 = vmatpush.msra.mxu0 %v1244_v31 }
  0x1f   :  { %91 = vmatpush.msra.mxu1 %v1249_v32 }
  0x20   :  { %72 = vmatpush.msra.mxu0 %v1256_v33 }
  0x21   :  { %92 = vmatpush.msra.mxu1 %v1261_v34  ;;  %73 = vmatmul.f32.vlgmr.msra.gmra.mxu0 %v23_v8  ;;  %v387_v8 = vld [vmem:[%s2057_s4 + $0x70] sm:$0xff] }
  0x22   :  { %93 = vmatmul.f32.vlgmr.msra.gmra.mxu1 %v24_v9  ;;  %v124_v9 = vld [vmem:[%s2055_s1 + $0x48] sm:$0xff] }
  0x7b   :  { %v99_v35 = vpop.xlane.xlu0 %98 }
  0x7c   :  { %1029 = vrcp.f32 %v99_v35  ;;  %vm105_vm0 = vweird.f32 %v99_v35  ;;  %v111_v40 = vand.u32 2147483648, %v99_v35  ;;  %v109_v42 = vand.u32 2147483647, %v99_v35 }
  0x7e   :  { %v112_v43 = vor.u32 1.1754944e-38, %v111_v40  ;;  %vm110_vm3 = vcmp.eq.f32.partialorder %v109_v42, 8.507059e+37  ;;  %v1377_v40 = vld [vmem:[%s2056_s3 + $0x30] sm:$0xff] }
  0x7f   :  { %v125_v42 = vld [vmem:[%s2055_s1 + $0x50] sm:$0xff] }
  0x82   :  { %v1030_v36 = vpop.eup %1029 }
  0x83   :  { %v101_v37 = vmul.f32 %v1030_v36, %v99_v35  ;;  %vm106_vm1 = vweird.f32 %v1030_v36  ;;  %v1353_v35 = vld [vmem:[%s2056_s3 + $0x40] sm:$0xff] }
  0x84   :  { %vm107_vm2 = vmor %vm105_vm0, %vm106_vm1 }
  0x85   :  { %v102_v38 = vsub.f32 1.0, %v101_v37  ;;  %v137_v37 = vld [vmem:[%s2055_s1 + $0xb0] sm:$0xff] }
  0x87   :  { %v103_v39 = vmul.f32 %v1030_v36, %v102_v38  ;;  %v1366_v38 = vld [vmem:[%s2056_s3 + $0x38] sm:$0xff] }
  0x89   :  { %v104_v41 = vadd.f32 %v1030_v36, %v103_v39  ;;  %v121_v39 = vld [vmem:[%s2055_s1 + $0x30] sm:$0xff] }
  0x8b   :  { %v108_v44 = vsel %vm107_vm2, %v1030_v36, %v104_v41  ;;  %v117_v36 = vld [vmem:[%s2055_s1 + $0x10] sm:$0xff]  ;;  %v386_v41 = vld [vmem:[%s2057_s4 + $0x68] sm:$0xff] }
  0x8c   :  { %v113_v48 = vsel %vm110_vm3, %v112_v43, %v108_v44  ;;  %v385_v43 = vld [vmem:[%s2057_s4 + $0x60] sm:$0xff]  ;;  %v1394_v44 = vld [vmem:[%s2056_s3 + $0x28] sm:$0xff] }
  0x9e   :  { %v74_v45 = vpop.f32.mrf.mxu0 }
  0x9f   :  { %v94_v46 = vpop.f32.mrf.mxu1 }
  0xa0   :  { %v95_v47 = vadd.f32 %v94_v46, %v74_v45  ;;  %v1402_v45 = vld [vmem:[%s2056_s3 + $0x20] sm:$0xff]  ;;  %v118_v46 = vld [vmem:[%s2055_s1 + $0x18] sm:$0xff] }
  0xa2   :  { %v114_v49 = vmul.f32 %v113_v48, %v95_v47  ;;  %v138_v47 = vld [vmem:[%s2055_s1 + $0xb8] sm:$0xff] }
  0xa3   :  { %v1415_v48 = vld [vmem:[%s2056_s3 + $0x18] sm:$0xff] }
  0xa4   :  { %259 = vmatpush.msrb.mxu0 %v114_v49  ;;  %1009 = vmatpush.msrb.mxu1 %v114_v49 }
  0xa5   :  { %1010 = vmatpush.msra.mxu2 %v114_v49  ;;  %1011 = vmatpush.msra.mxu3 %v114_v49  ;;  %v122_v49 = vld [vmem:[%s2055_s1 + $0x38] sm:$0xff] }
  0xa6   :  { %977 = vmatmul.msk.f32.vlgmr.msrb.gmra.mxu0 %vm147_vm4, %v115_v50  ;;  %997 = vmatmul.msk.f32.vlgmr.msra.gmra.mxu3 %vm147_vm4, %v135_v51  ;;  %v1426_v50 = vld [vmem:[%s2056_s3 + $0x10] sm:$0xff]  ;;  %v384_v51 = vld [vmem:[%s2057_s4 + $0x58] sm:$0xff] }
  0xa7   :  { %503 = vmatpush.msra.mxu0 %v1276_v52  ;;  %981 = vmatmul.msk.f32.vlgmr.msrb.gmra.mxu1 %vm147_vm4, %v119_v53  ;;  %v126_v53 = vld [vmem:[%s2055_s1 + $0x58] sm:$0xff] }
  0xa8   :  { %390 = vmatpush.msrb.mxu3 %v388_v55  ;;  %985 = vmatmul.msk.f32.vlgmr.msra.gmra.mxu2 %vm147_vm4, %v123_v56  ;;  %v1448_v56 = vld [vmem:[%s2056_s3] sm:$0xff] }
  0xa9   :  { %504 = vmatpush.msra.mxu0 %v1285_v54  ;;  %1012 = vmatpush.msrb.mxu2 %v1276_v52 }
  0xaa   :  { %683 = vmatpush.msra.mxu1 %v388_v55  ;;  %391 = vmatpush.msrb.mxu3 %v387_v8  ;;  %v1440_v55 = vld [vmem:[%s2056_s3 + $0x8] sm:$0xff] }
  0xab   :  { %505 = vmatpush.msra.mxu0 %v1299_v57  ;;  %1013 = vmatpush.msrb.mxu2 %v1285_v54 }
  0xac   :  { %684 = vmatpush.msra.mxu1 %v387_v8  ;;  %392 = vmatpush.msrb.mxu3 %v386_v41  ;;  %v140_v8 = vld [vmem:[%s2055_s1 + $0xc8] sm:$0xff] }
  0xad   :  { %506 = vmatpush.msra.mxu0 %v1307_v58  ;;  %1014 = vmatpush.msrb.mxu2 %v1299_v57 }
  0xae   :  { %978 = vmatmul.msk.f32.gmra.mxu0 %vm147_vm4, %v116_v59  ;;  %998 = vmatmul.msk.f32.gmra.mxu3 %vm147_vm4, %v136_v60  ;;  %v139_v59 = vld [vmem:[%s2055_s1 + $0xc0] sm:$0xff]  ;;  %v383_v60 = vld [vmem:[%s2057_s4 + $0x50] sm:$0xff] }
  0xaf   :  { %507 = vmatpush.msra.mxu0 %v1320_v61  ;;  %982 = vmatmul.msk.f32.gmra.mxu1 %vm147_vm4, %v120_v62  ;;  %v127_v62 = vld [vmem:[%s2055_s1 + $0x60] sm:$0xff] }
  0xb0   :  { %986 = vmatmul.msk.f32.gmra.mxu2 %vm147_vm4, %v124_v9  ;;  %393 = vmatpush.msrb.mxu3 %v385_v43  ;;  %v381_v9 = vld [vmem:[%s2057_s4 + $0x40] sm:$0xff] }
  0xb1   :  { %508 = vmatpush.msra.mxu0 %v1331_v63  ;;  %1015 = vmatpush.msrb.mxu2 %v1307_v58 }
  0xb2   :  { %685 = vmatpush.msra.mxu1 %v386_v41  ;;  %394 = vmatpush.msrb.mxu3 %v384_v51  ;;  %v376_v41 = vld [vmem:[%s2057_s4 + $0x18] sm:$0xff] }
  0xb3   :  { %509 = vmatpush.msra.mxu0 %v1345_v12  ;;  %1016 = vmatpush.msrb.mxu2 %v1320_v61 }
  0xb4   :  { %686 = vmatpush.msra.mxu1 %v385_v43  ;;  %395 = vmatpush.msrb.mxu3 %v383_v60  ;;  %v145_v43 = vld [vmem:[%s2055_s1 + $0xf0] sm:$0xff] }
  0xb5   :  { %510 = vmatpush.msra.mxu0 %v1353_v35  ;;  %1017 = vmatpush.msrb.mxu2 %v1331_v63 }
  0xb6   :  { %979 = vmatmul.msk.f32.gmra.mxu0 %vm147_vm4, %v117_v36  ;;  %999 = vmatmul.msk.f32.gmra.mxu3 %vm147_vm4, %v137_v37  ;;  %v129_v36 = vld [vmem:[%s2055_s1 + $0x70] sm:$0xff]  ;;  %v378_v37 = vld [vmem:[%s2057_s4 + $0x28] sm:$0xff] }
  0xb7   :  { %511 = vmatpush.msra.mxu0 %v1366_v38  ;;  %983 = vmatmul.msk.f32.gmra.mxu1 %vm147_vm4, %v121_v39  ;;  %v377_v39 = vld [vmem:[%s2057_s4 + $0x20] sm:$0xff] }
  0xb8   :  { %987 = vmatmul.msk.f32.gmra.mxu2 %vm147_vm4, %v125_v42  ;;  %687 = vmatpush.msra.mxu1 %v384_v51  ;;  %v132_v42 = vld [vmem:[%s2055_s1 + $0x88] sm:$0xff] }
  0xb9   :  { %512 = vmatpush.msra.mxu0 %v1377_v40  ;;  %1018 = vmatpush.msrb.mxu2 %v1345_v12 }
  0xba   :  { %688 = vmatpush.msra.mxu1 %v383_v60 }
  0xbb   :  { %513 = vmatpush.msra.mxu0 %v1394_v44  ;;  %1019 = vmatpush.msrb.mxu2 %v1353_v35 }
  0xbd   :  { %514 = vmatpush.msra.mxu0 %v1402_v45  ;;  %1020 = vmatpush.msrb.mxu2 %v1366_v38 }
  0xbe   :  { %980 = vmatmul.msk.f32.gmra.mxu0 %vm147_vm4, %v118_v46  ;;  %1000 = vmatmul.msk.f32.gmra.mxu3 %vm147_vm4, %v138_v47  ;;  %v146_v46 = vld [vmem:[%s2055_s1 + $0xf8] sm:$0xff]  ;;  %v374_v47 = vld [vmem:[%s2057_s4 + $0x8] sm:$0xff] }
  0xbf   :  { %515 = vmatpush.msra.mxu0 %v1415_v48  ;;  %984 = vmatmul.msk.f32.gmra.mxu1 %vm147_vm4, %v122_v49  ;;  %v134_v49 = vld [vmem:[%s2055_s1 + $0x98] sm:$0xff] }
  0xc0   :  { %988 = vmatmul.msk.f32.gmra.mxu2 %vm147_vm4, %v126_v53 }
  0xc1   :  { %516 = vmatpush.msra.mxu0 %v1426_v50  ;;  %1021 = vmatpush.msrb.mxu2 %v1377_v40 }
  0xc3   :  { %517 = vmatpush.msra.mxu0 %v1440_v55  ;;  %1022 = vmatpush.msrb.mxu2 %v1394_v44 }
  0xc5   :  { %518 = vmatpush.msra.mxu0 %v1448_v56  ;;  %1023 = vmatpush.msrb.mxu2 %v1402_v45 }
  0xc6   :  { %519 = vmatmul.f32.vlgmr.msra.gmra.mxu0 %v1256_v33  ;;  %1001 = vmatmul.msk.f32.gmra.mxu3 %vm147_vm4, %v139_v59 }
  0xc7   :  { %796 = vmatpush.msrb.mxu0 %v1276_v52  ;;  %1024 = vmatpush.msrb.mxu2 %v1415_v48  ;;  %v382_v52 = vld [vmem:[%s2057_s4 + $0x48] sm:$0xff] }
  0xc8   :  { %989 = vmatmul.msk.f32.gmra.mxu2 %vm147_vm4, %v127_v62  ;;  %396 = vmatpush.msrb.mxu3 %v382_v52 }
  0xc9   :  { %797 = vmatpush.msrb.mxu0 %v1285_v54  ;;  %1025 = vmatpush.msrb.mxu2 %v1426_v50  ;;  %v128_v54 = vld [vmem:[%s2055_s1 + $0x68] sm:$0xff] }
  0xca   :  { %689 = vmatpush.msra.mxu1 %v382_v52  ;;  %397 = vmatpush.msrb.mxu3 %v381_v9 }
  0xcb   :  { %798 = vmatpush.msrb.mxu0 %v1299_v57  ;;  %1026 = vmatpush.msrb.mxu2 %v1440_v55  ;;  %v141_v57 = vld [vmem:[%s2055_s1 + $0xd0] sm:$0xff] }
  0xcc   :  { %690 = vmatpush.msra.mxu1 %v381_v9 }
  0xcd   :  { %799 = vmatpush.msrb.mxu0 %v1307_v58  ;;  %1027 = vmatpush.msrb.mxu2 %v1448_v56  ;;  %v380_v58 = vld [vmem:[%s2057_s4 + $0x38] sm:$0xff] }
  0xce   :  { %522 = vmatmul.f32.gmra.mxu0 %v1244_v31  ;;  %1002 = vmatmul.msk.f32.gmra.mxu3 %vm147_vm4, %v140_v8 }
  0xcf   :  { %800 = vmatpush.msrb.mxu0 %v1320_v61  ;;  %398 = vmatpush.msrb.mxu3 %v380_v58  ;;  %v142_v61 = vld [vmem:[%s2055_s1 + $0xd8] sm:$0xff] }
  0xd0   :  { %990 = vmatmul.msk.f32.gmra.mxu2 %vm147_vm4, %v128_v54  ;;  %691 = vmatpush.msra.mxu1 %v380_v58 }
  0xd1   :  { %801 = vmatpush.msrb.mxu0 %v1331_v63  ;;  %v379_v63 = vld [vmem:[%s2057_s4 + $0x30] sm:$0xff] }
  0xd2   :  { %399 = vmatpush.msrb.mxu3 %v379_v63  ;;  %692 = vmatpush.msra.mxu1 %v379_v63 }
  0xd3   :  { %802 = vmatpush.msrb.mxu0 %v1345_v12  ;;  %v130_v12 = vld [vmem:[%s2055_s1 + $0x78] sm:$0xff] }
  0xd4   :  { %400 = vmatpush.msrb.mxu3 %v378_v37  ;;  %693 = vmatpush.msra.mxu1 %v378_v37 }
  0xd5   :  { %803 = vmatpush.msrb.mxu0 %v1353_v35  ;;  %v143_v35 = vld [vmem:[%s2055_s1 + $0xe0] sm:$0xff] }
  0xd6   :  { %525 = vmatmul.f32.gmra.mxu0 %v1232_v29  ;;  %1003 = vmatmul.msk.f32.gmra.mxu3 %vm147_vm4, %v141_v57 }
  0xd7   :  { %804 = vmatpush.msrb.mxu0 %v1366_v38  ;;  %v131_v38 = vld [vmem:[%s2055_s1 + $0x80] sm:$0xff]  ;;  %401 = vmatpush.msrb.mxu3 %v377_v39 }
  0xd8   :  { %991 = vmatmul.msk.f32.gmra.mxu2 %vm147_vm4, %v129_v36  ;;  %694 = vmatpush.msra.mxu1 %v377_v39 }
  0xd9   :  { %805 = vmatpush.msrb.mxu0 %v1377_v40  ;;  %v144_v40 = vld [vmem:[%s2055_s1 + $0xe8] sm:$0xff]  ;;  %402 = vmatpush.msrb.mxu3 %v376_v41 }
  0xda   :  { %695 = vmatpush.msra.mxu1 %v376_v41 }
  0xdb   :  { %806 = vmatpush.msrb.mxu0 %v1394_v44  ;;  %v375_v44 = vld [vmem:[%s2057_s4 + $0x10] sm:$0xff] }
  0xdc   :  { %403 = vmatpush.msrb.mxu3 %v375_v44  ;;  %696 = vmatpush.msra.mxu1 %v375_v44 }
  0xdd   :  { %807 = vmatpush.msrb.mxu0 %v1402_v45  ;;  %v133_v45 = vld [vmem:[%s2055_s1 + $0x90] sm:$0xff] }
  0xde   :  { %528 = vmatmul.f32.gmra.mxu0 %v1220_v27  ;;  %1004 = vmatmul.msk.f32.gmra.mxu3 %vm147_vm4, %v142_v61 }
  0xdf   :  { %808 = vmatpush.msrb.mxu0 %v1415_v48  ;;  %404 = vmatpush.msrb.mxu3 %v374_v47  ;;  %v373_v48 = vld [vmem:[%s2057_s4] sm:$0xff] }
  0xe0   :  { %992 = vmatmul.msk.f32.gmra.mxu2 %vm147_vm4, %v130_v12  ;;  %697 = vmatpush.msra.mxu1 %v374_v47 }
  0xe1   :  { %809 = vmatpush.msrb.mxu0 %v1426_v50  ;;  %405 = vmatpush.msrb.mxu3 %v373_v48 }
  0xe2   :  { %698 = vmatpush.msra.mxu1 %v373_v48  ;;  %v1679_v48 = vld [vmem:[%s2058_s5] ss:$0 sm:$0xff] }
  0xe3   :  { %810 = vmatpush.msrb.mxu0 %v1440_v55  ;;  %699 = vmatmul.f32.vlgmr.msra.gmra.mxu1 %v1256_v33 }
  0xe5   :  { %811 = vmatpush.msrb.mxu0 %v1448_v56 }
  0xe6   :  { %531 = vmatmul.f32.gmra.mxu0 %v1208_v25  ;;  %1005 = vmatmul.msk.f32.gmra.mxu3 %vm147_vm4, %v143_v35 }
  0xe8   :  { %993 = vmatmul.msk.f32.gmra.mxu2 %vm147_vm4, %v131_v38 }
  0xeb   :  { %702 = vmatmul.f32.gmra.mxu1 %v1244_v31 }
  0xee   :  { %534 = vmatmul.f32.gmra.mxu0 %v1196_v23  ;;  %1006 = vmatmul.msk.f32.gmra.mxu3 %vm147_vm4, %v144_v40 }
  0xf0   :  { %994 = vmatmul.msk.f32.gmra.mxu2 %vm147_vm4, %v132_v42 }
  0xf3   :  { %705 = vmatmul.f32.gmra.mxu1 %v1232_v29 }
  0xf6   :  { %537 = vmatmul.f32.gmra.mxu0 %v1184_v21  ;;  %1007 = vmatmul.msk.f32.gmra.mxu3 %vm147_vm4, %v145_v43 }
  0xf8   :  { %995 = vmatmul.msk.f32.gmra.mxu2 %vm147_vm4, %v133_v45 }
  0xfb   :  { %708 = vmatmul.f32.gmra.mxu1 %v1220_v27 }
  0xfe   :  { %540 = vmatmul.f32.gmra.mxu0 %v1172_v19  ;;  %1008 = vmatmul.msk.f32.gmra.mxu3 %vm147_vm4, %v146_v46 }
 0x100   :  { %996 = vmatmul.msk.f32.gmra.mxu2 %vm147_vm4, %v134_v49 }
 0x103   :  { %711 = vmatmul.f32.gmra.mxu1 %v1208_v25 }
 0x106   :  { %543 = vmatmul.f32.gmra.mxu0 %v1160_v17 }
 0x10b   :  { %714 = vmatmul.f32.gmra.mxu1 %v1196_v23 }
 0x10e   :  { %546 = vmatmul.f32.gmra.mxu0 %v1148_v15 }
 0x113   :  { %717 = vmatmul.f32.gmra.mxu1 %v1184_v21 }
 0x116   :  { %549 = vmatmul.f32.gmra.mxu0 %v1136_v13 }
 0x11b   :  { %720 = vmatmul.f32.gmra.mxu1 %v1172_v19 }
 0x11e   :  { %552 = vmatmul.f32.gmra.mxu0 %v1124_v10 }
 0x123   :  { %v1587_v50 = vpop.f32.mrf.mxu0  ;;  %723 = vmatmul.f32.gmra.mxu1 %v1160_v17 }
 0x124   :  { %406 = vmatmul.f32.vlgmr.msrb.gmra.mxu3 %v1587_v50  ;;  %v273_v53 = vpop.f32.mrf.mxu1 }
 0x126   :  { %555 = vmatmul.f32.gmra.mxu0 %v1106_v6 }
 0x129   :  { %v1594_v29 = vpop.f32.mrf.mxu3 }
 0x12b   :  { %v264_v33 = vpop.f32.mrf.mxu0  ;;  %v285_v31 = vpop.f32.mrf.mxu2  ;;  %726 = vmatmul.f32.gmra.mxu1 %v1148_v15 }
 0x12c   :  { %409 = vmatmul.f32.gmra.mxu3 %v264_v33  ;;  %815 = vmatmul.f32.vlgmr.msrb.gmra.mxu2 %v264_v33  ;;  %v276_v21 = vpop.f32.mrf.mxu1 }
 0x12e   :  { %558 = vmatmul.f32.gmra.mxu0 %v1094_v4 }
 0x131   :  { %v1598_v25 = vpop.f32.mrf.mxu3 }
 0x133   :  { %v267_v27 = vpop.f32.mrf.mxu0  ;;  %v288_v23 = vpop.f32.mrf.mxu2  ;;  %729 = vmatmul.f32.gmra.mxu1 %v1136_v13 }
 0x134   :  { %412 = vmatmul.f32.gmra.mxu3 %v267_v27  ;;  %818 = vmatmul.f32.gmra.mxu2 %v267_v27  ;;  %v279_v62 = vpop.f32.mrf.mxu1 }
 0x136   :  { %561 = vmatmul.f32.gmra.mxu0 %v1082_v2 }
 0x139   :  { %v1604_v56 = vpop.f32.mrf.mxu3 }
 0x13b   :  { %v270_v51 = vpop.f32.mrf.mxu0  ;;  %v291_v60 = vpop.f32.mrf.mxu2  ;;  %732 = vmatmul.f32.gmra.mxu1 %v1124_v10 }
 0x13c   :  { %415 = vmatmul.f32.gmra.mxu3 %v270_v51  ;;  %821 = vmatmul.f32.gmra.mxu2 %v270_v51  ;;  %v282_v54 = vpop.f32.mrf.mxu1 }
 0x13e   :  { %564 = vmatmul.f32.gmra.mxu0 %v1072_v0 }
 0x141   :  { %v1610_v19 = vpop.f32.mrf.mxu3 }
 0x143   :  { %v1602_v55 = vpop.f32.mrf.mxu0  ;;  %v294_v52 = vpop.f32.mrf.mxu2  ;;  %735 = vmatmul.f32.gmra.mxu1 %v1106_v6 }
 0x144   :  { %418 = vmatmul.f32.gmra.mxu3 %v273_v53  ;;  %824 = vmatmul.f32.gmra.mxu2 %v273_v53 }
 0x146   :  { %567 = vmatmul.f32.gmra.mxu0 %v1261_v34 }
 0x149   :  { %v1618_v17 = vpop.f32.mrf.mxu3 }
 0x14b   :  { %v1608_v59 = vpop.f32.mrf.mxu0  ;;  %v297_v15 = vpop.f32.mrf.mxu2  ;;  %738 = vmatmul.f32.gmra.mxu1 %v1094_v4 }
 0x14c   :  { %421 = vmatmul.f32.gmra.mxu3 %v276_v21  ;;  %827 = vmatmul.f32.gmra.mxu2 %v276_v21 }
 0x14e   :  { %570 = vmatmul.f32.gmra.mxu0 %v1249_v32 }
 0x151   :  { %v1624_v57 = vpop.f32.mrf.mxu3 }
 0x153   :  { %v1614_v8 = vpop.f32.mrf.mxu0  ;;  %v300_v13 = vpop.f32.mrf.mxu2  ;;  %741 = vmatmul.f32.gmra.mxu1 %v1082_v2 }
 0x154   :  { %424 = vmatmul.f32.gmra.mxu3 %v279_v62  ;;  %830 = vmatmul.f32.gmra.mxu2 %v279_v62 }
 0x156   :  { %573 = vmatmul.f32.gmra.mxu0 %v1237_v30 }
 0x159   :  { %v1632_v61 = vpop.f32.mrf.mxu3 }
 0x15b   :  { %v1620_v9 = vpop.f32.mrf.mxu0  ;;  %v303_v63 = vpop.f32.mrf.mxu2  ;;  %744 = vmatmul.f32.gmra.mxu1 %v1072_v0 }
 0x15c   :  { %427 = vmatmul.f32.gmra.mxu3 %v282_v54  ;;  %833 = vmatmul.f32.gmra.mxu2 %v282_v54 }
 0x15e   :  { %576 = vmatmul.f32.gmra.mxu0 %v1225_v28 }
 0x160   :  { %v1652_v38 = vpop.f32.mrf.mxu1 }
 0x161   :  { %v1638_v12 = vpop.f32.mrf.mxu3 }
 0x163   :  { %v1626_v58 = vpop.f32.mrf.mxu0  ;;  %v306_v35 = vpop.f32.mrf.mxu2  ;;  %747 = vmatmul.f32.gmra.mxu1 %v1261_v34 }
 0x164   :  { %430 = vmatmul.f32.gmra.mxu3 %v285_v31  ;;  %836 = vmatmul.f32.gmra.mxu2 %v285_v31 }
 0x166   :  { %579 = vmatmul.f32.gmra.mxu0 %v1213_v26 }
 0x168   :  { %v703_v0 = vpop.f32.mrf.mxu1 }
 0x169   :  { %v1646_v4 = vpop.f32.mrf.mxu3 }
 0x16b   :  { %v1630_v36 = vpop.f32.mrf.mxu0  ;;  %v309_v2 = vpop.f32.mrf.mxu2  ;;  %750 = vmatmul.f32.gmra.mxu1 %v1249_v32 }
 0x16c   :  { %433 = vmatmul.f32.gmra.mxu3 %v288_v23  ;;  %839 = vmatmul.f32.gmra.mxu2 %v288_v23 }
 0x16e   :  { %582 = vmatmul.f32.gmra.mxu0 %v1201_v24 }
 0x170   :  { %v706_v43 = vpop.f32.mrf.mxu1 }
 0x171   :  { %v1654_v39 = vpop.f32.mrf.mxu3 }
 0x173   :  { %v1636_v10 = vpop.f32.mrf.mxu0  ;;  %v312_v41 = vpop.f32.mrf.mxu2  ;;  %753 = vmatmul.f32.gmra.mxu1 %v1237_v30 }
 0x174   :  { %436 = vmatmul.f32.gmra.mxu3 %v291_v60  ;;  %842 = vmatmul.f32.gmra.mxu2 %v291_v60 }
 0x176   :  { %585 = vmatmul.f32.gmra.mxu0 %v1189_v22 }
 0x178   :  { %v709_v46 = vpop.f32.mrf.mxu1 }
 0x179   :  { %v1662_v34 = vpop.f32.mrf.mxu3 }
 0x17b   :  { %v1642_v6 = vpop.f32.mrf.mxu0  ;;  %v315_v45 = vpop.f32.mrf.mxu2  ;;  %756 = vmatmul.f32.gmra.mxu1 %v1225_v28 }
 0x17c   :  { %439 = vmatmul.f32.gmra.mxu3 %v294_v52  ;;  %845 = vmatmul.f32.gmra.mxu2 %v294_v52 }
 0x17e   :  { %588 = vmatmul.f32.gmra.mxu0 %v1177_v20 }
 0x180   :  { %v712_v33 = vpop.f32.mrf.mxu1 }
 0x181   :  { %v1668_v32 = vpop.f32.mrf.mxu3 }
 0x183   :  { %v1648_v37 = vpop.f32.mrf.mxu0  ;;  %v318_v30 = vpop.f32.mrf.mxu2  ;;  %759 = vmatmul.f32.gmra.mxu1 %v1213_v26 }
 0x184   :  { %442 = vmatmul.f32.gmra.mxu3 %v297_v15  ;;  %848 = vmatmul.f32.gmra.mxu2 %v297_v15 }
 0x186   :  { %591 = vmatmul.f32.gmra.mxu0 %v1165_v18 }
 0x18b   :  { %v1656_v40 = vpop.f32.mrf.mxu0  ;;  %762 = vmatmul.f32.gmra.mxu1 %v1201_v24 }
 0x18c   :  { %445 = vmatmul.f32.gmra.mxu3 %v300_v13  ;;  %851 = vmatmul.f32.gmra.mxu2 %v300_v13 }
 0x18e   :  { %594 = vmatmul.f32.gmra.mxu0 %v1153_v16 }
 0x193   :  { %v1660_v42 = vpop.f32.mrf.mxu0  ;;  %765 = vmatmul.f32.gmra.mxu1 %v1189_v22 }
 0x194   :  { %448 = vmatmul.f32.gmra.mxu3 %v303_v63  ;;  %854 = vmatmul.f32.gmra.mxu2 %v303_v63 }
 0x196   :  { %597 = vmatmul.f32.gmra.mxu0 %v1141_v14 }
 0x19b   :  { %v1666_v44 = vpop.f32.mrf.mxu0  ;;  %768 = vmatmul.f32.gmra.mxu1 %v1177_v20 }
 0x19c   :  { %451 = vmatmul.f32.gmra.mxu3 %v306_v35  ;;  %857 = vmatmul.f32.gmra.mxu2 %v306_v35 }
 0x19e   :  { %600 = vmatmul.f32.gmra.mxu0 %v1129_v11 }
 0x1a3   :  { %v1672_v47 = vpop.f32.mrf.mxu0  ;;  %771 = vmatmul.f32.gmra.mxu1 %v1165_v18 }
 0x1a4   :  { %454 = vmatmul.f32.gmra.mxu3 %v309_v2  ;;  %860 = vmatmul.f32.gmra.mxu2 %v309_v2 }
 0x1a6   :  { %603 = vmatmul.f32.gmra.mxu0 %v1111_v7 }
 0x1a7   :  { %v407_v49 = vpop.f32.mrf.mxu3 }
 0x1a8   :  { %v521_v28 = vadd.f32 %v1602_v55, %v407_v49  ;;  %v715_v55 = vpop.f32.mrf.mxu1 }
 0x1aa   :  { %v619_v27 = vadd.f32 %v1679_v48, %v521_v28 }
 0x1ab   :  { %v1683_v31 = vpop.f32.mrf.mxu0  ;;  %774 = vmatmul.f32.gmra.mxu1 %v1153_v16 }
 0x1ac   :  { %651 = vst [vmem:[%s2059_s6] sm:$0xff] %v619_v27  ;;  %457 = vmatmul.f32.gmra.mxu3 %v312_v41  ;;  %863 = vmatmul.f32.gmra.mxu2 %v312_v41 }
 0x1ae   :  { %606 = vmatmul.f32.gmra.mxu0 %v1099_v5 }
 0x1af   :  { %v410_v26 = vpop.f32.mrf.mxu3  ;;  %v816_v51 = vpop.f32.mrf.mxu2 }
 0x1b0   :  { %v524_v53 = vadd.f32 %v1608_v59, %v410_v26  ;;  %v817_v23 = vadd.f32 %v816_v51, %v703_v0  ;;  %v718_v54 = vpop.f32.mrf.mxu1 }
 0x1b2   :  { %v620_v21 = vadd.f32 %v1679_v48, %v524_v53  ;;  %v910_v60 = vadd.f32 %v1679_v48, %v817_v23 }
 0x1b3   :  { %v1693_v62 = vpop.f32.mrf.mxu0  ;;  %777 = vmatmul.f32.gmra.mxu1 %v1141_v14 }
 0x1b4   :  { %652 = vst [vmem:[%s2059_s6 + $0x8] sm:$0xff] %v620_v21  ;;  %460 = vmatmul.f32.gmra.mxu3 %v315_v45  ;;  %866 = vmatmul.f32.gmra.mxu2 %v315_v45 }
 0x1b5   :  { %942 = vst [vmem:[%s2059_s6 + $0x108] sm:$0xff] %v910_v60 }
 0x1b6   :  { %609 = vmatmul.f32.gmra.mxu0 %v1089_v3 }
 0x1b7   :  { %v413_v5 = vpop.f32.mrf.mxu3  ;;  %v819_v24 = vpop.f32.mrf.mxu2 }
 0x1b8   :  { %v527_v59 = vadd.f32 %v1614_v8, %v413_v5  ;;  %v820_v52 = vadd.f32 %v819_v24, %v706_v43  ;;  %v721_v2 = vpop.f32.mrf.mxu1 }
 0x1ba   :  { %v621_v15 = vadd.f32 %v1679_v48, %v527_v59  ;;  %v911_v13 = vadd.f32 %v1679_v48, %v820_v52 }
 0x1bb   :  { %v1706_v63 = vpop.f32.mrf.mxu0  ;;  %780 = vmatmul.f32.gmra.mxu1 %v1129_v11 }
 0x1bc   :  { %653 = vst [vmem:[%s2059_s6 + $0x10] sm:$0xff] %v621_v15  ;;  %463 = vmatmul.f32.gmra.mxu3 %v318_v30  ;;  %869 = vmatmul.f32.gmra.mxu2 %v318_v30 }
 0x1bd   :  { %943 = vst [vmem:[%s2059_s6 + $0x110] sm:$0xff] %v911_v13 }
 0x1be   :  { %612 = vmatmul.f32.gmra.mxu0 %v1077_v1 }
 0x1bf   :  { %v416_v3 = vpop.f32.mrf.mxu3  ;;  %v822_v22 = vpop.f32.mrf.mxu2 }
 0x1c0   :  { %v530_v8 = vadd.f32 %v1620_v9, %v416_v3  ;;  %v823_v35 = vadd.f32 %v822_v22, %v709_v46  ;;  %v724_v46 = vpop.f32.mrf.mxu1 }
 0x1c2   :  { %v622_v0 = vadd.f32 %v1679_v48, %v530_v8  ;;  %v912_v41 = vadd.f32 %v1679_v48, %v823_v35 }
 0x1c3   :  { %v1719_v43 = vpop.f32.mrf.mxu0  ;;  %783 = vmatmul.f32.gmra.mxu1 %v1111_v7  ;;  %v1031_v7 = vld [vmem:[%s2053_s2 + $0xe8] sm:$0xff] }
 0x1c4   :  { %654 = vst [vmem:[%s2059_s6 + $0x18] sm:$0xff] %v622_v0  ;;  %466 = vmatmul.f32.gmra.mxu3 %v1594_v29  ;;  %872 = vmatmul.f32.gmra.mxu2 %v1594_v29 }
 0x1c5   :  { %944 = vst [vmem:[%s2059_s6 + $0x118] sm:$0xff] %v912_v41 }
 0x1c6   :  { %812 = vmatmul.f32.vlgmr.msrb.gmra.mxu0 %v1587_v50 }
 0x1c7   :  { %v419_v1 = vpop.f32.mrf.mxu3  ;;  %v825_v20 = vpop.f32.mrf.mxu2 }
 0x1c8   :  { %v533_v9 = vadd.f32 %v1626_v58, %v419_v1  ;;  %v826_v45 = vadd.f32 %v825_v20, %v712_v33  ;;  %v727_v33 = vpop.f32.mrf.mxu1 }
 0x1ca   :  { %v623_v30 = vadd.f32 %v1679_v48, %v533_v9  ;;  %v913_v49 = vadd.f32 %v1679_v48, %v826_v45 }
 0x1cb   :  { %v1734_v28 = vpop.f32.mrf.mxu0  ;;  %786 = vmatmul.f32.gmra.mxu1 %v1031_v7 }
 0x1cc   :  { %655 = vst [vmem:[%s2059_s6 + $0x20] sm:$0xff] %v623_v30  ;;  %469 = vmatmul.f32.gmra.mxu3 %v1598_v25  ;;  %875 = vmatmul.f32.gmra.mxu2 %v1598_v25 }
 0x1cd   :  { %945 = vst [vmem:[%s2059_s6 + $0x120] sm:$0xff] %v913_v49 }
 0x1cf   :  { %v422_v18 = vpop.f32.mrf.mxu3  ;;  %v828_v50 = vpop.f32.mrf.mxu2 }
 0x1d0   :  { %v536_v29 = vadd.f32 %v1630_v36, %v422_v18  ;;  %v829_v58 = vadd.f32 %v828_v50, %v715_v55  ;;  %v730_v23 = vpop.f32.mrf.mxu1 }
 0x1d2   :  { %v624_v27 = vadd.f32 %v1679_v48, %v536_v29  ;;  %v914_v26 = vadd.f32 %v1679_v48, %v829_v58 }
 0x1d3   :  { %v1748_v51 = vpop.f32.mrf.mxu0 }
 0x1d4   :  { %656 = vst [vmem:[%s2059_s6 + $0x28] sm:$0xff] %v624_v27  ;;  %472 = vmatmul.f32.gmra.mxu3 %v1604_v56  ;;  %878 = vmatmul.f32.gmra.mxu2 %v1604_v56 }
 0x1d5   :  { %946 = vst [vmem:[%s2059_s6 + $0x128] sm:$0xff] %v914_v26 }
 0x1d7   :  { %v425_v16 = vpop.f32.mrf.mxu3  ;;  %v831_v25 = vpop.f32.mrf.mxu2 }
 0x1d8   :  { %v539_v36 = vadd.f32 %v1636_v10, %v425_v16  ;;  %v832_v53 = vadd.f32 %v831_v25, %v718_v54  ;;  %v733_v24 = vpop.f32.mrf.mxu1 }
 0x1da   :  { %v625_v55 = vadd.f32 %v1679_v48, %v539_v36  ;;  %v915_v21 = vadd.f32 %v1679_v48, %v832_v53 }
 0x1db   :  { %v1762_v60 = vpop.f32.mrf.mxu0 }
 0x1dc   :  { %657 = vst [vmem:[%s2059_s6 + $0x30] sm:$0xff] %v625_v55  ;;  %475 = vmatmul.f32.gmra.mxu3 %v1610_v19  ;;  %881 = vmatmul.f32.gmra.mxu2 %v1610_v19 }
 0x1dd   :  { %947 = vst [vmem:[%s2059_s6 + $0x130] sm:$0xff] %v915_v21 }
 0x1df   :  { %v428_v14 = vpop.f32.mrf.mxu3  ;;  %v834_v56 = vpop.f32.mrf.mxu2 }
 0x1e0   :  { %v542_v10 = vadd.f32 %v1642_v6, %v428_v14  ;;  %v835_v5 = vadd.f32 %v834_v56, %v721_v2  ;;  %v736_v13 = vpop.f32.mrf.mxu1 }
 0x1e2   :  { %v626_v59 = vadd.f32 %v1679_v48, %v542_v10  ;;  %v916_v52 = vadd.f32 %v1679_v48, %v835_v5 }
 0x1e3   :  { %v1776_v54 = vpop.f32.mrf.mxu0 }
 0x1e4   :  { %658 = vst [vmem:[%s2059_s6 + $0x38] sm:$0xff] %v626_v59  ;;  %478 = vmatmul.f32.gmra.mxu3 %v1618_v17  ;;  %884 = vmatmul.f32.gmra.mxu2 %v1618_v17 }
 0x1e5   :  { %948 = vst [vmem:[%s2059_s6 + $0x138] sm:$0xff] %v916_v52 }
 0x1e7   :  { %v431_v11 = vpop.f32.mrf.mxu3  ;;  %v837_v19 = vpop.f32.mrf.mxu2 }
 0x1e8   :  { %v545_v6 = vadd.f32 %v1648_v37, %v431_v11  ;;  %v838_v15 = vadd.f32 %v837_v19, %v724_v46  ;;  %v739_v0 = vpop.f32.mrf.mxu1 }
 0x1ea   :  { %v627_v3 = vadd.f32 %v1679_v48, %v545_v6  ;;  %v917_v22 = vadd.f32 %v1679_v48, %v838_v15 }
 0x1eb   :  { %v1790_v8 = vpop.f32.mrf.mxu0 }
 0x1ec   :  { %659 = vst [vmem:[%s2059_s6 + $0x40] sm:$0xff] %v627_v3  ;;  %481 = vmatmul.f32.gmra.mxu3 %v1624_v57  ;;  %887 = vmatmul.f32.gmra.mxu2 %v1624_v57 }
 0x1ed   :  { %949 = vst [vmem:[%s2059_s6 + $0x140] sm:$0xff] %v917_v22 }
 0x1ef   :  { %v434_v17 = vpop.f32.mrf.mxu3  ;;  %v840_v37 = vpop.f32.mrf.mxu2 }
 0x1f0   :  { %v548_v35 = vadd.f32 %v1656_v40, %v434_v17  ;;  %v841_v2 = vadd.f32 %v840_v37, %v727_v33  ;;  %v1032_v40 = vld [vmem:[%s2053_s2 + $0xf0] sm:$0xff]  ;;  %v742_v30 = vpop.f32.mrf.mxu1 }
 0x1f1   :  { %789 = vmatmul.f32.gmra.mxu1 %v1032_v40 }
 0x1f2   :  { %v628_v41 = vadd.f32 %v1679_v48, %v548_v35  ;;  %v918_v1 = vadd.f32 %v1679_v48, %v841_v2 }
 0x1f3   :  { %v1806_v57 = vpop.f32.mrf.mxu0 }
 0x1f4   :  { %660 = vst [vmem:[%s2059_s6 + $0x48] sm:$0xff] %v628_v41  ;;  %484 = vmatmul.f32.gmra.mxu3 %v1632_v61  ;;  %890 = vmatmul.f32.gmra.mxu2 %v1632_v61 }
 0x1f5   :  { %950 = vst [vmem:[%s2059_s6 + $0x148] sm:$0xff] %v918_v1 }
 0x1f7   :  { %v437_v20 = vpop.f32.mrf.mxu3  ;;  %v843_v9 = vpop.f32.mrf.mxu2 }
 0x1f8   :  { %v551_v45 = vadd.f32 %v1660_v42, %v437_v20  ;;  %v844_v46 = vadd.f32 %v843_v9, %v730_v23  ;;  %v1033_v42 = vld [vmem:[%s2053_s2 + $0xf8] sm:$0xff]  ;;  %v745_v27 = vpop.f32.mrf.mxu1 }
 0x1f9   :  { %792 = vmatmul.f32.gmra.mxu1 %v1033_v42 }
 0x1fa   :  { %v629_v49 = vadd.f32 %v1679_v48, %v551_v45  ;;  %v919_v18 = vadd.f32 %v1679_v48, %v844_v46 }
 0x1fb   :  { %v1822_v61 = vpop.f32.mrf.mxu0 }
 0x1fc   :  { %661 = vst [vmem:[%s2059_s6 + $0x50] sm:$0xff] %v629_v49  ;;  %487 = vmatmul.f32.gmra.mxu3 %v1638_v12  ;;  %893 = vmatmul.f32.gmra.mxu2 %v1638_v12 }
 0x1fd   :  { %951 = vst [vmem:[%s2059_s6 + $0x150] sm:$0xff] %v919_v18 }
 0x1ff   :  { %v440_v50 = vpop.f32.mrf.mxu3  ;;  %v846_v29 = vpop.f32.mrf.mxu2 }
 0x200   :  { %v554_v58 = vadd.f32 %v1666_v44, %v440_v50  ;;  %v847_v33 = vadd.f32 %v846_v29, %v733_v24  ;;  %v748_v23 = vpop.f32.mrf.mxu1 }
 0x202   :  { %v630_v26 = vadd.f32 %v1679_v48, %v554_v58  ;;  %v920_v16 = vadd.f32 %v1679_v48, %v847_v33 }
 0x203   :  { %v1838_v12 = vpop.f32.mrf.mxu0 }
 0x204   :  { %662 = vst [vmem:[%s2059_s6 + $0x58] sm:$0xff] %v630_v26  ;;  %490 = vmatmul.f32.gmra.mxu3 %v1646_v4  ;;  %896 = vmatmul.f32.gmra.mxu2 %v1646_v4 }
 0x205   :  { %952 = vst [vmem:[%s2059_s6 + $0x158] sm:$0xff] %v920_v16 }
 0x207   :  { %v443_v44 = vpop.f32.mrf.mxu3  ;;  %v849_v25 = vpop.f32.mrf.mxu2 }
 0x208   :  { %v557_v36 = vadd.f32 %v1672_v47, %v443_v44  ;;  %v850_v53 = vadd.f32 %v849_v25, %v736_v13  ;;  %v751_v5 = vpop.f32.mrf.mxu1 }
 0x20a   :  { %v631_v55 = vadd.f32 %v1679_v48, %v557_v36  ;;  %v921_v21 = vadd.f32 %v1679_v48, %v850_v53 }
 0x20b   :  { %v1851_v14 = vpop.f32.mrf.mxu0 }
 0x20c   :  { %663 = vst [vmem:[%s2059_s6 + $0x60] sm:$0xff] %v631_v55  ;;  %493 = vmatmul.f32.gmra.mxu3 %v1654_v39  ;;  %899 = vmatmul.f32.gmra.mxu2 %v1654_v39 }
 0x20d   :  { %953 = vst [vmem:[%s2059_s6 + $0x160] sm:$0xff] %v921_v21 }
 0x20f   :  { %v446_v4 = vpop.f32.mrf.mxu3  ;;  %v852_v47 = vpop.f32.mrf.mxu2 }
 0x210   :  { %v560_v56 = vadd.f32 %v1683_v31, %v446_v4  ;;  %v853_v10 = vadd.f32 %v852_v47, %v739_v0  ;;  %v754_v13 = vpop.f32.mrf.mxu1 }
 0x212   :  { %v632_v24 = vadd.f32 %v1679_v48, %v560_v56  ;;  %v922_v59 = vadd.f32 %v1679_v48, %v853_v10 }
 0x213   :  { %v1864_v52 = vpop.f32.mrf.mxu0 }
 0x214   :  { %664 = vst [vmem:[%s2059_s6 + $0x68] sm:$0xff] %v632_v24  ;;  %496 = vmatmul.f32.gmra.mxu3 %v1662_v34  ;;  %902 = vmatmul.f32.gmra.mxu2 %v1662_v34 }
 0x215   :  { %954 = vst [vmem:[%s2059_s6 + $0x168] sm:$0xff] %v922_v59 }
 0x217   :  { %v449_v39 = vpop.f32.mrf.mxu3  ;;  %v855_v31 = vpop.f32.mrf.mxu2 }
 0x218   :  { %v563_v11 = vadd.f32 %v1693_v62, %v449_v39  ;;  %v856_v19 = vadd.f32 %v855_v31, %v742_v30 }
 0x21a   :  { %v633_v6 = vadd.f32 %v1679_v48, %v563_v11  ;;  %v923_v15 = vadd.f32 %v1679_v48, %v856_v19 }
 0x21b   :  { %v1877_v3 = vpop.f32.mrf.mxu0 }
 0x21c   :  { %665 = vst [vmem:[%s2059_s6 + $0x70] sm:$0xff] %v633_v6  ;;  %499 = vmatmul.f32.gmra.mxu3 %v1668_v32  ;;  %905 = vmatmul.f32.gmra.mxu2 %v1668_v32  ;;  %v757_v32 = vpop.f32.mrf.mxu1 }
 0x21d   :  { %955 = vst [vmem:[%s2059_s6 + $0x170] sm:$0xff] %v923_v15 }
 0x21f   :  { %v452_v34 = vpop.f32.mrf.mxu3  ;;  %v858_v62 = vpop.f32.mrf.mxu2 }
 0x220   :  { %v566_v22 = vadd.f32 %v1706_v63, %v452_v34  ;;  %v859_v7 = vadd.f32 %v858_v62, %v745_v27 }
 0x222   :  { %v634_v17 = vadd.f32 %v1679_v48, %v566_v22  ;;  %v924_v37 = vadd.f32 %v1679_v48, %v859_v7 }
 0x223   :  { %v1890_v35 = vpop.f32.mrf.mxu0 }
 0x224   :  { %666 = vst [vmem:[%s2059_s6 + $0x78] sm:$0xff] %v634_v17  ;;  %v760_v9 = vpop.f32.mrf.mxu1 }
 0x225   :  { %956 = vst [vmem:[%s2059_s6 + $0x178] sm:$0xff] %v924_v37 }
 0x227   :  { %v455_v2 = vpop.f32.mrf.mxu3  ;;  %v861_v0 = vpop.f32.mrf.mxu2 }
 0x228   :  { %v569_v63 = vadd.f32 %v1719_v43, %v455_v2  ;;  %v862_v41 = vadd.f32 %v861_v0, %v748_v23 }
 0x22a   :  { %v635_v1 = vadd.f32 %v1679_v48, %v569_v63  ;;  %v925_v40 = vadd.f32 %v1679_v48, %v862_v41 }
 0x22b   :  { %v1901_v20 = vpop.f32.mrf.mxu0 }
 0x22c   :  { %667 = vst [vmem:[%s2059_s6 + $0x80] sm:$0xff] %v635_v1  ;;  %v763_v33 = vpop.f32.mrf.mxu1 }
 0x22d   :  { %957 = vst [vmem:[%s2059_s6 + $0x180] sm:$0xff] %v925_v40 }
 0x22f   :  { %v458_v45 = vpop.f32.mrf.mxu3  ;;  %v864_v46 = vpop.f32.mrf.mxu2 }
 0x230   :  { %v572_v43 = vadd.f32 %v1734_v28, %v458_v45  ;;  %v865_v30 = vadd.f32 %v864_v46, %v751_v5 }
 0x232   :  { %v636_v49 = vadd.f32 %v1679_v48, %v572_v43  ;;  %v926_v18 = vadd.f32 %v1679_v48, %v865_v30 }
 0x233   :  { %v1912_v42 = vpop.f32.mrf.mxu0 }
 0x234   :  { %668 = vst [vmem:[%s2059_s6 + $0x88] sm:$0xff] %v636_v49  ;;  %v766_v55 = vpop.f32.mrf.mxu1 }
 0x235   :  { %958 = vst [vmem:[%s2059_s6 + $0x188] sm:$0xff] %v926_v18 }
 0x237   :  { %v461_v50 = vpop.f32.mrf.mxu3  ;;  %v867_v29 = vpop.f32.mrf.mxu2 }
 0x238   :  { %v575_v58 = vadd.f32 %v1748_v51, %v461_v50  ;;  %v868_v28 = vadd.f32 %v867_v29, %v754_v13 }
 0x23a   :  { %v637_v27 = vadd.f32 %v1679_v48, %v575_v58  ;;  %v927_v26 = vadd.f32 %v1679_v48, %v868_v28 }
 0x23b   :  { %v1923_v16 = vpop.f32.mrf.mxu0 }
 0x23c   :  { %669 = vst [vmem:[%s2059_s6 + $0x90] sm:$0xff] %v637_v27 }
 0x23d   :  { %959 = vst [vmem:[%s2059_s6 + $0x190] sm:$0xff] %v927_v26 }
 0x23f   :  { %v464_v44 = vpop.f32.mrf.mxu3  ;;  %v870_v25 = vpop.f32.mrf.mxu2 }
 0x240   :  { %v578_v51 = vadd.f32 %v1762_v60, %v464_v44  ;;  %v871_v36 = vadd.f32 %v870_v25, %v757_v32 }
 0x242   :  { %v638_v53 = vadd.f32 %v1679_v48, %v578_v51  ;;  %v928_v23 = vadd.f32 %v1679_v48, %v871_v36 }
 0x243   :  { %v813_v21 = vpop.f32.mrf.mxu0 }
 0x244   :  { %670 = vst [vmem:[%s2059_s6 + $0x98] sm:$0xff] %v638_v53  ;;  %v814_v4 = vadd.f32 %v813_v21, %v1652_v38  ;;  %v769_v38 = vpop.f32.mrf.mxu1 }
 0x245   :  { %960 = vst [vmem:[%s2059_s6 + $0x198] sm:$0xff] %v928_v23 }
 0x246   :  { %v909_v47 = vadd.f32 %v1679_v48, %v814_v4 }
 0x247   :  { %v467_v60 = vpop.f32.mrf.mxu3  ;;  %v873_v56 = vpop.f32.mrf.mxu2 }
 0x248   :  { %941 = vst [vmem:[%s2059_s6 + $0x100] sm:$0xff] %v909_v47  ;;  %v581_v10 = vadd.f32 %v1776_v54, %v467_v60  ;;  %v874_v5 = vadd.f32 %v873_v56, %v760_v9 }
 0x24a   :  { %v639_v24 = vadd.f32 %v1679_v48, %v581_v10  ;;  %v929_v59 = vadd.f32 %v1679_v48, %v874_v5 }
 0x24c   :  { %671 = vst [vmem:[%s2059_s6 + $0xa0] sm:$0xff] %v639_v24  ;;  %v772_v15 = vpop.f32.mrf.mxu1 }
 0x24d   :  { %961 = vst [vmem:[%s2059_s6 + $0x1a0] sm:$0xff] %v929_v59 }
 0x24f   :  { %v470_v39 = vpop.f32.mrf.mxu3  ;;  %v876_v31 = vpop.f32.mrf.mxu2 }
 0x250   :  { %v584_v11 = vadd.f32 %v1790_v8, %v470_v39  ;;  %v877_v19 = vadd.f32 %v876_v31, %v763_v33 }
 0x252   :  { %v640_v54 = vadd.f32 %v1679_v48, %v584_v11  ;;  %v930_v6 = vadd.f32 %v1679_v48, %v877_v19 }
 0x254   :  { %672 = vst [vmem:[%s2059_s6 + $0xa8] sm:$0xff] %v640_v54  ;;  %v775_v0 = vpop.f32.mrf.mxu1 }
 0x255   :  { %962 = vst [vmem:[%s2059_s6 + $0x1a8] sm:$0xff] %v930_v6 }
 0x257   :  { %v473_v13 = vpop.f32.mrf.mxu3  ;;  %v879_v34 = vpop.f32.mrf.mxu2 }
 0x258   :  { %v587_v62 = vadd.f32 %v1806_v57, %v473_v13  ;;  %v880_v22 = vadd.f32 %v879_v34, %v766_v55 }
 0x25a   :  { %v641_v8 = vadd.f32 %v1679_v48, %v587_v62  ;;  %v931_v7 = vadd.f32 %v1679_v48, %v880_v22 }
 0x25c   :  { %673 = vst [vmem:[%s2059_s6 + $0xb0] sm:$0xff] %v641_v8  ;;  %v778_v46 = vpop.f32.mrf.mxu1 }
 0x25d   :  { %963 = vst [vmem:[%s2059_s6 + $0x1b0] sm:$0xff] %v931_v7 }
 0x25f   :  { %v476_v17 = vpop.f32.mrf.mxu3  ;;  %v882_v37 = vpop.f32.mrf.mxu2 }
 0x260   :  { %v590_v32 = vadd.f32 %v1822_v61, %v476_v17  ;;  %v883_v2 = vadd.f32 %v882_v37, %v769_v38 }
 0x262   :  { %v642_v57 = vadd.f32 %v1679_v48, %v590_v32  ;;  %v932_v63 = vadd.f32 %v1679_v48, %v883_v2 }
 0x264   :  { %674 = vst [vmem:[%s2059_s6 + $0xb8] sm:$0xff] %v642_v57  ;;  %v781_v29 = vpop.f32.mrf.mxu1 }
 0x265   :  { %964 = vst [vmem:[%s2059_s6 + $0x1b8] sm:$0xff] %v932_v63 }
 0x267   :  { %v479_v41 = vpop.f32.mrf.mxu3  ;;  %v885_v1 = vpop.f32.mrf.mxu2 }
 0x268   :  { %v593_v40 = vadd.f32 %v1838_v12, %v479_v41  ;;  %v886_v9 = vadd.f32 %v885_v1, %v772_v15 }
 0x26a   :  { %v643_v61 = vadd.f32 %v1679_v48, %v593_v40  ;;  %v933_v45 = vadd.f32 %v1679_v48, %v886_v9 }
 0x26c   :  { %675 = vst [vmem:[%s2059_s6 + $0xc0] sm:$0xff] %v643_v61  ;;  %v784_v44 = vpop.f32.mrf.mxu1 }
 0x26d   :  { %965 = vst [vmem:[%s2059_s6 + $0x1c0] sm:$0xff] %v933_v45 }
 0x26f   :  { %v482_v43 = vpop.f32.mrf.mxu3  ;;  %v888_v30 = vpop.f32.mrf.mxu2 }
 0x270   :  { %v596_v49 = vadd.f32 %v1851_v14, %v482_v43  ;;  %v889_v18 = vadd.f32 %v888_v30, %v775_v0 }
 0x272   :  { %v644_v12 = vadd.f32 %v1679_v48, %v596_v49  ;;  %v934_v50 = vadd.f32 %v1679_v48, %v889_v18 }
 0x274   :  { %676 = vst [vmem:[%s2059_s6 + $0xc8] sm:$0xff] %v644_v12  ;;  %v787_v60 = vpop.f32.mrf.mxu1 }
 0x275   :  { %966 = vst [vmem:[%s2059_s6 + $0x1c8] sm:$0xff] %v934_v50 }
 0x277   :  { %v485_v58 = vpop.f32.mrf.mxu3  ;;  %v891_v28 = vpop.f32.mrf.mxu2 }
 0x278   :  { %v599_v33 = vadd.f32 %v1864_v52, %v485_v58  ;;  %v892_v27 = vadd.f32 %v891_v28, %v778_v46 }
 0x27a   :  { %v645_v14 = vadd.f32 %v1679_v48, %v599_v33  ;;  %v935_v26 = vadd.f32 %v1679_v48, %v892_v27 }
 0x27c   :  { %677 = vst [vmem:[%s2059_s6 + $0xd0] sm:$0xff] %v645_v14  ;;  %v790_v39 = vpop.f32.mrf.mxu1 }
 0x27d   :  { %967 = vst [vmem:[%s2059_s6 + $0x1d0] sm:$0xff] %v935_v26 }
 0x27f   :  { %v488_v25 = vpop.f32.mrf.mxu3  ;;  %v894_v51 = vpop.f32.mrf.mxu2 }
 0x280   :  { %v602_v36 = vadd.f32 %v1877_v3, %v488_v25  ;;  %v895_v53 = vadd.f32 %v894_v51, %v781_v29 }
 0x282   :  { %v646_v52 = vadd.f32 %v1679_v48, %v602_v36  ;;  %v936_v23 = vadd.f32 %v1679_v48, %v895_v53 }
 0x284   :  { %678 = vst [vmem:[%s2059_s6 + $0xd8] sm:$0xff] %v646_v52  ;;  %v793_v15 = vpop.f32.mrf.mxu1 }
 0x285   :  { %968 = vst [vmem:[%s2059_s6 + $0x1d8] sm:$0xff] %v936_v23 }
 0x287   :  { %v491_v55 = vpop.f32.mrf.mxu3  ;;  %v897_v21 = vpop.f32.mrf.mxu2 }
 0x288   :  { %v605_v4 = vadd.f32 %v1890_v35, %v491_v55  ;;  %v898_v47 = vadd.f32 %v897_v21, %v784_v44 }
 0x28a   :  { %v647_v3 = vadd.f32 %v1679_v48, %v605_v4  ;;  %v937_v56 = vadd.f32 %v1679_v48, %v898_v47 }
 0x28c   :  { %679 = vst [vmem:[%s2059_s6 + $0xe0] sm:$0xff] %v647_v3 }
 0x28d   :  { %969 = vst [vmem:[%s2059_s6 + $0x1e0] sm:$0xff] %v937_v56 }
 0x28f   :  { %v494_v10 = vpop.f32.mrf.mxu3  ;;  %v900_v5 = vpop.f32.mrf.mxu2 }
 0x290   :  { %v608_v24 = vadd.f32 %v1901_v20, %v494_v10  ;;  %v901_v59 = vadd.f32 %v900_v5, %v787_v60 }
 0x292   :  { %v648_v35 = vadd.f32 %v1679_v48, %v608_v24  ;;  %v938_v38 = vadd.f32 %v1679_v48, %v901_v59 }
 0x294   :  { %680 = vst [vmem:[%s2059_s6 + $0xe8] sm:$0xff] %v648_v35 }
 0x295   :  { %970 = vst [vmem:[%s2059_s6 + $0x1e8] sm:$0xff] %v938_v38 }
 0x297   :  { %v497_v31 = vpop.f32.mrf.mxu3  ;;  %v903_v11 = vpop.f32.mrf.mxu2 }
 0x298   :  { %v611_v19 = vadd.f32 %v1912_v42, %v497_v31  ;;  %v904_v54 = vadd.f32 %v903_v11, %v790_v39 }
 0x29a   :  { %v649_v20 = vadd.f32 %v1679_v48, %v611_v19  ;;  %v939_v6 = vadd.f32 %v1679_v48, %v904_v54 }
 0x29c   :  { %681 = vst [vmem:[%s2059_s6 + $0xf0] sm:$0xff] %v649_v20 }
 0x29d   :  { %971 = vst [vmem:[%s2059_s6 + $0x1f0] sm:$0xff] %v939_v6 }
 0x29f   :  { %v500_v13 = vpop.f32.mrf.mxu3  ;;  %v906_v34 = vpop.f32.mrf.mxu2 }
 0x2a0   :  { %v614_v62 = vadd.f32 %v1923_v16, %v500_v13  ;;  %v907_v22 = vadd.f32 %v906_v34, %v793_v15 }
 0x2a2   :  { %v650_v42 = vadd.f32 %v1679_v48, %v614_v62  ;;  %v940_v8 = vadd.f32 %v1679_v48, %v907_v22 }
 0x2a4   :  { %682 = vst [vmem:[%s2059_s6 + $0xf8] sm:$0xff] %v650_v42 }
 0x2a5   :  { %972 = vst [vmem:[%s2059_s6 + $0x1f8] sm:$0xff] %v940_v8 }

// kernel: sage_forward.3
= control target key start
LH: loop header
LB: loop body
LE: loop exit
PB: predicated region body
PF: predicated region fallthrough
CT: control target
= control target key end

     0   :  { %s2935_s0 = inlined_call_operand.vmem [shape: f32[512,1], index: 0, kind: input, shape index: {}]   ;;  %s2936_s1 = inlined_call_operand.vmem [shape: bf16[512,512], index: 1, kind: input, shape index: {}]   ;;  %s2937_s2 = inlined_call_operand.vmem [shape: f32[512,128], index: 2, kind: input, shape index: {}, may-alias: {2,3}]   ;;  %s2938_s3 = inlined_call_operand.vmem [shape: f32[512,128], index: 3, kind: input, shape index: {}, may-alias: {2,3}]   ;;  %s2939_s4 = inlined_call_operand.vmem [shape: bf16[128,128], index: 4, kind: input, shape index: {}]   ;;  %s2940_s5 = inlined_call_operand.vmem [shape: bf16[128,128], index: 5, kind: input, shape index: {}]   ;;  %s2941_s6 = inlined_call_operand.vmem [shape: f32[1,128], index: 6, kind: input, shape index: {}]   ;;  %s2942_s7 = inlined_call_operand.vmem [shape: f32[1,128], index: 7, kind: input, shape index: {}]   ;;  %s2943_s8 = inlined_call_operand.vmem [shape: f32[512,128], index: 8, kind: output, shape index: {}]  }
   0x1   :  { %2945 = sst [smem:[#allocation5_spill]] %s2936_s1 }
   0x2   :  { %s2443_s27 = smov 0   ;;  %s2445_s28 = smov 0  }
   0x3   :  { %s2447_s29 = smov 0   ;;  %s2449_s30 = smov 0  }
   0x4   :  { %s2451_s9 = smov 0   ;;  %s2453_s10 = smov 0  }
   0x5   :  { %s2455_s11 = smov 0  }
   0x6 LB: > { %s27_s12 = sadd.s32 1, %s2386_s9  ;;  %s30_s13 = sadd.s32 1, %s2390_s10  ;;  %s2394_s11 = sphi %s2455_s11, %s18_s11   ;;  %s2390_s10 = sphi %s2453_s10, %s2954_s10   ;;  %s2386_s9 = sphi %s2451_s9, %s2953_s9   ;;  %s2382_s30 = sphi %s2449_s30, %s2952_s30   ;;  %s2378_s29 = sphi %s2447_s29, %s2951_s29   ;;  %s2374_s28 = sphi %s2445_s28, %s2950_s28   ;;  %s2370_s27 = sphi %s2443_s27, %s2949_s27  }
   0x7   : > { %p28_p0 = scmp.ge.s32.totalorder %s27_s12, 2  ;;  %p72_p1 = scmp.ne.s32.totalorder %s2374_s28, %s2370_s27 }
   0x8   : > { %p73_p2 = scmp.eq.s32.totalorder %s2394_s11, 0  ;;  %s65_s17 = sadd.s32 1, %s2374_s28 }
   0x9   : > { %s2956_s12 = smov (%p28_p0, %s27_s12), 0  ;;  %s2958_s13 = smov (!%p28_p0, %s30_s13), %s2390_s10 }
   0xa   : > { %p74_p3 = por %p73_p2, %p72_p1  ;;  %p32_p4 = scmp.ge.s32.totalorder %s2958_s13, 2 }
   0xb   : > { %s61_s14 = ssub.s32 %s2386_s9, %s2956_s12  ;;  %p1984_p6 = scmp.ge.s32.totalorder %s2394_s11, 4 }
   0xc   : > { %s2960_s13 = smov (%p32_p4, %s2958_s13), 0 }
   0xd   : > { %2946 = sst [smem:[#allocation4_spill]] %s2960_s13  ;;  %s60_s15 = ssub.s32 %s2390_s10, %s2960_s13 }
   0xe   : > { %s62_s16 = sor.u32 %s61_s14, %s60_s15  ;;  %272 = sbr.rel (%p1984_p6) target bundleno = 61 (0x3d), region = 32 }
   0xf   : > { %p63_p5 = scmp.eq.s32.totalorder %s62_s16, 0 }
  0x11   : > { %s2494_s18 = scalar_select %p63_p5, %s2374_s28, %s65_s17  }
  0x13   : > { %284 = sbr.rel (!%p74_p3) target bundleno = 61 (0x3d), region = 40  ;;  %s286_s19 = sand.u32 (%p74_p3), 1, %s2374_s28  }
  0x14   : > { %s1987_s20 = sshll.u32 (%p74_p3), %s2386_s9, 1  ;;  %s1985_s21 = sshll.u32 (%p74_p3), %s286_s19, 8 }
  0x15   : > { %s2196_s22 = sshll.u32 (%p74_p3), %s2390_s10, 7  ;;  %s2947_s1 = sld [smem:[#allocation5_spill]] (%p74_p3) }
  0x16   : > { %s292_s23 = sadd.s32 (%p74_p3), %s2196_s22, %s1987_s20  ;;  %s2508_s15 = scalar_lea.vmem (%p74_p3), [#allocation3], %s1985_s21 }
  0x17   : > { %s1989_s24 = sshll.u32 (%p74_p3), %s292_s23, 2 }
  0x1b   : > { %s2503_s14 = scalar_lea.vmem %s2947_s1, %s1989_s24 }
  0x1c   : > { %v385_v0 = vld [vmem:[%s2503_s14] sm:$0xff]  ;;  %v387_v1 = vld [vmem:[%s2503_s14 + $0x10] sm:$0xff] }
  0x1d   : > { %v389_v2 = vld [vmem:[%s2503_s14 + $0x20] sm:$0xff]  ;;  %386 = vst [vmem:[%s2508_s15] sm:$0xff] %v385_v0  ;;  %v391_v3 = vld [vmem:[%s2503_s14 + $0x30] sm:$0xff] }
  0x1e   : > { %388 = vst [vmem:[%s2508_s15 + $0x8] sm:$0xff] %v387_v1  ;;  %v393_v4 = vld [vmem:[%s2503_s14 + $0x40] sm:$0xff]  ;;  %v395_v5 = vld [vmem:[%s2503_s14 + $0x50] sm:$0xff] }
  0x1f   : > { %390 = vst [vmem:[%s2508_s15 + $0x10] sm:$0xff] %v389_v2  ;;  %v397_v6 = vld [vmem:[%s2503_s14 + $0x60] sm:$0xff]  ;;  %v399_v7 = vld [vmem:[%s2503_s14 + $0x70] sm:$0xff] }
  0x20   : > { %392 = vst [vmem:[%s2508_s15 + $0x18] sm:$0xff] %v391_v3  ;;  %v401_v8 = vld [vmem:[%s2503_s14 + $0x80] sm:$0xff]  ;;  %v403_v9 = vld [vmem:[%s2503_s14 + $0x90] sm:$0xff] }
  0x21   : > { %394 = vst [vmem:[%s2508_s15 + $0x20] sm:$0xff] %v393_v4  ;;  %v405_v10 = vld [vmem:[%s2503_s14 + $0xa0] sm:$0xff]  ;;  %v407_v11 = vld [vmem:[%s2503_s14 + $0xb0] sm:$0xff] }
  0x22   : > { %396 = vst [vmem:[%s2508_s15 + $0x28] sm:$0xff] %v395_v5  ;;  %v409_v12 = vld [vmem:[%s2503_s14 + $0xc0] sm:$0xff]  ;;  %v411_v13 = vld [vmem:[%s2503_s14 + $0xd0] sm:$0xff] }
  0x23   : > { %398 = vst [vmem:[%s2508_s15 + $0x30] sm:$0xff] %v397_v6  ;;  %v413_v14 = vld [vmem:[%s2503_s14 + $0xe0] sm:$0xff]  ;;  %v415_v15 = vld [vmem:[%s2503_s14 + $0xf0] sm:$0xff] }
  0x24   : > { %400 = vst [vmem:[%s2508_s15 + $0x38] sm:$0xff] %v399_v7  ;;  %v417_v16 = vld [vmem:[%s2503_s14 + $0x100] sm:$0xff]  ;;  %v419_v17 = vld [vmem:[%s2503_s14 + $0x110] sm:$0xff] }
  0x25   : > { %402 = vst [vmem:[%s2508_s15 + $0x40] sm:$0xff] %v401_v8  ;;  %v421_v18 = vld [vmem:[%s2503_s14 + $0x120] sm:$0xff]  ;;  %v423_v19 = vld [vmem:[%s2503_s14 + $0x130] sm:$0xff] }
  0x26   : > { %404 = vst [vmem:[%s2508_s15 + $0x48] sm:$0xff] %v403_v9  ;;  %v425_v20 = vld [vmem:[%s2503_s14 + $0x140] sm:$0xff]  ;;  %v427_v21 = vld [vmem:[%s2503_s14 + $0x150] sm:$0xff] }
  0x27   : > { %406 = vst [vmem:[%s2508_s15 + $0x50] sm:$0xff] %v405_v10  ;;  %v429_v22 = vld [vmem:[%s2503_s14 + $0x160] sm:$0xff]  ;;  %v431_v23 = vld [vmem:[%s2503_s14 + $0x170] sm:$0xff] }
  0x28   : > { %408 = vst [vmem:[%s2508_s15 + $0x58] sm:$0xff] %v407_v11  ;;  %v433_v24 = vld [vmem:[%s2503_s14 + $0x180] sm:$0xff]  ;;  %v435_v25 = vld [vmem:[%s2503_s14 + $0x190] sm:$0xff] }
  0x29   : > { %410 = vst [vmem:[%s2508_s15 + $0x60] sm:$0xff] %v409_v12  ;;  %v437_v26 = vld [vmem:[%s2503_s14 + $0x1a0] sm:$0xff]  ;;  %v439_v27 = vld [vmem:[%s2503_s14 + $0x1b0] sm:$0xff] }
  0x2a   : > { %412 = vst [vmem:[%s2508_s15 + $0x68] sm:$0xff] %v411_v13  ;;  %v441_v28 = vld [vmem:[%s2503_s14 + $0x1c0] sm:$0xff]  ;;  %v443_v29 = vld [vmem:[%s2503_s14 + $0x1d0] sm:$0xff] }
  0x2b   : > { %414 = vst [vmem:[%s2508_s15 + $0x70] sm:$0xff] %v413_v14  ;;  %v445_v30 = vld [vmem:[%s2503_s14 + $0x1e0] sm:$0xff]  ;;  %v447_v31 = vld [vmem:[%s2503_s14 + $0x1f0] sm:$0xff] }
  0x2c   : > { %416 = vst [vmem:[%s2508_s15 + $0x78] sm:$0xff] %v415_v15 }
  0x2d   : > { %418 = vst [vmem:[%s2508_s15 + $0x80] sm:$0xff] %v417_v16 }
  0x2e   : > { %420 = vst [vmem:[%s2508_s15 + $0x88] sm:$0xff] %v419_v17 }
  0x2f   : > { %422 = vst [vmem:[%s2508_s15 + $0x90] sm:$0xff] %v421_v18 }
  0x30   : > { %424 = vst [vmem:[%s2508_s15 + $0x98] sm:$0xff] %v423_v19 }
  0x31   : > { %426 = vst [vmem:[%s2508_s15 + $0xa0] sm:$0xff] %v425_v20 }
  0x32   : > { %428 = vst [vmem:[%s2508_s15 + $0xa8] sm:$0xff] %v427_v21 }
  0x33   : > { %430 = vst [vmem:[%s2508_s15 + $0xb0] sm:$0xff] %v429_v22 }
  0x34   : > { %432 = vst [vmem:[%s2508_s15 + $0xb8] sm:$0xff] %v431_v23 }
  0x35   : > { %434 = vst [vmem:[%s2508_s15 + $0xc0] sm:$0xff] %v433_v24 }
  0x36   : > { %436 = vst [vmem:[%s2508_s15 + $0xc8] sm:$0xff] %v435_v25 }
  0x37   : > { %438 = vst [vmem:[%s2508_s15 + $0xd0] sm:$0xff] %v437_v26 }
  0x38   : > { %440 = vst [vmem:[%s2508_s15 + $0xd8] sm:$0xff] %v439_v27 }
  0x39   : > { %442 = vst [vmem:[%s2508_s15 + $0xe0] sm:$0xff] %v441_v28 }
  0x3a   : > { %444 = vst [vmem:[%s2508_s15 + $0xe8] sm:$0xff] %v443_v29 }
  0x3b   : > { %446 = vst [vmem:[%s2508_s15 + $0xf0] sm:$0xff] %v445_v30 }
  0x3c   : > { %448 = vst [vmem:[%s2508_s15 + $0xf8] sm:$0xff] %v447_v31 }
  0x3d PF: > { %p1990_p7 = scmp.ge.s32.totalorder %s2394_s11, 1  ;;  %p471_p8 = scmp.lt.s32.totalorder %s2394_s11, 5 }
  0x3f   : > { %p472_p9 = pnand %p1990_p7, %p471_p8 }
  0x40   : > { %s478_s16 = sand.u32 (!%p472_p9), 1, %s2370_s27   ;;  %s1992_s17 = sshll.u32 (!%p472_p9), %s2382_s30, 5 }
  0x41   : > { %475 = sbr.rel (%p472_p9) target bundleno = 795 (0x31b), region = 86  ;;  %s1991_s19 = sshll.u32 (!%p472_p9), %s478_s16, 8 }
  0x42   : > { %p527_p10 = scmp.lt.s32.totalorder (!%p472_p9), %s1992_s17, 63  ;;  %s1994_s20 = sshll.u32 (!%p472_p9), %s2378_s29, 5 }
  0x43   : > { %p535_p11 = scmp.lt.s32.totalorder (!%p472_p9), %s1994_s20, 63  ;;  %s2596_s22 = scalar_lea.vmem (!%p472_p9), [#allocation3], %s1991_s19 }
  0x44   : > { %p2000_p12 = scmp.ne.s32.totalorder (!%p472_p9), %s2378_s29, 0 }
  0x46   : > { %s2962_s17 = smov (!%p527_p10, %s1992_s17), 63  ;;  %s2964_s20 = smov (!%p535_p11, %s1994_s20), 63 }
  0x47   : > { %s1993_s21 = sshll.u32 %s2962_s17, 3  ;;  %s1995_s16 = sshll.u32 %s2964_s20, 3 }
  0x48   : > { %s2579_s24 = scalar_lea.vmem %s2935_s0, %s1993_s21  ;;  %s2584_s14 = scalar_lea.vmem %s2938_s3, %s1993_s21 }
  0x49   : > { %s2589_s30 = scalar_lea.vmem %s2943_s8, %s1993_s21  ;;  %s2594_s17 = scalar_lea.vmem %s2937_s2, %s1995_s16 }
  0x4a   : > { %555 = sbr.rel (%p2000_p12) target bundleno = 112 (0x70), region = 94 }
  0x4f   : > { %v2396_v32 = vmov 0.0  }
  0x50   : > { %556 = vst [vmem:[#allocation2 + $0xb0] sm:$0xff] %v2396_v32 }
  0x51   : > { %557 = vst [vmem:[#allocation2] sm:$0xff] %v2396_v32 }
  0x52   : > { %558 = vst [vmem:[#allocation2 + $0xd8] sm:$0xff] %v2396_v32 }
  0x53   : > { %559 = vst [vmem:[#allocation2 + $0x18] sm:$0xff] %v2396_v32 }
  0x54   : > { %560 = vst [vmem:[#allocation2 + $0x50] sm:$0xff] %v2396_v32 }
  0x55   : > { %561 = vst [vmem:[#allocation2 + $0x68] sm:$0xff] %v2396_v32 }
  0x56   : > { %562 = vst [vmem:[#allocation2 + $0x30] sm:$0xff] %v2396_v32 }
  0x57   : > { %563 = vst [vmem:[#allocation2 + $0x48] sm:$0xff] %v2396_v32 }
  0x58   : > { %564 = vst [vmem:[#allocation2 + $0x80] sm:$0xff] %v2396_v32 }
  0x59   : > { %565 = vst [vmem:[#allocation2 + $0x88] sm:$0xff] %v2396_v32 }
  0x5a   : > { %566 = vst [vmem:[#allocation2 + $0xe8] sm:$0xff] %v2396_v32 }
  0x5b   : > { %567 = vst [vmem:[#allocation2 + $0xb8] sm:$0xff] %v2396_v32 }
  0x5c   : > { %568 = vst [vmem:[#allocation2 + $0x60] sm:$0xff] %v2396_v32 }
  0x5d   : > { %569 = vst [vmem:[#allocation2 + $0xf0] sm:$0xff] %v2396_v32 }
  0x5e   : > { %570 = vst [vmem:[#allocation2 + $0x8] sm:$0xff] %v2396_v32 }
  0x5f   : > { %571 = vst [vmem:[#allocation2 + $0x78] sm:$0xff] %v2396_v32 }
  0x60   : > { %572 = vst [vmem:[#allocation2 + $0x38] sm:$0xff] %v2396_v32 }
  0x61   : > { %573 = vst [vmem:[#allocation2 + $0x58] sm:$0xff] %v2396_v32 }
  0x62   : > { %574 = vst [vmem:[#allocation2 + $0x40] sm:$0xff] %v2396_v32 }
  0x63   : > { %575 = vst [vmem:[#allocation2 + $0xc8] sm:$0xff] %v2396_v32 }
  0x64   : > { %576 = vst [vmem:[#allocation2 + $0xe0] sm:$0xff] %v2396_v32 }
  0x65   : > { %577 = vst [vmem:[#allocation2 + $0x90] sm:$0xff] %v2396_v32 }
  0x66   : > { %578 = vst [vmem:[#allocation2 + $0x70] sm:$0xff] %v2396_v32 }
  0x67   : > { %579 = vst [vmem:[#allocation2 + $0xc0] sm:$0xff] %v2396_v32 }
  0x68   : > { %580 = vst [vmem:[#allocation2 + $0xa8] sm:$0xff] %v2396_v32 }
  0x69   : > { %581 = vst [vmem:[#allocation2 + $0xd0] sm:$0xff] %v2396_v32 }
  0x6a   : > { %582 = vst [vmem:[#allocation2 + $0x10] sm:$0xff] %v2396_v32 }
  0x6b   : > { %583 = vst [vmem:[#allocation2 + $0x28] sm:$0xff] %v2396_v32 }
  0x6c   : > { %584 = vst [vmem:[#allocation2 + $0xa0] sm:$0xff] %v2396_v32 }
  0x6d   : > { %585 = vst [vmem:[#allocation2 + $0xf8] sm:$0xff] %v2396_v32 }
  0x6e   : > { %586 = vst [vmem:[#allocation2 + $0x20] sm:$0xff] %v2396_v32 }
  0x6f   : > { %587 = vst [vmem:[#allocation2 + $0x98] sm:$0xff] %v2396_v32 }
  0x70 PF: > { %v602_v33 = vld [vmem:[%s2594_s17 + $0x70] sm:$0xff]  ;;  %v603_v34 = vld [vmem:[%s2594_s17 + $0x78] sm:$0xff]  ;;  %v600_v38 = vld [vmem:[%s2594_s17 + $0x60] sm:$0xff]  ;;  %p2129_p13 = scmp.ne.s32.totalorder %s2378_s29, 1 }
  0x71   : > { %v618_v35 = vld [vmem:[%s2594_s17 + $0xf0] sm:$0xff]  ;;  %v627_v36 = vpack.c.bf16 %v603_v34, %v602_v33  ;;  %v619_v37 = vld [vmem:[%s2594_s17 + $0xf8] sm:$0xff]  ;;  %v601_v39 = vld [vmem:[%s2594_s17 + $0x68] sm:$0xff] }
  0x72   : > { %v635_v40 = vpack.c.bf16 %v619_v37, %v618_v35  ;;  %v616_v41 = vld [vmem:[%s2594_s17 + $0xe0] sm:$0xff]  ;;  %v617_v42 = vld [vmem:[%s2594_s17 + $0xe8] sm:$0xff]  ;;  %v626_v43 = vpack.c.bf16 %v601_v39, %v600_v38  ;;  %v598_v45 = vld [vmem:[%s2594_s17 + $0x50] sm:$0xff] }
  0x73   : > { %860 = vmatpush.bf16.msra.mxu0 %v627_v36  ;;  %2245 = vmatpush.bf16.msra.mxu2 %v627_v36  ;;  %v634_v44 = vpack.c.bf16 %v617_v42, %v616_v41  ;;  %v599_v46 = vld [vmem:[%s2594_s17 + $0x58] sm:$0xff]  ;;  %v614_v47 = vld [vmem:[%s2594_s17 + $0xd0] sm:$0xff]  ;;  %v596_v51 = vld [vmem:[%s2594_s17 + $0x40] sm:$0xff] }
  0x74   : > { %949 = vmatpush.bf16.msra.mxu1 %v635_v40  ;;  %2253 = vmatpush.bf16.msra.mxu3 %v635_v40  ;;  %v615_v48 = vld [vmem:[%s2594_s17 + $0xd8] sm:$0xff]  ;;  %v625_v49 = vpack.c.bf16 %v599_v46, %v598_v45  ;;  %v597_v52 = vld [vmem:[%s2594_s17 + $0x48] sm:$0xff]  ;;  %v612_v53 = vld [vmem:[%s2594_s17 + $0xc0] sm:$0xff] }
  0x75   : > { %v633_v50 = vpack.c.bf16 %v615_v48, %v614_v47  ;;  %v613_v54 = vld [vmem:[%s2594_s17 + $0xc8] sm:$0xff]  ;;  %v624_v55 = vpack.c.bf16 %v597_v52, %v596_v51  ;;  %v594_v57 = vld [vmem:[%s2594_s17 + $0x30] sm:$0xff]  ;;  %v595_v58 = vld [vmem:[%s2594_s17 + $0x38] sm:$0xff] }
  0x76   : > { %v632_v56 = vpack.c.bf16 %v613_v54, %v612_v53  ;;  %v610_v59 = vld [vmem:[%s2594_s17 + $0xb0] sm:$0xff]  ;;  %v611_v60 = vld [vmem:[%s2594_s17 + $0xb8] sm:$0xff]  ;;  %v623_v61 = vpack.c.bf16 %v595_v58, %v594_v57  ;;  %v592_v63 = vld [vmem:[%s2594_s17 + $0x20] sm:$0xff] }
  0x77   : > { %861 = vmatpush.bf16.msra.mxu0 %v626_v43  ;;  %2246 = vmatpush.bf16.msra.mxu2 %v626_v43  ;;  %v631_v62 = vpack.c.bf16 %v611_v60, %v610_v59  ;;  %v593_v0 = vld [vmem:[%s2594_s17 + $0x28] sm:$0xff]  ;;  %v608_v1 = vld [vmem:[%s2594_s17 + $0xa0] sm:$0xff]  ;;  %v590_v5 = vld [vmem:[%s2594_s17 + $0x10] sm:$0xff] }
  0x78   : > { %950 = vmatpush.bf16.msra.mxu1 %v634_v44  ;;  %2254 = vmatpush.bf16.msra.mxu3 %v634_v44  ;;  %v609_v2 = vld [vmem:[%s2594_s17 + $0xa8] sm:$0xff]  ;;  %v622_v3 = vpack.c.bf16 %v593_v0, %v592_v63  ;;  %v591_v6 = vld [vmem:[%s2594_s17 + $0x18] sm:$0xff]  ;;  %v606_v7 = vld [vmem:[%s2594_s17 + $0x90] sm:$0xff] }
  0x79   : > { %v630_v4 = vpack.c.bf16 %v609_v2, %v608_v1  ;;  %v607_v8 = vld [vmem:[%s2594_s17 + $0x98] sm:$0xff]  ;;  %v621_v9 = vpack.c.bf16 %v591_v6, %v590_v5  ;;  %v588_v11 = vld [vmem:[%s2594_s17] sm:$0xff]  ;;  %v589_v12 = vld [vmem:[%s2594_s17 + $0x8] sm:$0xff] }
  0x7a   : > { %v629_v10 = vpack.c.bf16 %v607_v8, %v606_v7  ;;  %v604_v13 = vld [vmem:[%s2594_s17 + $0x80] sm:$0xff]  ;;  %v605_v14 = vld [vmem:[%s2594_s17 + $0x88] sm:$0xff]  ;;  %v620_v17 = vpack.c.bf16 %v589_v12, %v588_v11  ;;  %v2011_v29 = vld [vmem:[%s2596_s22 + $0x10] sm:$0xf] }
  0x7b   : > { %862 = vmatpush.bf16.msra.mxu0 %v625_v49  ;;  %2247 = vmatpush.bf16.msra.mxu2 %v625_v49  ;;  %v2003_v15 = vld [vmem:[%s2596_s22] sm:$0xf]  ;;  %v2198_v16 = vld [vmem:[%s2596_s22 + $0x4] sm:$0xf0]  ;;  %v2197_v20 = vld [vmem:[%s2596_s22 + $0x4] sm:$0xf]  ;;  %v628_v21 = vpack.c.bf16 %v605_v14, %v604_v13 }
  0x7c   : > { %951 = vmatpush.bf16.msra.mxu1 %v633_v50  ;;  %2255 = vmatpush.bf16.msra.mxu3 %v633_v50  ;;  %v2067_v18 = vld [vmem:[%s2596_s22 + $0x80] sm:$0xf]  ;;  %v2214_v19 = vld [vmem:[%s2596_s22 + $0x84] sm:$0xf0]  ;;  %v2005_v22 = vld [vmem:[%s2596_s22 + $0x8] sm:$0xf0]  ;;  %v2004_v25 = vor.u32 %v2198_v16, %v2003_v15 }
  0x7d   : > { %v2213_v23 = vld [vmem:[%s2596_s22 + $0x84] sm:$0xf]  ;;  %v2069_v24 = vld [vmem:[%s2596_s22 + $0x88] sm:$0xf0]  ;;  %v2068_v26 = vor.u32 %v2214_v19, %v2067_v18  ;;  %v2008_v27 = vor.u32 %v2197_v20, %v2005_v22  ;;  %v2200_v30 = vld [vmem:[%s2596_s22 + $0x14] sm:$0xf0] }
  0x7e   : > { %v2072_v28 = vor.u32 %v2213_v23, %v2069_v24  ;;  %v2075_v31 = vld [vmem:[%s2596_s22 + $0x90] sm:$0xf]  ;;  %v2216_v32 = vld [vmem:[%s2596_s22 + $0x94] sm:$0xf0]  ;;  %v2199_v33 = vld [vmem:[%s2596_s22 + $0x14] sm:$0xf]  ;;  %v2012_v37 = vor.u32 %v2200_v30, %v2011_v29 }
  0x7f   : > { %863 = vmatpush.bf16.msra.mxu0 %v624_v55  ;;  %2248 = vmatpush.bf16.msra.mxu2 %v624_v55  ;;  %v2013_v34 = vld [vmem:[%s2596_s22 + $0x18] sm:$0xf0]  ;;  %v2215_v35 = vld [vmem:[%s2596_s22 + $0x94] sm:$0xf]  ;;  %v2076_v38 = vor.u32 %v2216_v32, %v2075_v31  ;;  %v2019_v41 = vld [vmem:[%s2596_s22 + $0x20] sm:$0xf] }
  0x80   : > { %952 = vmatpush.bf16.msra.mxu1 %v632_v56  ;;  %2256 = vmatpush.bf16.msra.mxu3 %v632_v56  ;;  %v2077_v36 = vld [vmem:[%s2596_s22 + $0x98] sm:$0xf0]  ;;  %v2016_v39 = vor.u32 %v2199_v33, %v2013_v34  ;;  %v2202_v42 = vld [vmem:[%s2596_s22 + $0x24] sm:$0xf0]  ;;  %v2083_v43 = vld [vmem:[%s2596_s22 + $0xa0] sm:$0xf] }
  0x81   : > { %v2080_v40 = vor.u32 %v2215_v35, %v2077_v36  ;;  %v2218_v44 = vld [vmem:[%s2596_s22 + $0xa4] sm:$0xf0]  ;;  %v2201_v45 = vld [vmem:[%s2596_s22 + $0x24] sm:$0xf]  ;;  %v2021_v46 = vld [vmem:[%s2596_s22 + $0x28] sm:$0xf0]  ;;  %v2020_v49 = vor.u32 %v2202_v42, %v2019_v41 }
  0x82   : > { %v2217_v47 = vld [vmem:[%s2596_s22 + $0xa4] sm:$0xf]  ;;  %v2085_v48 = vld [vmem:[%s2596_s22 + $0xa8] sm:$0xf0]  ;;  %v2084_v50 = vor.u32 %v2218_v44, %v2083_v43  ;;  %v2024_v51 = vor.u32 %v2201_v45, %v2021_v46  ;;  %v2027_v53 = vld [vmem:[%s2596_s22 + $0x30] sm:$0xf] }
  0x83   : > { %864 = vmatpush.bf16.msra.mxu0 %v623_v61  ;;  %2249 = vmatpush.bf16.msra.mxu2 %v623_v61  ;;  %v2088_v52 = vor.u32 %v2217_v47, %v2085_v48  ;;  %v2204_v54 = vld [vmem:[%s2596_s22 + $0x34] sm:$0xf0]  ;;  %v2091_v55 = vld [vmem:[%s2596_s22 + $0xb0] sm:$0xf]  ;;  %v2203_v57 = vld [vmem:[%s2596_s22 + $0x34] sm:$0xf] }
  0x84   : > { %953 = vmatpush.bf16.msra.mxu1 %v631_v62  ;;  %2257 = vmatpush.bf16.msra.mxu3 %v631_v62  ;;  %v2220_v56 = vld [vmem:[%s2596_s22 + $0xb4] sm:$0xf0]  ;;  %v2029_v58 = vld [vmem:[%s2596_s22 + $0x38] sm:$0xf0]  ;;  %v2219_v59 = vld [vmem:[%s2596_s22 + $0xb4] sm:$0xf]  ;;  %v2028_v61 = vor.u32 %v2204_v54, %v2027_v53 }
  0x85   : > { %v2093_v60 = vld [vmem:[%s2596_s22 + $0xb8] sm:$0xf0]  ;;  %v2092_v62 = vor.u32 %v2220_v56, %v2091_v55  ;;  %v2032_v63 = vor.u32 %v2203_v57, %v2029_v58  ;;  %v2035_v1 = vld [vmem:[%s2596_s22 + $0x40] sm:$0xf]  ;;  %v2206_v2 = vld [vmem:[%s2596_s22 + $0x44] sm:$0xf0] }
  0x86   : > { %v2096_v0 = vor.u32 %v2219_v59, %v2093_v60  ;;  %v2205_v5 = vld [vmem:[%s2596_s22 + $0x44] sm:$0xf]  ;;  %v2037_v6 = vld [vmem:[%s2596_s22 + $0x48] sm:$0xf0]  ;;  %v2043_v13 = vld [vmem:[%s2596_s22 + $0x50] sm:$0xf] }
  0x87   : > { %865 = vmatpush.bf16.msra.mxu0 %v622_v3  ;;  %2250 = vmatpush.bf16.msra.mxu2 %v622_v3  ;;  %v2099_v3 = vld [vmem:[%s2596_s22 + $0xc0] sm:$0xf]  ;;  %v2221_v7 = vld [vmem:[%s2596_s22 + $0xc4] sm:$0xf]  ;;  %v2101_v8 = vld [vmem:[%s2596_s22 + $0xc8] sm:$0xf0]  ;;  %v2040_v11 = vor.u32 %v2205_v5, %v2037_v6 }
  0x88   : > { %954 = vmatpush.bf16.msra.mxu1 %v630_v4  ;;  %2258 = vmatpush.bf16.msra.mxu3 %v630_v4  ;;  %v2222_v4 = vld [vmem:[%s2596_s22 + $0xc4] sm:$0xf0]  ;;  %v2104_v12 = vor.u32 %v2221_v7, %v2101_v8  ;;  %v2208_v14 = vld [vmem:[%s2596_s22 + $0x54] sm:$0xf0]  ;;  %v2107_v15 = vld [vmem:[%s2596_s22 + $0xd0] sm:$0xf] }
  0x89   : > { %v2224_v16 = vld [vmem:[%s2596_s22 + $0xd4] sm:$0xf0]  ;;  %v2045_v18 = vld [vmem:[%s2596_s22 + $0x58] sm:$0xf0]  ;;  %v2223_v19 = vld [vmem:[%s2596_s22 + $0xd4] sm:$0xf] }
  0x8a   : > { %v2109_v20 = vld [vmem:[%s2596_s22 + $0xd8] sm:$0xf0]  ;;  %v2108_v22 = vor.u32 %v2224_v16, %v2107_v15  ;;  %v2209_v29 = vld [vmem:[%s2596_s22 + $0x64] sm:$0xf]  ;;  %v2053_v30 = vld [vmem:[%s2596_s22 + $0x68] sm:$0xf0] }
  0x8b   : > { %866 = vmatpush.bf16.msra.mxu0 %v621_v9  ;;  %2251 = vmatpush.bf16.msra.mxu2 %v621_v9  ;;  %v2036_v9 = vor.u32 %v2206_v2, %v2035_v1  ;;  %v2112_v24 = vor.u32 %v2223_v19, %v2109_v20  ;;  %v2225_v31 = vld [vmem:[%s2596_s22 + $0xe4] sm:$0xf]  ;;  %v2117_v32 = vld [vmem:[%s2596_s22 + $0xe8] sm:$0xf0]  ;;  %v2056_v35 = vor.u32 %v2209_v29, %v2053_v30  ;;  %v2211_v41 = vld [vmem:[%s2596_s22 + $0x74] sm:$0xf] }
  0x8c   : > { %955 = vmatpush.bf16.msra.mxu1 %v629_v10  ;;  %2259 = vmatpush.bf16.msra.mxu3 %v629_v10  ;;  %v2100_v10 = vor.u32 %v2222_v4, %v2099_v3  ;;  %v2120_v36 = vor.u32 %v2225_v31, %v2117_v32  ;;  %v2061_v42 = vld [vmem:[%s2596_s22 + $0x78] sm:$0xf0]  ;;  %v2227_v43 = vld [vmem:[%s2596_s22 + $0xf4] sm:$0xf]  ;;  %v637_v59 = vld [vmem:[#allocation2] sm:$0xff] }
  0x8d   : > { %v2125_v44 = vld [vmem:[%s2596_s22 + $0xf8] sm:$0xf0]  ;;  %v2064_v47 = vor.u32 %v2211_v41, %v2061_v42  ;;  %v656_v31 = vld [vmem:[#allocation2 + $0xe0] sm:$0xff]  ;;  %v657_v41 = vld [vmem:[#allocation2 + $0x90] sm:$0xff] }
  0x8e   : > { %v2128_v48 = vor.u32 %v2227_v43, %v2125_v44  ;;  %v652_v55 = vld [vmem:[#allocation2 + $0x38] sm:$0xff] }
  0x8f   : > { %867 = vmatpush.bf16.msra.mxu0 %v620_v17  ;;  %2252 = vmatpush.bf16.msra.mxu2 %v620_v17  ;;  %v2207_v17 = vld [vmem:[%s2596_s22 + $0x54] sm:$0xf]  ;;  %v653_v1 = vld [vmem:[#allocation2 + $0x58] sm:$0xff] }
  0x90   : > { %956 = vmatpush.bf16.msra.mxu1 %v628_v21  ;;  %2260 = vmatpush.bf16.msra.mxu3 %v628_v21  ;;  %v2044_v21 = vor.u32 %v2208_v14, %v2043_v13  ;;  %v2048_v23 = vor.u32 %v2207_v17, %v2045_v18  ;;  %v638_v5 = vld [vmem:[#allocation2 + $0xd8] sm:$0xff] }
  0x91   : > { %v639_v15 = vld [vmem:[#allocation2 + $0x18] sm:$0xff] }
  0x92   : > { %868 = vmatmul.bf16.vlgmr.msra.gmra.mxu0 %v2004_v25  ;;  %908 = vmatmul.bf16.vlgmr.msra.gmra.mxu2 %v2068_v26  ;;  %v2051_v25 = vld [vmem:[%s2596_s22 + $0x60] sm:$0xf]  ;;  %v2210_v26 = vld [vmem:[%s2596_s22 + $0x64] sm:$0xf0] }
  0x93   : > { %957 = vmatmul.bf16.vlgmr.msra.gmra.mxu1 %v2008_v27  ;;  %997 = vmatmul.bf16.vlgmr.msra.gmra.mxu3 %v2072_v28  ;;  %v2115_v27 = vld [vmem:[%s2596_s22 + $0xe0] sm:$0xf]  ;;  %v2226_v28 = vld [vmem:[%s2596_s22 + $0xe4] sm:$0xf0]  ;;  %v2052_v33 = vor.u32 %v2210_v26, %v2051_v25  ;;  %v640_v25 = vld [vmem:[#allocation2 + $0x50] sm:$0xff] }
  0x94   : > { %v2116_v34 = vor.u32 %v2226_v28, %v2115_v27 }
  0xa2   : > { %873 = vmatmul.bf16.gmra.mxu0 %v2012_v37  ;;  %913 = vmatmul.bf16.gmra.mxu2 %v2076_v38  ;;  %v2059_v37 = vld [vmem:[%s2596_s22 + $0x70] sm:$0xf]  ;;  %v2212_v38 = vld [vmem:[%s2596_s22 + $0x74] sm:$0xf0] }
  0xa3   : > { %962 = vmatmul.bf16.gmra.mxu1 %v2016_v39  ;;  %1002 = vmatmul.bf16.gmra.mxu3 %v2080_v40  ;;  %v2123_v39 = vld [vmem:[%s2596_s22 + $0xf0] sm:$0xf]  ;;  %v2228_v40 = vld [vmem:[%s2596_s22 + $0xf4] sm:$0xf0]  ;;  %v2060_v45 = vor.u32 %v2212_v38, %v2059_v37 }
  0xa4   : > { %v2124_v46 = vor.u32 %v2228_v40, %v2123_v39 }
  0xb2   : > { %878 = vmatmul.bf16.gmra.mxu0 %v2020_v49  ;;  %918 = vmatmul.bf16.gmra.mxu2 %v2084_v50  ;;  %v636_v50 = vld [vmem:[#allocation2 + $0xb0] sm:$0xff] }
  0xb3   : > { %967 = vmatmul.bf16.gmra.mxu1 %v2024_v51  ;;  %1007 = vmatmul.bf16.gmra.mxu3 %v2088_v52 }
  0xc2   : > { %883 = vmatmul.bf16.gmra.mxu0 %v2028_v61  ;;  %923 = vmatmul.bf16.gmra.mxu2 %v2092_v62 }
  0xc3   : > { %972 = vmatmul.bf16.gmra.mxu1 %v2032_v63  ;;  %1012 = vmatmul.bf16.gmra.mxu3 %v2096_v0 }
  0xd2   : > { %888 = vmatmul.bf16.gmra.mxu0 %v2036_v9  ;;  %928 = vmatmul.bf16.gmra.mxu2 %v2100_v10 }
  0xd3   : > { %977 = vmatmul.bf16.gmra.mxu1 %v2040_v11  ;;  %1017 = vmatmul.bf16.gmra.mxu3 %v2104_v12  ;;  %v654_v11 = vld [vmem:[#allocation2 + $0x40] sm:$0xff] }
  0xe2   : > { %893 = vmatmul.bf16.gmra.mxu0 %v2044_v21  ;;  %933 = vmatmul.bf16.gmra.mxu2 %v2108_v22  ;;  %v655_v21 = vld [vmem:[#allocation2 + $0xc8] sm:$0xff] }
  0xe3   : > { %982 = vmatmul.bf16.gmra.mxu1 %v2048_v23  ;;  %1022 = vmatmul.bf16.gmra.mxu3 %v2112_v24 }
  0xf2   : > { %898 = vmatmul.bf16.gmra.mxu0 %v2052_v33  ;;  %938 = vmatmul.bf16.gmra.mxu2 %v2116_v34 }
  0xf3   : > { %987 = vmatmul.bf16.gmra.mxu1 %v2056_v35  ;;  %1027 = vmatmul.bf16.gmra.mxu3 %v2120_v36  ;;  %v641_v35 = vld [vmem:[#allocation2 + $0x68] sm:$0xff] }
 0x102   : > { %903 = vmatmul.bf16.gmra.mxu0 %v2060_v45  ;;  %943 = vmatmul.bf16.gmra.mxu2 %v2124_v46  ;;  %v642_v45 = vld [vmem:[#allocation2 + $0x30] sm:$0xff] }
 0x103   : > { %992 = vmatmul.bf16.gmra.mxu1 %v2064_v47  ;;  %1032 = vmatmul.bf16.gmra.mxu3 %v2128_v48 }
 0x10f   : > { %v869_v49 = vpop.f32.mrf.mxu0 }
 0x110   : > { %v958_v51 = vpop.f32.mrf.mxu1 }
 0x111   : > { %v959_v52 = vadd.f32 %v958_v51, %v869_v49  ;;  %v658_v51 = vld [vmem:[#allocation2 + $0x70] sm:$0xff] }
 0x113   : > { %v1038_v53 = vadd.f32 %v959_v52, %v636_v50 }
 0x115   : > { %1070 = vst [vmem:[#allocation2 + $0xb0] sm:$0xff] %v1038_v53  ;;  %v909_v54 = vpop.f32.mrf.mxu2 }
 0x116   : > { %v998_v56 = vpop.f32.mrf.mxu3 }
 0x117   : > { %v999_v57 = vadd.f32 %v998_v56, %v909_v54  ;;  %v871_v58 = vpop.f32.mrf.mxu0 }
 0x118   : > { %v960_v60 = vpop.f32.mrf.mxu1 }
 0x119   : > { %v1054_v61 = vadd.f32 %v999_v57, %v652_v55  ;;  %v961_v62 = vadd.f32 %v960_v60, %v871_v58  ;;  %v643_v55 = vld [vmem:[#allocation2 + $0x48] sm:$0xff] }
 0x11b   : > { %1086 = vst [vmem:[#allocation2 + $0x38] sm:$0xff] %v1054_v61  ;;  %v1039_v63 = vadd.f32 %v961_v62, %v637_v59  ;;  %v659_v61 = vld [vmem:[#allocation2 + $0xc0] sm:$0xff] }
 0x11d   : > { %1071 = vst [vmem:[#allocation2] sm:$0xff] %v1039_v63  ;;  %v911_v0 = vpop.f32.mrf.mxu2 }
 0x11e   : > { %v1000_v2 = vpop.f32.mrf.mxu3 }
 0x11f   : > { %v1001_v3 = vadd.f32 %v1000_v2, %v911_v0  ;;  %v874_v4 = vpop.f32.mrf.mxu0 }
 0x120   : > { %v963_v6 = vpop.f32.mrf.mxu1 }
 0x121   : > { %v1055_v7 = vadd.f32 %v1001_v3, %v653_v1  ;;  %v964_v8 = vadd.f32 %v963_v6, %v874_v4  ;;  %v644_v1 = vld [vmem:[#allocation2 + $0x80] sm:$0xff] }
 0x123   : > { %1087 = vst [vmem:[#allocation2 + $0x58] sm:$0xff] %v1055_v7  ;;  %v1040_v9 = vadd.f32 %v964_v8, %v638_v5  ;;  %v660_v7 = vld [vmem:[#allocation2 + $0xa8] sm:$0xff] }
 0x125   : > { %1072 = vst [vmem:[#allocation2 + $0xd8] sm:$0xff] %v1040_v9  ;;  %v914_v10 = vpop.f32.mrf.mxu2 }
 0x126   : > { %v1003_v12 = vpop.f32.mrf.mxu3 }
 0x127   : > { %v1004_v13 = vadd.f32 %v1003_v12, %v914_v10  ;;  %v876_v14 = vpop.f32.mrf.mxu0 }
 0x128   : > { %v965_v16 = vpop.f32.mrf.mxu1 }
 0x129   : > { %v1056_v17 = vadd.f32 %v1004_v13, %v654_v11  ;;  %v966_v18 = vadd.f32 %v965_v16, %v876_v14  ;;  %v645_v11 = vld [vmem:[#allocation2 + $0x88] sm:$0xff] }
 0x12b   : > { %1088 = vst [vmem:[#allocation2 + $0x40] sm:$0xff] %v1056_v17  ;;  %v1041_v19 = vadd.f32 %v966_v18, %v639_v15  ;;  %v661_v17 = vld [vmem:[#allocation2 + $0xd0] sm:$0xff] }
 0x12d   : > { %1073 = vst [vmem:[#allocation2 + $0x18] sm:$0xff] %v1041_v19  ;;  %v916_v20 = vpop.f32.mrf.mxu2 }
 0x12e   : > { %v1005_v22 = vpop.f32.mrf.mxu3 }
 0x12f   : > { %v1006_v23 = vadd.f32 %v1005_v22, %v916_v20  ;;  %v879_v24 = vpop.f32.mrf.mxu0 }
 0x130   : > { %v968_v26 = vpop.f32.mrf.mxu1 }
 0x131   : > { %v1057_v27 = vadd.f32 %v1006_v23, %v655_v21  ;;  %v969_v28 = vadd.f32 %v968_v26, %v879_v24  ;;  %v646_v21 = vld [vmem:[#allocation2 + $0xe8] sm:$0xff] }
 0x133   : > { %1089 = vst [vmem:[#allocation2 + $0xc8] sm:$0xff] %v1057_v27  ;;  %v1042_v29 = vadd.f32 %v969_v28, %v640_v25  ;;  %v662_v27 = vld [vmem:[#allocation2 + $0x10] sm:$0xff] }
 0x135   : > { %1074 = vst [vmem:[#allocation2 + $0x50] sm:$0xff] %v1042_v29  ;;  %v919_v30 = vpop.f32.mrf.mxu2 }
 0x136   : > { %v1008_v32 = vpop.f32.mrf.mxu3 }
 0x137   : > { %v1009_v33 = vadd.f32 %v1008_v32, %v919_v30  ;;  %v881_v34 = vpop.f32.mrf.mxu0 }
 0x138   : > { %v970_v36 = vpop.f32.mrf.mxu1 }
 0x139   : > { %v1058_v37 = vadd.f32 %v1009_v33, %v656_v31  ;;  %v971_v38 = vadd.f32 %v970_v36, %v881_v34  ;;  %v647_v31 = vld [vmem:[#allocation2 + $0xb8] sm:$0xff] }
 0x13b   : > { %1090 = vst [vmem:[#allocation2 + $0xe0] sm:$0xff] %v1058_v37  ;;  %v1043_v39 = vadd.f32 %v971_v38, %v641_v35  ;;  %v663_v37 = vld [vmem:[#allocation2 + $0x28] sm:$0xff] }
 0x13d   : > { %1075 = vst [vmem:[#allocation2 + $0x68] sm:$0xff] %v1043_v39  ;;  %v921_v40 = vpop.f32.mrf.mxu2 }
 0x13e   : > { %v1010_v42 = vpop.f32.mrf.mxu3 }
 0x13f   : > { %v1011_v43 = vadd.f32 %v1010_v42, %v921_v40  ;;  %v884_v44 = vpop.f32.mrf.mxu0 }
 0x140   : > { %v973_v46 = vpop.f32.mrf.mxu1 }
 0x141   : > { %v1059_v47 = vadd.f32 %v1011_v43, %v657_v41  ;;  %v974_v48 = vadd.f32 %v973_v46, %v884_v44  ;;  %v648_v41 = vld [vmem:[#allocation2 + $0x60] sm:$0xff] }
 0x143   : > { %1091 = vst [vmem:[#allocation2 + $0x90] sm:$0xff] %v1059_v47  ;;  %v1044_v49 = vadd.f32 %v974_v48, %v642_v45  ;;  %v664_v47 = vld [vmem:[#allocation2 + $0xa0] sm:$0xff] }
 0x145   : > { %1076 = vst [vmem:[#allocation2 + $0x30] sm:$0xff] %v1044_v49  ;;  %v924_v50 = vpop.f32.mrf.mxu2 }
 0x146   : > { %v1013_v52 = vpop.f32.mrf.mxu3 }
 0x147   : > { %v1014_v53 = vadd.f32 %v1013_v52, %v924_v50  ;;  %v886_v54 = vpop.f32.mrf.mxu0 }
 0x148   : > { %v975_v56 = vpop.f32.mrf.mxu1 }
 0x149   : > { %v1060_v57 = vadd.f32 %v1014_v53, %v658_v51  ;;  %v976_v58 = vadd.f32 %v975_v56, %v886_v54  ;;  %v649_v51 = vld [vmem:[#allocation2 + $0xf0] sm:$0xff] }
 0x14b   : > { %1092 = vst [vmem:[#allocation2 + $0x70] sm:$0xff] %v1060_v57  ;;  %v1045_v59 = vadd.f32 %v976_v58, %v643_v55  ;;  %v665_v57 = vld [vmem:[#allocation2 + $0xf8] sm:$0xff] }
 0x14d   : > { %1077 = vst [vmem:[#allocation2 + $0x48] sm:$0xff] %v1045_v59  ;;  %v926_v60 = vpop.f32.mrf.mxu2 }
 0x14e   : > { %v1015_v62 = vpop.f32.mrf.mxu3 }
 0x14f   : > { %v1016_v63 = vadd.f32 %v1015_v62, %v926_v60  ;;  %v889_v0 = vpop.f32.mrf.mxu0 }
 0x150   : > { %v978_v2 = vpop.f32.mrf.mxu1 }
 0x151   : > { %v1061_v3 = vadd.f32 %v1016_v63, %v659_v61  ;;  %v979_v4 = vadd.f32 %v978_v2, %v889_v0  ;;  %v650_v61 = vld [vmem:[#allocation2 + $0x8] sm:$0xff] }
 0x153   : > { %1093 = vst [vmem:[#allocation2 + $0xc0] sm:$0xff] %v1061_v3  ;;  %v1046_v5 = vadd.f32 %v979_v4, %v644_v1  ;;  %v666_v3 = vld [vmem:[#allocation2 + $0x20] sm:$0xff] }
 0x155   : > { %1078 = vst [vmem:[#allocation2 + $0x80] sm:$0xff] %v1046_v5  ;;  %v929_v6 = vpop.f32.mrf.mxu2 }
 0x156   : > { %v1018_v8 = vpop.f32.mrf.mxu3 }
 0x157   : > { %v1019_v9 = vadd.f32 %v1018_v8, %v929_v6  ;;  %v891_v10 = vpop.f32.mrf.mxu0 }
 0x158   : > { %v980_v12 = vpop.f32.mrf.mxu1 }
 0x159   : > { %v1062_v13 = vadd.f32 %v1019_v9, %v660_v7  ;;  %v981_v14 = vadd.f32 %v980_v12, %v891_v10  ;;  %v651_v7 = vld [vmem:[#allocation2 + $0x78] sm:$0xff] }
 0x15b   : > { %1094 = vst [vmem:[#allocation2 + $0xa8] sm:$0xff] %v1062_v13  ;;  %v1047_v15 = vadd.f32 %v981_v14, %v645_v11  ;;  %v667_v13 = vld [vmem:[#allocation2 + $0x98] sm:$0xff] }
 0x15d   : > { %1079 = vst [vmem:[#allocation2 + $0x88] sm:$0xff] %v1047_v15  ;;  %v931_v16 = vpop.f32.mrf.mxu2 }
 0x15e   : > { %v1020_v18 = vpop.f32.mrf.mxu3 }
 0x15f   : > { %v1021_v19 = vadd.f32 %v1020_v18, %v931_v16  ;;  %v894_v20 = vpop.f32.mrf.mxu0 }
 0x160   : > { %v983_v22 = vpop.f32.mrf.mxu1 }
 0x161   : > { %v1063_v23 = vadd.f32 %v1021_v19, %v661_v17  ;;  %v984_v24 = vadd.f32 %v983_v22, %v894_v20 }
 0x163   : > { %1095 = vst [vmem:[#allocation2 + $0xd0] sm:$0xff] %v1063_v23  ;;  %v1048_v25 = vadd.f32 %v984_v24, %v646_v21 }
 0x165   : > { %1080 = vst [vmem:[#allocation2 + $0xe8] sm:$0xff] %v1048_v25  ;;  %v934_v26 = vpop.f32.mrf.mxu2 }
 0x166   : > { %v1023_v28 = vpop.f32.mrf.mxu3 }
 0x167   : > { %v1024_v29 = vadd.f32 %v1023_v28, %v934_v26  ;;  %v896_v30 = vpop.f32.mrf.mxu0 }
 0x168   : > { %v985_v32 = vpop.f32.mrf.mxu1 }
 0x169   : > { %v1064_v33 = vadd.f32 %v1024_v29, %v662_v27  ;;  %v986_v34 = vadd.f32 %v985_v32, %v896_v30 }
 0x16b   : > { %1096 = vst [vmem:[#allocation2 + $0x10] sm:$0xff] %v1064_v33  ;;  %v1049_v35 = vadd.f32 %v986_v34, %v647_v31 }
 0x16d   : > { %1081 = vst [vmem:[#allocation2 + $0xb8] sm:$0xff] %v1049_v35  ;;  %v936_v36 = vpop.f32.mrf.mxu2 }
 0x16e   : > { %v1025_v38 = vpop.f32.mrf.mxu3 }
 0x16f   : > { %v1026_v39 = vadd.f32 %v1025_v38, %v936_v36  ;;  %v899_v40 = vpop.f32.mrf.mxu0 }
 0x170   : > { %v988_v42 = vpop.f32.mrf.mxu1 }
 0x171   : > { %v1065_v43 = vadd.f32 %v1026_v39, %v663_v37  ;;  %v989_v44 = vadd.f32 %v988_v42, %v899_v40 }
 0x173   : > { %1097 = vst [vmem:[#allocation2 + $0x28] sm:$0xff] %v1065_v43  ;;  %v1050_v45 = vadd.f32 %v989_v44, %v648_v41 }
 0x175   : > { %1082 = vst [vmem:[#allocation2 + $0x60] sm:$0xff] %v1050_v45  ;;  %v939_v46 = vpop.f32.mrf.mxu2 }
 0x176   : > { %v1028_v48 = vpop.f32.mrf.mxu3 }
 0x177   : > { %v1029_v49 = vadd.f32 %v1028_v48, %v939_v46  ;;  %v901_v50 = vpop.f32.mrf.mxu0 }
 0x178   : > { %v990_v52 = vpop.f32.mrf.mxu1 }
 0x179   : > { %v1066_v53 = vadd.f32 %v1029_v49, %v664_v47  ;;  %v991_v54 = vadd.f32 %v990_v52, %v901_v50 }
 0x17b   : > { %1098 = vst [vmem:[#allocation2 + $0xa0] sm:$0xff] %v1066_v53  ;;  %v1051_v55 = vadd.f32 %v991_v54, %v649_v51 }
 0x17d   : > { %1083 = vst [vmem:[#allocation2 + $0xf0] sm:$0xff] %v1051_v55  ;;  %v941_v56 = vpop.f32.mrf.mxu2 }
 0x17e   : > { %v1030_v58 = vpop.f32.mrf.mxu3 }
 0x17f   : > { %v1031_v59 = vadd.f32 %v1030_v58, %v941_v56  ;;  %v904_v60 = vpop.f32.mrf.mxu0 }
 0x180   : > { %v993_v62 = vpop.f32.mrf.mxu1 }
 0x181   : > { %v1067_v63 = vadd.f32 %v1031_v59, %v665_v57  ;;  %v994_v0 = vadd.f32 %v993_v62, %v904_v60 }
 0x183   : > { %1099 = vst [vmem:[#allocation2 + $0xf8] sm:$0xff] %v1067_v63  ;;  %v1052_v1 = vadd.f32 %v994_v0, %v650_v61 }
 0x185   : > { %1084 = vst [vmem:[#allocation2 + $0x8] sm:$0xff] %v1052_v1  ;;  %v944_v2 = vpop.f32.mrf.mxu2 }
 0x186   : > { %v1033_v4 = vpop.f32.mrf.mxu3 }
 0x187   : > { %v1034_v5 = vadd.f32 %v1033_v4, %v944_v2  ;;  %v906_v6 = vpop.f32.mrf.mxu0 }
 0x188   : > { %v995_v8 = vpop.f32.mrf.mxu1 }
 0x189   : > { %v1068_v9 = vadd.f32 %v1034_v5, %v666_v3  ;;  %v996_v10 = vadd.f32 %v995_v8, %v906_v6 }
 0x18b   : > { %1100 = vst [vmem:[#allocation2 + $0x20] sm:$0xff] %v1068_v9  ;;  %v1053_v11 = vadd.f32 %v996_v10, %v651_v7 }
 0x18d   : > { %1085 = vst [vmem:[#allocation2 + $0x78] sm:$0xff] %v1053_v11  ;;  %v946_v12 = vpop.f32.mrf.mxu2 }
 0x18e   : > { %v1035_v14 = vpop.f32.mrf.mxu3 }
 0x18f   : > { %v1036_v15 = vadd.f32 %v1035_v14, %v946_v12  ;;  %1105 = sbr.rel (%p2129_p13) target bundleno = 795 (0x31b), region = 98 }
 0x191   : > { %v1069_v16 = vadd.f32 %v1036_v15, %v667_v13 }
 0x193   : > { %1101 = vst [vmem:[#allocation2 + $0x98] sm:$0xff] %v1069_v16 }
 0x194   : > { %v1156_v17 = vld [vmem:[%s2579_s24 + $0x90] sm:$0xff]  ;;  %v1154_v18 = vld [vmem:[%s2579_s24 + $0x80] sm:$0xff]  ;;  %v2397_v20 = vmov 0   ;;  %v1157_v21 = vld [vmem:[%s2579_s24 + $0x98] sm:$0xff] }
 0x195   : > { %v1138_v19 = vld [vmem:[%s2579_s24] sm:$0xff]  ;;  %2337 = vset.pattern.permute.xlu2 %v2397_v20  ;;  %2336 = vset.pattern.permute.xlu1 %v2397_v20  ;;  %v1155_v22 = vld [vmem:[%s2579_s24 + $0x88] sm:$0xff]  ;;  %v1140_v25 = vld [vmem:[%s2579_s24 + $0x10] sm:$0xff] }
 0x196   : > { %2335 = vset.pattern.permute.xlu0 %v2397_v20  ;;  %1262 = vperm.xlu2 %2337, %v1156_v17   ;;  %v1139_v23 = vld [vmem:[%s2579_s24 + $0x8] sm:$0xff]  ;;  %v1158_v24 = vld [vmem:[%s2579_s24 + $0xa0] sm:$0xff]  ;;  %v1141_v26 = vld [vmem:[%s2579_s24 + $0x18] sm:$0xff] }
 0x197   : > { %1252 = vperm.xlu0 %2335, %v1154_v18   ;;  %1172 = vperm.xlu1 %2336, %v1138_v19   ;;  %v1143_v27 = vld [vmem:[%s2579_s24 + $0x28] sm:$0xff]  ;;  %v1142_v29 = vld [vmem:[%s2579_s24 + $0x20] sm:$0xff]  ;;  %v1144_v30 = vld [vmem:[%s2579_s24 + $0x30] sm:$0xff] }
 0x198   : > { %v1159_v28 = vld [vmem:[%s2579_s24 + $0xa8] sm:$0xff]  ;;  %v1160_v31 = vld [vmem:[%s2579_s24 + $0xb0] sm:$0xff]  ;;  %v1161_v32 = vld [vmem:[%s2579_s24 + $0xb8] sm:$0xff] }
 0x199   : > { %v1163_v33 = vld [vmem:[%s2579_s24 + $0xc8] sm:$0xff]  ;;  %v1145_v34 = vld [vmem:[%s2579_s24 + $0x38] sm:$0xff]  ;;  %v1162_v35 = vld [vmem:[%s2579_s24 + $0xc0] sm:$0xff] }
 0x19a   : > { %v1164_v36 = vld [vmem:[%s2579_s24 + $0xd0] sm:$0xff]  ;;  %v1146_v37 = vld [vmem:[%s2579_s24 + $0x40] sm:$0xff]  ;;  %v1147_v38 = vld [vmem:[%s2579_s24 + $0x48] sm:$0xff] }
 0x19b   : > { %v2244_v39 = vld [vmem:[%s2940_s5 + $0x38] sm:$0xff]  ;;  %v1148_v42 = vld [vmem:[%s2579_s24 + $0x50] sm:$0xff]  ;;  %v1150_v45 = vld [vmem:[%s2579_s24 + $0x60] sm:$0xff] }
 0x19c   : > { %2261 = vmatpush.bf16.msra.mxu2 %v2244_v39  ;;  %1506 = vmatpush.bf16.msra.mxu0 %v2244_v39  ;;  %v1149_v40 = vld [vmem:[%s2579_s24 + $0x58] sm:$0xff]  ;;  %v2243_v43 = vld [vmem:[%s2940_s5 + $0x30] sm:$0xff]  ;;  %v1166_v46 = vld [vmem:[%s2579_s24 + $0xe0] sm:$0xff] }
 0x19d   : > { %v1165_v41 = vld [vmem:[%s2579_s24 + $0xd8] sm:$0xff]  ;;  %v1167_v47 = vld [vmem:[%s2579_s24 + $0xe8] sm:$0xff]  ;;  %v2241_v49 = vld [vmem:[%s2940_s5 + $0x20] sm:$0xff] }
 0x19e   : > { %1267 = vperm.xlu2 %2337, %v1157_v21   ;;  %v2236_v44 = vld [vmem:[%s2939_s4 + $0x38] sm:$0xff]  ;;  %v2242_v48 = vld [vmem:[%s2940_s5 + $0x28] sm:$0xff]  ;;  %v2235_v50 = vld [vmem:[%s2939_s4 + $0x30] sm:$0xff] }
 0x19f   : > { %1257 = vperm.xlu0 %2335, %v1155_v22   ;;  %1177 = vperm.xlu1 %2336, %v1139_v23   ;;  %v1169_v51 = vld [vmem:[%s2579_s24 + $0xf8] sm:$0xff]  ;;  %v1151_v52 = vld [vmem:[%s2579_s24 + $0x68] sm:$0xff]  ;;  %v1168_v53 = vld [vmem:[%s2579_s24 + $0xf0] sm:$0xff] }
 0x1a0   : > { %2262 = vmatpush.bf16.msra.mxu2 %v2243_v43  ;;  %1643 = vmatpush.bf16.msra.mxu1 %v2236_v44  ;;  %v2240_v54 = vld [vmem:[%s2940_s5 + $0x18] sm:$0xff]  ;;  %v2234_v55 = vld [vmem:[%s2939_s4 + $0x28] sm:$0xff]  ;;  %v2239_v56 = vld [vmem:[%s2940_s5 + $0x10] sm:$0xff] }
 0x1a1   : > { %2269 = vmatpush.bf16.msra.mxu3 %v2236_v44  ;;  %1507 = vmatpush.bf16.msra.mxu0 %v2243_v43  ;;  %v2233_v57 = vld [vmem:[%s2939_s4 + $0x20] sm:$0xff]  ;;  %v1152_v58 = vld [vmem:[%s2579_s24 + $0x70] sm:$0xff]  ;;  %v1153_v59 = vld [vmem:[%s2579_s24 + $0x78] sm:$0xff] }
 0x1a2   : > { %v2238_v60 = vld [vmem:[%s2940_s5 + $0x8] sm:$0xff]  ;;  %v2232_v61 = vld [vmem:[%s2939_s4 + $0x18] sm:$0xff]  ;;  %v2237_v62 = vld [vmem:[%s2940_s5] sm:$0xff] }
 0x1a3   : > { %v2231_v63 = vld [vmem:[%s2939_s4 + $0x10] sm:$0xff]  ;;  %v1394_v0 = vld [vmem:[%s2584_s14 + $0x80] sm:$0xff]  ;;  %v1395_v1 = vld [vmem:[%s2584_s14 + $0x88] sm:$0xff] }
 0x1a4   : > { %2263 = vmatpush.bf16.msra.mxu2 %v2242_v48  ;;  %1644 = vmatpush.bf16.msra.mxu1 %v2235_v50  ;;  %v1418_v2 = vpack.c.bf16 %v1395_v1, %v1394_v0  ;;  %v2230_v3 = vld [vmem:[%s2939_s4 + $0x8] sm:$0xff]  ;;  %v2229_v4 = vld [vmem:[%s2939_s4] sm:$0xff]  ;;  %v1396_v8 = vld [vmem:[%s2584_s14 + $0x90] sm:$0xff] }
 0x1a5   : > { %1508 = vmatpush.bf16.msra.mxu0 %v2242_v48  ;;  %2270 = vmatpush.bf16.msra.mxu3 %v2235_v50  ;;  %v1378_v5 = vld [vmem:[%s2584_s14] sm:$0xff]  ;;  %v1379_v6 = vld [vmem:[%s2584_s14 + $0x8] sm:$0xff]  ;;  %v1397_v9 = vld [vmem:[%s2584_s14 + $0x98] sm:$0xff] }
 0x1a6   : > { %1272 = vperm.xlu2 %2337, %v1158_v24   ;;  %v1410_v7 = vpack.c.bf16 %v1379_v6, %v1378_v5  ;;  %v1419_v10 = vpack.c.bf16 %v1397_v9, %v1396_v8  ;;  %v1380_v11 = vld [vmem:[%s2584_s14 + $0x10] sm:$0xff]  ;;  %v1381_v12 = vld [vmem:[%s2584_s14 + $0x18] sm:$0xff]  ;;  %v1398_v16 = vld [vmem:[%s2584_s14 + $0xa0] sm:$0xff] }
 0x1a7   : > { %1182 = vperm.xlu0 %2335, %v1140_v25   ;;  %1187 = vperm.xlu1 %2336, %v1141_v26   ;;  %v1411_v13 = vpack.c.bf16 %v1381_v12, %v1380_v11  ;;  %v1399_v17 = vld [vmem:[%s2584_s14 + $0xa8] sm:$0xff]  ;;  %v1122_v19 = vld [vmem:[#allocation2 + $0x38] sm:$0xff]  ;;  %v1106_v20 = vld [vmem:[#allocation2 + $0xb0] sm:$0xff] }
 0x1a8   : > { %2264 = vmatpush.bf16.msra.mxu2 %v2241_v49  ;;  %1645 = vmatpush.bf16.msra.mxu1 %v2234_v55  ;;  %v1420_v18 = vpack.c.bf16 %v1399_v17, %v1398_v16  ;;  %v1123_v21 = vld [vmem:[#allocation2 + $0x58] sm:$0xff]  ;;  %v1107_v22 = vld [vmem:[#allocation2] sm:$0xff]  ;;  %v1387_v6 = vld [vmem:[%s2584_s14 + $0x48] sm:$0xff] }
 0x1a9   : > { %1509 = vmatpush.bf16.msra.mxu0 %v2241_v49  ;;  %2271 = vmatpush.bf16.msra.mxu3 %v2234_v55  ;;  %v1382_v25 = vld [vmem:[%s2584_s14 + $0x20] sm:$0xff]  ;;  %v1109_v44 = vld [vmem:[#allocation2 + $0x18] sm:$0xff]  ;;  %v1384_v49 = vld [vmem:[%s2584_s14 + $0x30] sm:$0xff] }
 0x1aa   : > { %v1385_v50 = vld [vmem:[%s2584_s14 + $0x38] sm:$0xff]  ;;  %v1404_v12 = vld [vmem:[%s2584_s14 + $0xd0] sm:$0xff]  ;;  %v1129_v16 = vld [vmem:[#allocation2 + $0xc0] sm:$0xff] }
 0x1ac   : > { %2265 = vmatpush.bf16.msra.mxu2 %v2240_v54  ;;  %1646 = vmatpush.bf16.msra.mxu1 %v2233_v57 }
 0x1ad   : > { %1510 = vmatpush.bf16.msra.mxu0 %v2240_v54  ;;  %2272 = vmatpush.bf16.msra.mxu3 %v2233_v57  ;;  %v1403_v57 = vld [vmem:[%s2584_s14 + $0xc8] sm:$0xff] }
 0x1ae   : > { %1197 = vperm.xlu2 %2337, %v1143_v27  }
 0x1af   : > { %1277 = vperm.xlu0 %2335, %v1159_v28   ;;  %1192 = vperm.xlu1 %2336, %v1142_v29  }
 0x1b0   : > { %2266 = vmatpush.bf16.msra.mxu2 %v2239_v56  ;;  %1647 = vmatpush.bf16.msra.mxu1 %v2232_v61 }
 0x1b1   : > { %1511 = vmatpush.bf16.msra.mxu0 %v2239_v56  ;;  %2273 = vmatpush.bf16.msra.mxu3 %v2232_v61  ;;  %v1402_v56 = vld [vmem:[%s2584_s14 + $0xc0] sm:$0xff]  ;;  %v1110_v61 = vld [vmem:[#allocation2 + $0x50] sm:$0xff] }
 0x1b4   : > { %2267 = vmatpush.bf16.msra.mxu2 %v2238_v60  ;;  %1648 = vmatpush.bf16.msra.mxu1 %v2231_v63 }
 0x1b5   : > { %1512 = vmatpush.bf16.msra.mxu0 %v2238_v60  ;;  %2274 = vmatpush.bf16.msra.mxu3 %v2231_v63  ;;  %v1111_v63 = vld [vmem:[#allocation2 + $0x68] sm:$0xff] }
 0x1b6   : > { %1202 = vperm.xlu2 %2337, %v1144_v30  }
 0x1b7   : > { %1282 = vperm.xlu0 %2335, %v1160_v31   ;;  %1287 = vperm.xlu1 %2336, %v1161_v32   ;;  %v1383_v31 = vld [vmem:[%s2584_s14 + $0x28] sm:$0xff] }
 0x1b8   : > { %2268 = vmatpush.bf16.msra.mxu2 %v2237_v62  ;;  %1649 = vmatpush.bf16.msra.mxu1 %v2230_v3  ;;  %v1412_v32 = vpack.c.bf16 %v1383_v31, %v1382_v25  ;;  %v1406_v31 = vld [vmem:[%s2584_s14 + $0xe0] sm:$0xff] }
 0x1b9   : > { %1513 = vmatpush.bf16.msra.mxu0 %v2237_v62  ;;  %2275 = vmatpush.bf16.msra.mxu3 %v2230_v3  ;;  %v1126_v62 = vld [vmem:[#allocation2 + $0xe0] sm:$0xff] }
 0x1ba   : > { %v1386_v3 = vld [vmem:[%s2584_s14 + $0x40] sm:$0xff] }
 0x1bb   : > { %1554 = vmatmul.bf16.vlgmr.msra.gmra.mxu2 %v1418_v2  ;;  %v1414_v8 = vpack.c.bf16 %v1387_v6, %v1386_v3 }
 0x1bc   : > { %1650 = vmatpush.bf16.msra.mxu1 %v2229_v4  ;;  %1514 = vmatmul.bf16.vlgmr.msra.gmra.mxu0 %v1410_v7 }
 0x1bd   : > { %2276 = vmatpush.bf16.msra.mxu3 %v2229_v4 }
 0x1be   : > { %1297 = vperm.xlu2 %2337, %v1163_v33  }
 0x1bf   : > { %1207 = vperm.xlu0 %2335, %v1145_v34   ;;  %1292 = vperm.xlu1 %2336, %v1162_v35   ;;  %v1400_v35 = vld [vmem:[%s2584_s14 + $0xb0] sm:$0xff] }
 0x1c6   : > { %1302 = vperm.xlu2 %2337, %v1164_v36   ;;  %v1401_v36 = vld [vmem:[%s2584_s14 + $0xb8] sm:$0xff] }
 0x1c7   : > { %1212 = vperm.xlu0 %2335, %v1146_v37   ;;  %1217 = vperm.xlu1 %2336, %v1147_v38   ;;  %v1421_v37 = vpack.c.bf16 %v1401_v36, %v1400_v35  ;;  %v1124_v38 = vld [vmem:[#allocation2 + $0x40] sm:$0xff]  ;;  %v1130_v35 = vld [vmem:[#allocation2 + $0xa8] sm:$0xff] }
 0x1cb   : > { %1559 = vmatmul.bf16.gmra.mxu2 %v1419_v10 }
 0x1cc   : > { %1519 = vmatmul.bf16.gmra.mxu0 %v1411_v13  ;;  %v1405_v13 = vld [vmem:[%s2584_s14 + $0xd8] sm:$0xff] }
 0x1ce   : > { %1227 = vperm.xlu2 %2337, %v1149_v40   ;;  %v1125_v40 = vld [vmem:[#allocation2 + $0xc8] sm:$0xff] }
 0x1cf   : > { %1307 = vperm.xlu0 %2335, %v1165_v41   ;;  %1222 = vperm.xlu1 %2336, %v1148_v42   ;;  %v1108_v42 = vld [vmem:[#allocation2 + $0xd8] sm:$0xff] }
 0x1d6   : > { %1232 = vperm.xlu2 %2337, %v1150_v45  }
 0x1d7   : > { %1312 = vperm.xlu0 %2335, %v1166_v46   ;;  %1317 = vperm.xlu1 %2336, %v1167_v47  }
 0x1db   : > { %1564 = vmatmul.bf16.gmra.mxu2 %v1420_v18  ;;  %v1113_v18 = vld [vmem:[#allocation2 + $0x48] sm:$0xff] }
 0x1dc   : > { %1524 = vmatmul.bf16.gmra.mxu0 %v1412_v32  ;;  %v1407_v32 = vld [vmem:[%s2584_s14 + $0xe8] sm:$0xff] }
 0x1de   : > { %1327 = vperm.xlu2 %2337, %v1169_v51   ;;  %v1413_v51 = vpack.c.bf16 %v1385_v50, %v1384_v49 }
 0x1df   : > { %1237 = vperm.xlu0 %2335, %v1151_v52   ;;  %1322 = vperm.xlu1 %2336, %v1168_v53  }
 0x1e7   : > { %1242 = vperm.xlu0 %2335, %v1152_v58   ;;  %1247 = vperm.xlu1 %2336, %v1153_v59   ;;  %v1422_v58 = vpack.c.bf16 %v1403_v57, %v1402_v56  ;;  %v1127_v59 = vld [vmem:[#allocation2 + $0x90] sm:$0xff]  ;;  %v1116_v57 = vld [vmem:[#allocation2 + $0xe8] sm:$0xff] }
 0x1eb   : > { %1569 = vmatmul.bf16.gmra.mxu2 %v1421_v37  ;;  %v1114_v37 = vld [vmem:[#allocation2 + $0x80] sm:$0xff] }
 0x1ec   : > { %1529 = vmatmul.bf16.gmra.mxu0 %v1413_v51  ;;  %v1408_v51 = vld [vmem:[%s2584_s14 + $0xf0] sm:$0xff] }
 0x1f0   : > { %v1263_v26 = vpop.permute.xlu2 %1262 }
 0x1f1   : > { %v1348_v45 = vmul.f32 %v1263_v26, %v1124_v38 }
 0x1f8   : > { %v1268_v39 = vpop.permute.xlu2 %1267 }
 0x1f9   : > { %v1349_v46 = vmul.f32 %v1268_v39, %v1125_v40  ;;  %v1115_v39 = vld [vmem:[#allocation2 + $0x88] sm:$0xff]  ;;  %v1390_v40 = vld [vmem:[%s2584_s14 + $0x60] sm:$0xff] }
 0x1fb   : > { %v1371_v53 = vpack.c.bf16 %v1349_v46, %v1348_v45  ;;  %1574 = vmatmul.bf16.gmra.mxu2 %v1422_v58  ;;  %v1392_v58 = vld [vmem:[%s2584_s14 + $0x70] sm:$0xff] }
 0x1fc   : > { %1534 = vmatmul.bf16.gmra.mxu0 %v1414_v8  ;;  %v1134_v8 = vld [vmem:[#allocation2 + $0xa0] sm:$0xff] }
 0x200   : > { %v1273_v54 = vpop.permute.xlu2 %1272 }
 0x201   : > { %v1350_v4 = vmul.f32 %v1273_v54, %v1126_v62  ;;  %v1117_v62 = vld [vmem:[#allocation2 + $0xb8] sm:$0xff] }
 0x208   : > { %v1198_v2 = vpop.permute.xlu2 %1197 }
 0x209   : > { %v1253_v14 = vpop.permute.xlu0 %1252  ;;  %v1173_v15 = vpop.permute.xlu1 %1172  ;;  %v1335_v5 = vmul.f32 %v1198_v2, %v1111_v63 }
 0x20a   : > { %v1346_v27 = vmul.f32 %v1253_v14, %v1122_v19  ;;  %v1330_v28 = vmul.f32 %v1173_v15, %v1106_v20  ;;  %v1423_v14 = vpack.c.bf16 %v1405_v13, %v1404_v12  ;;  %v1128_v15 = vld [vmem:[#allocation2 + $0x70] sm:$0xff]  ;;  %v1389_v20 = vld [vmem:[%s2584_s14 + $0x58] sm:$0xff]  ;;  %v1118_v13 = vld [vmem:[#allocation2 + $0x60] sm:$0xff] }
 0x20b   : > { %v1388_v19 = vld [vmem:[%s2584_s14 + $0x50] sm:$0xff] }
 0x20c   : > { %1579 = vmatmul.bf16.gmra.mxu2 %v1423_v14  ;;  %v1415_v26 = vpack.c.bf16 %v1389_v20, %v1388_v19 }
 0x20e   : > { %1539 = vmatmul.bf16.gmra.mxu0 %v1415_v26 }
 0x210   : > { %v1203_v25 = vpop.permute.xlu2 %1202 }
 0x211   : > { %v1258_v23 = vpop.permute.xlu0 %1257  ;;  %v1178_v24 = vpop.permute.xlu1 %1177 }
 0x212   : > { %v1347_v29 = vmul.f32 %v1258_v23, %v1123_v21  ;;  %v1331_v30 = vmul.f32 %v1178_v24, %v1107_v22  ;;  %v1112_v21 = vld [vmem:[#allocation2 + $0x30] sm:$0xff] }
 0x214   : > { %v1362_v33 = vpack.c.bf16 %v1331_v30, %v1330_v28  ;;  %v1370_v34 = vpack.c.bf16 %v1347_v29, %v1346_v27  ;;  %v1336_v27 = vmul.f32 %v1203_v25, %v1112_v21  ;;  %v1120_v25 = vld [vmem:[#allocation2 + $0x8] sm:$0xff] }
 0x216   : > { %1651 = vmatmul.bf16.vlgmr.msra.gmra.mxu1 %v1362_v33  ;;  %1691 = vmatmul.bf16.vlgmr.msra.gmra.mxu3 %v1370_v34  ;;  %v1424_v34 = vpack.c.bf16 %v1407_v32, %v1406_v31 }
 0x218   : > { %v1298_v33 = vpop.permute.xlu2 %1297 }
 0x219   : > { %v1183_v41 = vpop.permute.xlu0 %1182  ;;  %v1188_v43 = vpop.permute.xlu1 %1187 }
 0x21a   : > { %v1332_v47 = vmul.f32 %v1183_v41, %v1108_v42  ;;  %v1333_v48 = vmul.f32 %v1188_v43, %v1109_v44  ;;  %v1391_v41 = vld [vmem:[%s2584_s14 + $0x68] sm:$0xff]  ;;  %v1131_v42 = vld [vmem:[#allocation2 + $0xd0] sm:$0xff] }
 0x21b   : > { %v1416_v46 = vpack.c.bf16 %v1391_v41, %v1390_v40  ;;  %v2811_v40 = vld [vmem:[%s2941_s6] ss:$0 sm:$0xff] }
 0x21c   : > { %v1363_v52 = vpack.c.bf16 %v1333_v48, %v1332_v47  ;;  %1584 = vmatmul.bf16.gmra.mxu2 %v1424_v34  ;;  %v1355_v47 = vmul.f32 %v1298_v33, %v1131_v42 }
 0x21e   : > { %1544 = vmatmul.bf16.gmra.mxu0 %v1416_v46 }
 0x220   : > { %v1303_v50 = vpop.permute.xlu2 %1302 }
 0x221   : > { %v1278_v55 = vpop.permute.xlu0 %1277  ;;  %v1193_v60 = vpop.permute.xlu1 %1192 }
 0x222   : > { %v1351_v0 = vmul.f32 %v1278_v55, %v1127_v59  ;;  %v1334_v1 = vmul.f32 %v1193_v60, %v1110_v61  ;;  %v1133_v55 = vld [vmem:[#allocation2 + $0x28] sm:$0xff]  ;;  %v1393_v59 = vld [vmem:[%s2584_s14 + $0x78] sm:$0xff]  ;;  %v1132_v60 = vld [vmem:[#allocation2 + $0x10] sm:$0xff] }
 0x223   : > { %v1356_v2 = vmul.f32 %v1303_v50, %v1132_v60 }
 0x224   : > { %v1364_v9 = vpack.c.bf16 %v1335_v5, %v1334_v1  ;;  %v1372_v10 = vpack.c.bf16 %v1351_v0, %v1350_v4  ;;  %v1417_v1 = vpack.c.bf16 %v1393_v59, %v1392_v58 }
 0x226   : > { %1656 = vmatmul.bf16.gmra.mxu1 %v1363_v52  ;;  %1696 = vmatmul.bf16.gmra.mxu3 %v1371_v53  ;;  %v1409_v52 = vld [vmem:[%s2584_s14 + $0xf8] sm:$0xff] }
 0x227   : > { %v1425_v54 = vpack.c.bf16 %v1409_v52, %v1408_v51 }
 0x228   : > { %v1228_v61 = vpop.permute.xlu2 %1227 }
 0x229   : > { %v1283_v7 = vpop.permute.xlu0 %1282  ;;  %v1288_v11 = vpop.permute.xlu1 %1287  ;;  %v1341_v3 = vmul.f32 %v1228_v61, %v1117_v62 }
 0x22a   : > { %v1352_v22 = vmul.f32 %v1283_v7, %v1128_v15  ;;  %v1353_v23 = vmul.f32 %v1288_v11, %v1129_v16  ;;  %v1119_v11 = vld [vmem:[#allocation2 + $0xf0] sm:$0xff] }
 0x22c   : > { %v1373_v30 = vpack.c.bf16 %v1353_v23, %v1352_v22  ;;  %1589 = vmatmul.bf16.gmra.mxu2 %v1425_v54  ;;  %v1136_v23 = vld [vmem:[#allocation2 + $0x20] sm:$0xff] }
 0x22e   : > { %1549 = vmatmul.bf16.gmra.mxu0 %v1417_v1 }
 0x230   : > { %v1233_v12 = vpop.permute.xlu2 %1232 }
 0x231   : > { %v1208_v17 = vpop.permute.xlu0 %1207  ;;  %v1293_v28 = vpop.permute.xlu1 %1292 }
 0x232   : > { %v1337_v24 = vmul.f32 %v1208_v17, %v1113_v18  ;;  %v1354_v43 = vmul.f32 %v1293_v28, %v1130_v35  ;;  %v1342_v17 = vmul.f32 %v1233_v12, %v1118_v13 }
 0x234   : > { %v1365_v29 = vpack.c.bf16 %v1337_v24, %v1336_v27  ;;  %v1374_v49 = vpack.c.bf16 %v1355_v47, %v1354_v43  ;;  %v1121_v27 = vld [vmem:[#allocation2 + $0x78] sm:$0xff] }
 0x236   : > { %1661 = vmatmul.bf16.gmra.mxu1 %v1364_v9  ;;  %1701 = vmatmul.bf16.gmra.mxu3 %v1372_v10  ;;  %v1135_v9 = vld [vmem:[#allocation2 + $0xf8] sm:$0xff] }
 0x238   : > { %v1328_v28 = vpop.permute.xlu2 %1327 }
 0x239   : > { %v1213_v36 = vpop.permute.xlu0 %1212  ;;  %v1218_v38 = vpop.permute.xlu1 %1217 }
 0x23a   : > { %v1338_v44 = vmul.f32 %v1213_v36, %v1114_v37  ;;  %v1339_v45 = vmul.f32 %v1218_v38, %v1115_v39  ;;  %v1515_v21 = vpop.f32.mrf.mxu0 }
 0x23c   : > { %v1366_v48 = vpack.c.bf16 %v1339_v45, %v1338_v44  ;;  %v2816_v44 = vld [vmem:[%s2942_s7] ss:$0 sm:$0xff] }
 0x23e   : > { %v1555_v22 = vpop.f32.mrf.mxu2 }
 0x241   : > { %v1308_v53 = vpop.permute.xlu0 %1307  ;;  %v1223_v56 = vpop.permute.xlu1 %1222 }
 0x242   : > { %v1357_v63 = vmul.f32 %v1308_v53, %v1133_v55  ;;  %v1340_v0 = vmul.f32 %v1223_v56, %v1116_v57 }
 0x244   : > { %v1367_v5 = vpack.c.bf16 %v1341_v3, %v1340_v0  ;;  %v1375_v6 = vpack.c.bf16 %v1357_v63, %v1356_v2 }
 0x246   : > { %1666 = vmatmul.bf16.gmra.mxu1 %v1365_v29  ;;  %1706 = vmatmul.bf16.gmra.mxu3 %v1373_v30  ;;  %v1137_v29 = vld [vmem:[#allocation2 + $0x98] sm:$0xff]  ;;  %v1517_v30 = vpop.f32.mrf.mxu0  ;;  %v1557_v37 = vpop.f32.mrf.mxu2 }
 0x247   : > { %v1361_v34 = vmul.f32 %v1328_v28, %v1137_v29 }
 0x249   : > { %v1313_v4 = vpop.permute.xlu0 %1312  ;;  %v1318_v7 = vpop.permute.xlu1 %1317 }
 0x24a   : > { %v1358_v14 = vmul.f32 %v1313_v4, %v1134_v8  ;;  %v1359_v15 = vmul.f32 %v1318_v7, %v1135_v9 }
 0x24c   : > { %v1376_v20 = vpack.c.bf16 %v1359_v15, %v1358_v14 }
 0x24e   : > { %v1520_v38 = vpop.f32.mrf.mxu0  ;;  %v1560_v39 = vpop.f32.mrf.mxu2 }
 0x251   : > { %v1238_v10 = vpop.permute.xlu0 %1237  ;;  %v1323_v18 = vpop.permute.xlu1 %1322 }
 0x252   : > { %v1343_v16 = vmul.f32 %v1238_v10, %v1119_v11  ;;  %v1360_v31 = vmul.f32 %v1323_v18, %v1136_v23 }
 0x254   : > { %v1368_v19 = vpack.c.bf16 %v1343_v16, %v1342_v17  ;;  %v1377_v36 = vpack.c.bf16 %v1361_v34, %v1360_v31 }
 0x256   : > { %1671 = vmatmul.bf16.gmra.mxu1 %v1366_v48  ;;  %1711 = vmatmul.bf16.gmra.mxu3 %v1374_v49  ;;  %v1522_v42 = vpop.f32.mrf.mxu0  ;;  %v1562_v48 = vpop.f32.mrf.mxu2 }
 0x259   : > { %v1243_v24 = vpop.permute.xlu0 %1242  ;;  %v1248_v26 = vpop.permute.xlu1 %1247 }
 0x25a   : > { %v1344_v32 = vmul.f32 %v1243_v24, %v1120_v25  ;;  %v1345_v33 = vmul.f32 %v1248_v26, %v1121_v27 }
 0x25c   : > { %v1369_v35 = vpack.c.bf16 %v1345_v33, %v1344_v32 }
 0x25e   : > { %v1525_v54 = vpop.f32.mrf.mxu0  ;;  %v1565_v63 = vpop.f32.mrf.mxu2 }
 0x266   : > { %1676 = vmatmul.bf16.gmra.mxu1 %v1367_v5  ;;  %1716 = vmatmul.bf16.gmra.mxu3 %v1375_v6  ;;  %v1527_v4 = vpop.f32.mrf.mxu0  ;;  %v1567_v13 = vpop.f32.mrf.mxu2 }
 0x26e   : > { %v1570_v27 = vpop.f32.mrf.mxu2 }
 0x276   : > { %1681 = vmatmul.bf16.gmra.mxu1 %v1368_v19  ;;  %1721 = vmatmul.bf16.gmra.mxu3 %v1376_v20  ;;  %v1530_v19 = vpop.f32.mrf.mxu0 }
 0x27e   : > { %v1532_v34 = vpop.f32.mrf.mxu0 }
 0x286   : > { %1686 = vmatmul.bf16.gmra.mxu1 %v1369_v35  ;;  %1726 = vmatmul.bf16.gmra.mxu3 %v1377_v36 }
 0x293   : > { %v1652_v41 = vpop.f32.mrf.mxu1 }
 0x294   : > { %v1653_v43 = vadd.f32 %v1652_v41, %v1515_v21 }
 0x296   : > { %v1736_v45 = vmul.f32 %v2811_v40, %v1653_v43  ;;  %v1572_v43 = vpop.f32.mrf.mxu2 }
 0x298   : > { %v1772_v46 = vadd.f32 %v2816_v44, %v1736_v45 }
 0x299   : > { %v1692_v47 = vpop.f32.mrf.mxu3 }
 0x29a   : > { %v1804_v49 = vmax.f32 %v1772_v46, 0.0  ;;  %v1693_v50 = vadd.f32 %v1692_v47, %v1555_v22 }
 0x29b   : > { %v1654_v51 = vpop.f32.mrf.mxu1 }
 0x29c   : > { %1836 = vst [vmem:[%s2589_s30] sm:$0xff] %v1804_v49  ;;  %v1752_v52 = vmul.f32 %v2811_v40, %v1693_v50  ;;  %v1655_v53 = vadd.f32 %v1654_v51, %v1517_v30  ;;  %v1535_v50 = vpop.f32.mrf.mxu0 }
 0x29e   : > { %v1788_v55 = vadd.f32 %v2816_v44, %v1752_v52  ;;  %v1737_v56 = vmul.f32 %v2811_v40, %v1655_v53 }
 0x2a0   : > { %v1820_v57 = vmax.f32 %v1788_v55, 0.0  ;;  %v1773_v58 = vadd.f32 %v2816_v44, %v1737_v56 }
 0x2a1   : > { %v1694_v59 = vpop.f32.mrf.mxu3 }
 0x2a2   : > { %1852 = vst [vmem:[%s2589_s30 + $0x80] sm:$0xff] %v1820_v57  ;;  %v1805_v60 = vmax.f32 %v1773_v58, 0.0  ;;  %v1695_v61 = vadd.f32 %v1694_v59, %v1557_v37  ;;  %v1575_v59 = vpop.f32.mrf.mxu2 }
 0x2a3   : > { %v1657_v62 = vpop.f32.mrf.mxu1 }
 0x2a4   : > { %1837 = vst [vmem:[%s2589_s30 + $0x8] sm:$0xff] %v1805_v60  ;;  %v1753_v0 = vmul.f32 %v2811_v40, %v1695_v61  ;;  %v1658_v1 = vadd.f32 %v1657_v62, %v1520_v38 }
 0x2a6   : > { %v1789_v2 = vadd.f32 %v2816_v44, %v1753_v0  ;;  %v1738_v3 = vmul.f32 %v2811_v40, %v1658_v1  ;;  %v1537_v0 = vpop.f32.mrf.mxu0 }
 0x2a8   : > { %v1821_v5 = vmax.f32 %v1789_v2, 0.0  ;;  %v1774_v6 = vadd.f32 %v2816_v44, %v1738_v3 }
 0x2a9   : > { %v1697_v7 = vpop.f32.mrf.mxu3 }
 0x2aa   : > { %1853 = vst [vmem:[%s2589_s30 + $0x88] sm:$0xff] %v1821_v5  ;;  %v1806_v8 = vmax.f32 %v1774_v6, 0.0  ;;  %v1698_v9 = vadd.f32 %v1697_v7, %v1560_v39 }
 0x2ab   : > { %v1659_v10 = vpop.f32.mrf.mxu1 }
 0x2ac   : > { %1838 = vst [vmem:[%s2589_s30 + $0x10] sm:$0xff] %v1806_v8  ;;  %v1754_v11 = vmul.f32 %v2811_v40, %v1698_v9  ;;  %v1660_v12 = vadd.f32 %v1659_v10, %v1522_v42  ;;  %v1577_v9 = vpop.f32.mrf.mxu2 }
 0x2ae   : > { %v1790_v14 = vadd.f32 %v2816_v44, %v1754_v11  ;;  %v1739_v15 = vmul.f32 %v2811_v40, %v1660_v12 }
 0x2b0   : > { %v1822_v16 = vmax.f32 %v1790_v14, 0.0  ;;  %v1775_v17 = vadd.f32 %v2816_v44, %v1739_v15  ;;  %v1540_v15 = vpop.f32.mrf.mxu0 }
 0x2b1   : > { %v1699_v18 = vpop.f32.mrf.mxu3 }
 0x2b2   : > { %1854 = vst [vmem:[%s2589_s30 + $0x90] sm:$0xff] %v1822_v16  ;;  %v1807_v20 = vmax.f32 %v1775_v17, 0.0  ;;  %v1700_v21 = vadd.f32 %v1699_v18, %v1562_v48 }
 0x2b3   : > { %v1662_v22 = vpop.f32.mrf.mxu1 }
 0x2b4   : > { %1839 = vst [vmem:[%s2589_s30 + $0x18] sm:$0xff] %v1807_v20  ;;  %v1755_v23 = vmul.f32 %v2811_v40, %v1700_v21  ;;  %v1663_v24 = vadd.f32 %v1662_v22, %v1525_v54 }
 0x2b6   : > { %v1791_v25 = vadd.f32 %v2816_v44, %v1755_v23  ;;  %v1740_v26 = vmul.f32 %v2811_v40, %v1663_v24  ;;  %v1580_v23 = vpop.f32.mrf.mxu2 }
 0x2b8   : > { %v1823_v28 = vmax.f32 %v1791_v25, 0.0  ;;  %v1776_v29 = vadd.f32 %v2816_v44, %v1740_v26 }
 0x2b9   : > { %v1702_v30 = vpop.f32.mrf.mxu3 }
 0x2ba   : > { %1855 = vst [vmem:[%s2589_s30 + $0x98] sm:$0xff] %v1823_v28  ;;  %v1808_v31 = vmax.f32 %v1776_v29, 0.0  ;;  %v1703_v32 = vadd.f32 %v1702_v30, %v1565_v63  ;;  %v1542_v30 = vpop.f32.mrf.mxu0 }
 0x2bb   : > { %v1664_v33 = vpop.f32.mrf.mxu1 }
 0x2bc   : > { %1840 = vst [vmem:[%s2589_s30 + $0x20] sm:$0xff] %v1808_v31  ;;  %v1756_v35 = vmul.f32 %v2811_v40, %v1703_v32  ;;  %v1665_v36 = vadd.f32 %v1664_v33, %v1527_v4 }
 0x2be   : > { %v1792_v37 = vadd.f32 %v2816_v44, %v1756_v35  ;;  %v1741_v38 = vmul.f32 %v2811_v40, %v1665_v36 }
 0x2c0   : > { %v1824_v39 = vmax.f32 %v1792_v37, 0.0  ;;  %v1777_v41 = vadd.f32 %v2816_v44, %v1741_v38  ;;  %v1582_v37 = vpop.f32.mrf.mxu2 }
 0x2c1   : > { %v1704_v42 = vpop.f32.mrf.mxu3 }
 0x2c2   : > { %1856 = vst [vmem:[%s2589_s30 + $0xa0] sm:$0xff] %v1824_v39  ;;  %v1809_v45 = vmax.f32 %v1777_v41, 0.0  ;;  %v1705_v46 = vadd.f32 %v1704_v42, %v1567_v13 }
 0x2c3   : > { %v1667_v47 = vpop.f32.mrf.mxu1 }
 0x2c4   : > { %1841 = vst [vmem:[%s2589_s30 + $0x28] sm:$0xff] %v1809_v45  ;;  %v1757_v48 = vmul.f32 %v2811_v40, %v1705_v46  ;;  %v1668_v49 = vadd.f32 %v1667_v47, %v1530_v19  ;;  %v1545_v46 = vpop.f32.mrf.mxu0 }
 0x2c6   : > { %v1793_v51 = vadd.f32 %v2816_v44, %v1757_v48  ;;  %v1742_v52 = vmul.f32 %v2811_v40, %v1668_v49 }
 0x2c8   : > { %v1825_v53 = vmax.f32 %v1793_v51, 0.0  ;;  %v1778_v54 = vadd.f32 %v2816_v44, %v1742_v52 }
 0x2c9   : > { %v1707_v55 = vpop.f32.mrf.mxu3 }
 0x2ca   : > { %1857 = vst [vmem:[%s2589_s30 + $0xa8] sm:$0xff] %v1825_v53  ;;  %v1810_v56 = vmax.f32 %v1778_v54, 0.0  ;;  %v1708_v57 = vadd.f32 %v1707_v55, %v1570_v27  ;;  %v1585_v54 = vpop.f32.mrf.mxu2 }
 0x2cb   : > { %v1669_v58 = vpop.f32.mrf.mxu1 }
 0x2cc   : > { %1842 = vst [vmem:[%s2589_s30 + $0x30] sm:$0xff] %v1810_v56  ;;  %v1758_v60 = vmul.f32 %v2811_v40, %v1708_v57  ;;  %v1670_v61 = vadd.f32 %v1669_v58, %v1532_v34 }
 0x2ce   : > { %v1794_v62 = vadd.f32 %v2816_v44, %v1758_v60  ;;  %v1743_v63 = vmul.f32 %v2811_v40, %v1670_v61  ;;  %v1547_v60 = vpop.f32.mrf.mxu0 }
 0x2d0   : > { %v1826_v1 = vmax.f32 %v1794_v62, 0.0  ;;  %v1779_v2 = vadd.f32 %v2816_v44, %v1743_v63 }
 0x2d1   : > { %v1709_v3 = vpop.f32.mrf.mxu3 }
 0x2d2   : > { %1858 = vst [vmem:[%s2589_s30 + $0xb0] sm:$0xff] %v1826_v1  ;;  %v1811_v4 = vmax.f32 %v1779_v2, 0.0  ;;  %v1710_v5 = vadd.f32 %v1709_v3, %v1572_v43 }
 0x2d3   : > { %v1672_v6 = vpop.f32.mrf.mxu1 }
 0x2d4   : > { %1843 = vst [vmem:[%s2589_s30 + $0x38] sm:$0xff] %v1811_v4  ;;  %v1759_v7 = vmul.f32 %v2811_v40, %v1710_v5  ;;  %v1673_v8 = vadd.f32 %v1672_v6, %v1535_v50  ;;  %v1587_v5 = vpop.f32.mrf.mxu2 }
 0x2d6   : > { %v1795_v10 = vadd.f32 %v2816_v44, %v1759_v7  ;;  %v1744_v11 = vmul.f32 %v2811_v40, %v1673_v8 }
 0x2d8   : > { %v1827_v12 = vmax.f32 %v1795_v10, 0.0  ;;  %v1780_v13 = vadd.f32 %v2816_v44, %v1744_v11  ;;  %v1550_v10 = vpop.f32.mrf.mxu0 }
 0x2d9   : > { %v1712_v14 = vpop.f32.mrf.mxu3 }
 0x2da   : > { %1859 = vst [vmem:[%s2589_s30 + $0xb8] sm:$0xff] %v1827_v12  ;;  %v1812_v16 = vmax.f32 %v1780_v13, 0.0  ;;  %v1713_v17 = vadd.f32 %v1712_v14, %v1575_v59 }
 0x2db   : > { %v1674_v18 = vpop.f32.mrf.mxu1 }
 0x2dc   : > { %1844 = vst [vmem:[%s2589_s30 + $0x40] sm:$0xff] %v1812_v16  ;;  %v1760_v19 = vmul.f32 %v2811_v40, %v1713_v17  ;;  %v1675_v20 = vadd.f32 %v1674_v18, %v1537_v0 }
 0x2de   : > { %v1796_v21 = vadd.f32 %v2816_v44, %v1760_v19  ;;  %v1745_v22 = vmul.f32 %v2811_v40, %v1675_v20  ;;  %v1590_v19 = vpop.f32.mrf.mxu2 }
 0x2e0   : > { %v1828_v24 = vmax.f32 %v1796_v21, 0.0  ;;  %v1781_v25 = vadd.f32 %v2816_v44, %v1745_v22 }
 0x2e1   : > { %v1714_v26 = vpop.f32.mrf.mxu3 }
 0x2e2   : > { %1860 = vst [vmem:[%s2589_s30 + $0xc0] sm:$0xff] %v1828_v24  ;;  %v1813_v27 = vmax.f32 %v1781_v25, 0.0  ;;  %v1715_v28 = vadd.f32 %v1714_v26, %v1577_v9  ;;  %v1552_v25 = vpop.f32.mrf.mxu0 }
 0x2e3   : > { %v1677_v29 = vpop.f32.mrf.mxu1 }
 0x2e4   : > { %1845 = vst [vmem:[%s2589_s30 + $0x48] sm:$0xff] %v1813_v27  ;;  %v1761_v31 = vmul.f32 %v2811_v40, %v1715_v28  ;;  %v1678_v32 = vadd.f32 %v1677_v29, %v1540_v15 }
 0x2e6   : > { %v1797_v33 = vadd.f32 %v2816_v44, %v1761_v31  ;;  %v1746_v34 = vmul.f32 %v2811_v40, %v1678_v32 }
 0x2e8   : > { %v1829_v35 = vmax.f32 %v1797_v33, 0.0  ;;  %v1782_v36 = vadd.f32 %v2816_v44, %v1746_v34  ;;  %v1592_v33 = vpop.f32.mrf.mxu2 }
 0x2e9   : > { %v1717_v38 = vpop.f32.mrf.mxu3 }
 0x2ea   : > { %1861 = vst [vmem:[%s2589_s30 + $0xc8] sm:$0xff] %v1829_v35  ;;  %v1814_v39 = vmax.f32 %v1782_v36, 0.0  ;;  %v1718_v41 = vadd.f32 %v1717_v38, %v1580_v23 }
 0x2eb   : > { %v1679_v42 = vpop.f32.mrf.mxu1 }
 0x2ec   : > { %1846 = vst [vmem:[%s2589_s30 + $0x50] sm:$0xff] %v1814_v39  ;;  %v1762_v43 = vmul.f32 %v2811_v40, %v1718_v41  ;;  %v1680_v45 = vadd.f32 %v1679_v42, %v1542_v30 }
 0x2ee   : > { %v1798_v47 = vadd.f32 %v2816_v44, %v1762_v43  ;;  %v1747_v48 = vmul.f32 %v2811_v40, %v1680_v45 }
 0x2f0   : > { %v1830_v49 = vmax.f32 %v1798_v47, 0.0  ;;  %v1783_v50 = vadd.f32 %v2816_v44, %v1747_v48 }
 0x2f1   : > { %v1719_v51 = vpop.f32.mrf.mxu3 }
 0x2f2   : > { %1862 = vst [vmem:[%s2589_s30 + $0xd0] sm:$0xff] %v1830_v49  ;;  %v1815_v52 = vmax.f32 %v1783_v50, 0.0  ;;  %v1720_v53 = vadd.f32 %v1719_v51, %v1582_v37 }
 0x2f3   : > { %v1682_v55 = vpop.f32.mrf.mxu1 }
 0x2f4   : > { %1847 = vst [vmem:[%s2589_s30 + $0x58] sm:$0xff] %v1815_v52  ;;  %v1763_v56 = vmul.f32 %v2811_v40, %v1720_v53  ;;  %v1683_v57 = vadd.f32 %v1682_v55, %v1545_v46 }
 0x2f6   : > { %v1799_v58 = vadd.f32 %v2816_v44, %v1763_v56  ;;  %v1748_v59 = vmul.f32 %v2811_v40, %v1683_v57 }
 0x2f8   : > { %v1831_v61 = vmax.f32 %v1799_v58, 0.0  ;;  %v1784_v62 = vadd.f32 %v2816_v44, %v1748_v59 }
 0x2f9   : > { %v1722_v63 = vpop.f32.mrf.mxu3 }
 0x2fa   : > { %1863 = vst [vmem:[%s2589_s30 + $0xd8] sm:$0xff] %v1831_v61  ;;  %v1816_v0 = vmax.f32 %v1784_v62, 0.0  ;;  %v1723_v1 = vadd.f32 %v1722_v63, %v1585_v54 }
 0x2fb   : > { %v1684_v2 = vpop.f32.mrf.mxu1 }
 0x2fc   : > { %1848 = vst [vmem:[%s2589_s30 + $0x60] sm:$0xff] %v1816_v0  ;;  %v1764_v3 = vmul.f32 %v2811_v40, %v1723_v1  ;;  %v1685_v4 = vadd.f32 %v1684_v2, %v1547_v60 }
 0x2fe   : > { %v1800_v6 = vadd.f32 %v2816_v44, %v1764_v3  ;;  %v1749_v7 = vmul.f32 %v2811_v40, %v1685_v4 }
 0x300   : > { %v1832_v8 = vmax.f32 %v1800_v6, 0.0  ;;  %v1785_v9 = vadd.f32 %v2816_v44, %v1749_v7 }
 0x301   : > { %v1724_v11 = vpop.f32.mrf.mxu3 }
 0x302   : > { %1864 = vst [vmem:[%s2589_s30 + $0xe0] sm:$0xff] %v1832_v8  ;;  %v1817_v12 = vmax.f32 %v1785_v9, 0.0  ;;  %v1725_v13 = vadd.f32 %v1724_v11, %v1587_v5 }
 0x303   : > { %v1687_v14 = vpop.f32.mrf.mxu1 }
 0x304   : > { %1849 = vst [vmem:[%s2589_s30 + $0x68] sm:$0xff] %v1817_v12  ;;  %v1765_v15 = vmul.f32 %v2811_v40, %v1725_v13  ;;  %v1688_v16 = vadd.f32 %v1687_v14, %v1550_v10 }
 0x306   : > { %v1801_v17 = vadd.f32 %v2816_v44, %v1765_v15  ;;  %v1750_v18 = vmul.f32 %v2811_v40, %v1688_v16 }
 0x308   : > { %v1833_v20 = vmax.f32 %v1801_v17, 0.0  ;;  %v1786_v21 = vadd.f32 %v2816_v44, %v1750_v18 }
 0x309   : > { %v1727_v22 = vpop.f32.mrf.mxu3 }
 0x30a   : > { %1865 = vst [vmem:[%s2589_s30 + $0xe8] sm:$0xff] %v1833_v20  ;;  %v1818_v23 = vmax.f32 %v1786_v21, 0.0  ;;  %v1728_v24 = vadd.f32 %v1727_v22, %v1590_v19 }
 0x30b   : > { %v1689_v26 = vpop.f32.mrf.mxu1 }
 0x30c   : > { %1850 = vst [vmem:[%s2589_s30 + $0x70] sm:$0xff] %v1818_v23  ;;  %v1766_v27 = vmul.f32 %v2811_v40, %v1728_v24  ;;  %v1690_v28 = vadd.f32 %v1689_v26, %v1552_v25 }
 0x30e   : > { %v1802_v29 = vadd.f32 %v2816_v44, %v1766_v27  ;;  %v1751_v30 = vmul.f32 %v2811_v40, %v1690_v28 }
 0x310   : > { %v1834_v31 = vmax.f32 %v1802_v29, 0.0  ;;  %v1787_v32 = vadd.f32 %v2816_v44, %v1751_v30 }
 0x311   : > { %v1729_v34 = vpop.f32.mrf.mxu3 }
 0x312   : > { %1866 = vst [vmem:[%s2589_s30 + $0xf0] sm:$0xff] %v1834_v31  ;;  %v1819_v35 = vmax.f32 %v1787_v32, 0.0  ;;  %v1730_v36 = vadd.f32 %v1729_v34, %v1592_v33 }
 0x314   : > { %1851 = vst [vmem:[%s2589_s30 + $0x78] sm:$0xff] %v1819_v35  ;;  %v1767_v37 = vmul.f32 %v2811_v40, %v1730_v36 }
 0x316   : > { %v1803_v38 = vadd.f32 %v2816_v44, %v1767_v37 }
 0x318   : > { %v1835_v39 = vmax.f32 %v1803_v38, 0.0 }
 0x31a   : > { %1867 = vst [vmem:[%s2589_s30 + $0xf8] sm:$0xff] %v1835_v39 }
 0x31b PF: > { %s18_s11 = sadd.s32 1, %s2394_s11   ;;  %s2948_s23 = sld [smem:[#allocation4_spill]] }
 0x31c   : > { %p15_p0 = scmp.ge.s32.totalorder %s18_s11, 6   ;;  %s2949_s27 = smov %s2374_s28 }
 0x31d   : > { %s2950_s28 = smov %s2494_s18  ;;  %s2951_s29 = smov %s2386_s9 }
 0x31e   : > { %s2952_s30 = smov %s2390_s10  ;;  %s2953_s9 = smov %s2956_s12 }
 0x31f   :  { %17 = sbr.rel (!%p15_p0) target bundleno = 6 (0x6), region = 142 }
 0x321   : > { %s2954_s10 = smov %s2948_s23 }

</bundles_post_ra>
